<compile_context>
chip_gen: v5e
topology: v5e:2x2
jax: 0.10.0
libtpu: 0.0.40
codegen_flags: <defaults>
</compile_context>

<pallas_src>
import functools
import math

import jax
import jax.numpy as jnp
from jax import lax
from jax.experimental import pallas as pl
from jax.experimental.pallas import tpu as pltpu


def _qkv_attn_kernel(q_ref, k_ref, v_ref, o_ref, *, scale):
    # q_ref: (G, ch, tq)  -- pipelined per (head-group, query-tile)
    # k_ref: (G, ch, T)   -- VMEM-resident across the query-tile grid axis
    # v_ref: (G, ch, T)
    # o_ref: (G, ch, tq)
    q = q_ref[...] * (scale * scale)   # fold softmax scale into q (ch*tq elems)
    k = k_ref[...]
    v = v_ref[...]

    # scores[g, t, s] = sum_c q[g, c, t] * k[g, c, s]   (MXU, f32 accumulate)
    s = lax.dot_general(q, k, (((1,), (1,)), ((0,), (0,))),
                        preferred_element_type=jnp.float32)       # (G, tq, T)

    # Row softmax over the key axis (lanes); statistics in f32.
    m = jnp.max(s, axis=-1, keepdims=True)                        # (G, tq, 1)
    e = jnp.exp(s - m)                                            # (G, tq, T)
    denom = jnp.sum(e, axis=-1, keepdims=True)                    # (G, tq, 1)

    # Deferred normalization: PV matmul on unnormalized probs (in [0,1]),
    # cast to the input dtype to ride the MXU's native bf16 path.
    p = e.astype(v.dtype)

    # a[g, c, t] = sum_s v[g, c, s] * p[g, t, s]        (MXU, rhs-transposed)
    a = lax.dot_general(v, p, (((2,), (2,)), ((0,), (0,))),
                        preferred_element_type=jnp.float32)       # (G, ch, tq)

    # Normalize the small (ch, tq) result: tq reciprocals on the EUP + a tiny
    # (tq,1)->(1,tq) relayout + ch*tq VPU multiplies.
    inv = pl.reciprocal(denom, approx=True)                       # (G, tq, 1)
    a = a * jnp.swapaxes(inv, 1, 2)                               # (G, ch, tq)
    o_ref[...] = a.astype(o_ref.dtype)


def _vmem_footprint(g, tq, ch, T, itemsize):
    """Rough per-step VMEM bytes: double-buffered blocks + f32 softmax temps."""
    inp = 2 * g * ch * (tq + 2 * T) * itemsize    # q block + resident k, v blocks
    out = 2 * g * ch * tq * itemsize              # output block
    tmp = 3 * g * tq * T * 4                      # scores / exp / probs temps
    return inp + out + tmp


def _choose_tiling(B, ch, T, itemsize, budget_bytes):
    """Pick (heads_per_step G, q_tile) fitting the soft VMEM budget."""
    # Query-tile candidates: prefer the largest lane-aligned tile (fewer grid
    # steps -> amortized per-step overhead, wider lane-dense stores).
    cands = [T] if (T <= 512 or T % 128 != 0) else []
    if T % 128 == 0:
        cands += [t for t in (512, 256, 128) if t < T and T % t == 0]
    if not cands:
        cands = [T]

    for tq in cands:
        for g in range(B, 0, -1):
            if B % g == 0 and _vmem_footprint(g, tq, ch, T, itemsize) <= budget_bytes:
                return g, tq
    # Nothing fits the soft budget; fall back to the smallest config.
    # TODO(synk): flash-style online-softmax KV tiling for very long T (needed
    # earlier on v7x's 64 MiB VMEM than on v5e/v6e's 128 MiB).
    return 1, cands[-1]


def qkv_attention_legacy(qkv, n_heads, *, q_tile=None, heads_per_step=None,
                         vmem_budget_bytes=12 * 1024 * 1024,
                         vmem_limit_bytes=None):
    """Pallas TPU implementation of QKVAttentionLegacy.forward.

    qkv: [N, H*3*C, T] array (f32 or bf16). Returns [N, H*C, T] in qkv.dtype.
    """
    bs, width, T = qkv.shape
    assert width % (3 * n_heads) == 0, "width must be divisible by 3 * n_heads"
    ch = width // (3 * n_heads)
    B = bs * n_heads
    scale = 1.0 / math.sqrt(math.sqrt(ch))
    itemsize = jnp.dtype(qkv.dtype).itemsize

    auto_g, auto_tq = _choose_tiling(B, ch, T, itemsize, vmem_budget_bytes)
    tq = q_tile if q_tile is not None else auto_tq
    G = heads_per_step if heads_per_step is not None else auto_g
    assert T % tq == 0 and (tq % 128 == 0 or tq == T), \
        "q_tile must divide T and be a multiple of 128 (or equal T)"
    assert B % G == 0, "heads_per_step must divide N * n_heads"

    # If the chosen config overflows the soft budget, ask for more scoped VMEM.
    if vmem_limit_bytes is None:
        fp = _vmem_footprint(G, tq, ch, T, itemsize)
        if fp > vmem_budget_bytes:
            vmem_limit_bytes = int(fp * 1.25)

    # Free reshape (no HBM transpose): q/k/v land on a clean dim boundary.
    qkv_r = qkv.reshape(B, 3, ch, T)

    kernel = functools.partial(_qkv_attn_kernel, scale=scale)
    cost = pl.CostEstimate(
        flops=4 * B * T * T * ch,            # QK^T and PV matmuls
        transcendentals=B * T * T,           # exp
        bytes_accessed=4 * B * ch * T * itemsize)

    out = pl.pallas_call(
        kernel,
        out_shape=jax.ShapeDtypeStruct((B, ch, T), qkv.dtype),
        grid_spec=pltpu.PrefetchScalarGridSpec(
            num_scalar_prefetch=0,
            grid=(B // G, T // tq),
            in_specs=[
                # q: pipelined per (head-group, query-tile).
                pl.BlockSpec((G, None, ch, tq), lambda b, qt: (b, 0, 0, qt)),
                # k, v: constant index along the qt axis -> DMA'd once per
                # head group, VMEM-resident while query tiles iterate.
                pl.BlockSpec((G, None, ch, T), lambda b, qt: (b, 1, 0, 0)),
                pl.BlockSpec((G, None, ch, T), lambda b, qt: (b, 2, 0, 0)),
            ],
            out_specs=pl.BlockSpec((G, ch, tq), lambda b, qt: (b, 0, qt)),
        ),
        compiler_params=pltpu.CompilerParams(
            dimension_semantics=("parallel", "parallel"),
            vmem_limit_bytes=vmem_limit_bytes),
        cost_estimate=cost,
    )(qkv_r, qkv_r, qkv_r)

    # Free reshape back to [N, H*C, T].
    return out.reshape(bs, n_heads * ch, T)


def qkv_attention_legacy_ref(qkv, n_heads):
    """Pure-JAX reference mirroring the PyTorch forward."""
    bs, width, T = qkv.shape
    ch = width // (3 * n_heads)
    qkv_r = qkv.reshape(bs * n_heads, 3 * ch, T)
    q, k, v = qkv_r[:, :ch], qkv_r[:, ch:2 * ch], qkv_r[:, 2 * ch:]
    scale = 1.0 / math.sqrt(math.sqrt(ch))
    w = jnp.einsum("bct,bcs->bts",
                   (q * scale).astype(jnp.float32),
                   (k * scale).astype(jnp.float32))
    w = jax.nn.softmax(w, axis=-1).astype(qkv.dtype)
    a = jnp.einsum("bts,bcs->bct", w.astype(jnp.float32), v.astype(jnp.float32))
    return a.reshape(bs, -1, T).astype(qkv.dtype)


if __name__ == "__main__":
    # [N x (H * 3 * C) x T]: N=2 batches, H=2 heads, C=32 channels/head, T=256.
    N, H, C, T = 2, 2, 32, 256
    key = jax.random.PRNGKey(0)
    qkv = jax.random.normal(key, (N, H * 3 * C, T), jnp.float32)

    out = jax.block_until_ready(qkv_attention_legacy(qkv, H))
    assert out.shape == (N, H * C, T)

    ref = qkv_attention_legacy_ref(qkv, H)
    max_err = float(jnp.max(jnp.abs(out - ref)))
    # Tolerance covers the approx-reciprocal softmax denominator.
    assert jnp.allclose(out, ref, atol=5e-3, rtol=5e-3), max_err

    # bf16 smoke run (native MXU bf16 path, half the HBM bytes).
    out_bf16 = jax.block_until_ready(
        qkv_attention_legacy(qkv.astype(jnp.bfloat16), H))
    assert out_bf16.shape == (N, H * C, T)
    assert jnp.allclose(out_bf16.astype(jnp.float32), ref, atol=1e-1, rtol=1e-1)

    print("KERNEL_OK")
</pallas_src>

<mosaic_0001>
module attributes {stable_mosaic.version = 11 : i64} {
  func.func @_qkv_attn_kernel(%arg0: i32, %arg1: i32, %arg2: memref<4x1x32x256xf32, #tpu.memory_space<vmem>>, %arg3: memref<4x1x32x256xf32, #tpu.memory_space<vmem>>, %arg4: memref<4x1x32x256xf32, #tpu.memory_space<vmem>>, %arg5: memref<4x32x256xf32, #tpu.memory_space<vmem>>) attributes {dimension_semantics = [#tpu.dimension_semantics<parallel>, #tpu.dimension_semantics<parallel>], iteration_bounds = array<i64: 1, 1>, scalar_prefetch = 0 : i64, scratch_operands = 0 : i64, tpu.core_type = #tpu.core_type<tc>, window_params = [{transform_indices = @transform_0, window_bounds = array<i64: 4, 1, 32, 256>}, {transform_indices = @transform_1, window_bounds = array<i64: 4, 1, 32, 256>}, {transform_indices = @transform_2, window_bounds = array<i64: 4, 1, 32, 256>}, {transform_indices = @transform_3, window_bounds = array<i64: 4, 32, 256>}]} {
    %c0 = arith.constant 0 : index
    %c0_0 = arith.constant 0 : index
    %c0_1 = arith.constant 0 : index
    %c0_2 = arith.constant 0 : index
    %0 = vector.load %arg2[%c0, %c0_0, %c0_1, %c0_2] : memref<4x1x32x256xf32, #tpu.memory_space<vmem>>, vector<4x1x32x256xf32>
    %1 = vector.shape_cast %0 : vector<4x1x32x256xf32> to vector<4x32x256xf32>
    %cst = arith.constant 0.176776692 : f32
    %2 = vector.broadcast %cst : f32 to vector<4x32x256xf32>
    %3 = arith.mulf %1, %2 : vector<4x32x256xf32>
    %c0_3 = arith.constant 0 : index
    %c0_4 = arith.constant 0 : index
    %c0_5 = arith.constant 0 : index
    %c0_6 = arith.constant 0 : index
    %4 = vector.load %arg3[%c0_3, %c0_4, %c0_5, %c0_6] : memref<4x1x32x256xf32, #tpu.memory_space<vmem>>, vector<4x1x32x256xf32>
    %5 = vector.shape_cast %4 : vector<4x1x32x256xf32> to vector<4x32x256xf32>
    %c0_7 = arith.constant 0 : index
    %c0_8 = arith.constant 0 : index
    %c0_9 = arith.constant 0 : index
    %c0_10 = arith.constant 0 : index
    %6 = vector.load %arg4[%c0_7, %c0_8, %c0_9, %c0_10] : memref<4x1x32x256xf32, #tpu.memory_space<vmem>>, vector<4x1x32x256xf32>
    %7 = vector.shape_cast %6 : vector<4x1x32x256xf32> to vector<4x32x256xf32>
    %cst_11 = arith.constant dense<0.000000e+00> : vector<4x256x256xf32>
    %8 = tpu.matmul %3, %5, %cst_11 {dimension_numbers = #tpu.dot_dimension_numbers<[1], [1], [2], [2], [0, 0, 0, 2, 1, 2], [0], [0]>} : vector<4x32x256xf32>, vector<4x32x256xf32>, vector<4x256x256xf32> -> vector<4x256x256xf32>
    %cst_12 = arith.constant dense<0xFF800000> : vector<4x256xf32>
    %9 = vector.multi_reduction <maximumf>, %8, %cst_12 [2] : vector<4x256x256xf32> to vector<4x256xf32>
    %10 = vector.shape_cast %9 : vector<4x256xf32> to vector<4x256x1xf32>
    %11 = vector.broadcast %10 : vector<4x256x1xf32> to vector<4x256x256xf32>
    %12 = arith.subf %8, %11 : vector<4x256x256xf32>
    %13 = math.exp %12 : vector<4x256x256xf32>
    %cst_13 = arith.constant dense<0.000000e+00> : vector<4x256xf32>
    %14 = vector.multi_reduction <add>, %13, %cst_13 [2] : vector<4x256x256xf32> to vector<4x256xf32>
    %15 = vector.shape_cast %14 : vector<4x256xf32> to vector<4x256x1xf32>
    %cst_14 = arith.constant dense<0.000000e+00> : vector<4x32x256xf32>
    %16 = tpu.matmul %7, %13, %cst_14 {dimension_numbers = #tpu.dot_dimension_numbers<[2], [2], [1], [1], [0, 0, 0, 1, 1, 1], [0], [0]>} : vector<4x32x256xf32>, vector<4x256x256xf32>, vector<4x32x256xf32> -> vector<4x32x256xf32>
    %17 = tpu.reciprocal %15 {approx = true} : vector<4x256x1xf32> -> vector<4x256x1xf32>
    %18 = tpu.transpose %17, [0, 2, 1] : vector<4x256x1xf32> -> vector<4x1x256xf32>
    %19 = vector.broadcast %18 : vector<4x1x256xf32> to vector<4x32x256xf32>
    %20 = arith.mulf %16, %19 : vector<4x32x256xf32>
    %c0_15 = arith.constant 0 : index
    %c0_16 = arith.constant 0 : index
    %c0_17 = arith.constant 0 : index
    %21 = vector.load %arg5[%c0_15, %c0_16, %c0_17] : memref<4x32x256xf32, #tpu.memory_space<vmem>>, vector<4x32x256xf32>
    tpu.vector_store %arg5[%c0_15, %c0_16, %c0_17], %20 {strides = array<i32>} : memref<4x32x256xf32, #tpu.memory_space<vmem>>, vector<4x32x256xf32>,
    return
  }
  func.func @transform_0(%arg0: i32, %arg1: i32) -> (i32, i32, i32, i32) {
    %c0_i32 = arith.constant 0 : i32
    %c0_i32_0 = arith.constant 0 : i32
    %c0_i32_1 = arith.constant 0 : i32
    return %arg0, %c0_i32, %c0_i32_0, %arg1 : i32, i32, i32, i32
  }
  func.func @transform_1(%arg0: i32, %arg1: i32) -> (i32, i32, i32, i32) {
    %c1_i32 = arith.constant 1 : i32
    %c0_i32 = arith.constant 0 : i32
    %c0_i32_0 = arith.constant 0 : i32
    %c0_i32_1 = arith.constant 0 : i32
    return %arg0, %c1_i32, %c0_i32, %c0_i32_0 : i32, i32, i32, i32
  }
  func.func @transform_2(%arg0: i32, %arg1: i32) -> (i32, i32, i32, i32) {
    %c2_i32 = arith.constant 2 : i32
    %c0_i32 = arith.constant 0 : i32
    %c0_i32_0 = arith.constant 0 : i32
    %c0_i32_1 = arith.constant 0 : i32
    return %arg0, %c2_i32, %c0_i32, %c0_i32_0 : i32, i32, i32, i32
  }
  func.func @transform_3(%arg0: i32, %arg1: i32) -> (i32, i32, i32) {
    %c0_i32 = arith.constant 0 : i32
    %c0_i32_0 = arith.constant 0 : i32
    return %arg0, %c0_i32, %arg1 : i32, i32, i32
  }
}

</mosaic_0001>

<bundles_post_ra>
// kernel: tpu_custom_call.1
= control target key start
LH: loop header
LB: loop body
LE: loop exit
PB: predicated region body
PF: predicated region fallthrough
CT: control target
= control target key end

     0   :  { %8 = vsyncpa [#allocation3], 0  ;;  %s8684_s0 = inlined_call_operand.hbm [shape: f32[4,3,32,256], index: 0, kind: input, shape index: {}]   ;;  %s8685_s1 = inlined_call_operand.hbm [shape: f32[4,3,32,256], index: 1, kind: input, shape index: {}]   ;;  %s8686_s2 = inlined_call_operand.hbm [shape: f32[4,3,32,256], index: 2, kind: input, shape index: {}]   ;;  %s8687_s3 = inlined_call_operand.hbm [shape: f32[4,32,256], index: 3, kind: output, shape index: {}]  }
   0x1   :  { %9 = vsyncpa [#allocation6], 0 }
   0x2   :  { %10 = vsyncpa [#allocation4], 0 }
   0x3   :  { %s19_s12 = sld [smem:[#allocation0]]   ;;  %s27_s15 = sshll.u32 %s8684_s0, 4  ;;  %s28_s15 = int_to_ptr.hbm [resolvable:$true] %s27_s15 }
   0x4   :  { %s5376_s16 = smov [#allocation2]   ;;  %s5377_s18 = smov 3072  }
   0x5   :  { %s29_s17 = sshll.u32 %s5376_s16, 4  ;;  %36 = sst [smem:[#allocation10]] %s5377_s18  ;;  %s30_s17 = int_to_ptr.vmem [resolvable:$true] %s29_s17 }
   0x6   :  { %s5378_s19 = smov 1024   ;;  %s5379_s21 = smov 4  }
   0x7   :  { %38 = sst [smem:[#allocation10 + $0x1]] %s5378_s19  ;;  %s5380_s23 = smov 256  }
   0x8   :  { %40 = sst [smem:[#allocation10 + $0x2]] %s5379_s21  ;;  %s5381_s24 = smov 16  }
   0x9   :  { %s4288_s20 = sshll.u32 %s19_s12, 26  ;;  %42 = sst [smem:[#allocation10 + $0x3]] %s5380_s23 }
   0xa   :  { %s4289_s22 = sadd.s32 134217728, %s4288_s20  ;;  %44 = sst [smem:[#allocation10 + $0x4]] %s5380_s23 }
   0xb   :  { %46 = sst [smem:[#allocation10 + $0x5]] %s5381_s24  ;;  %s5382_s25 = smov [#allocation3]  }
   0xc   :  { %s5383_s26 = smov [#allocation9]  }
   0xd   :  { %48 = dma.general %s28_s15, 4096, %s30_s17, %s5382_s25, %s5383_s26, [#allocation10], %s4289_s22, 0  }
   0xe   :  { %s53_s28 = scalar_lea.hbm %s8685_s1, 64  ;;  %s58_s29 = sld [smem:[#allocation0]]  }
   0xf   :  { %s66_s30 = sshll.u32 %s53_s28, 4  ;;  %s5384_s4 = smov [#allocation5]   ;;  %s67_s30 = int_to_ptr.hbm [resolvable:$true] %s66_s30 }
  0x10   :  { %s68_s5 = sshll.u32 %s5384_s4, 4  ;;  %s5385_s6 = smov 3072   ;;  %s69_s5 = int_to_ptr.vmem [resolvable:$true] %s68_s5 }
  0x11   :  { %75 = sst [smem:[#allocation12]] %s5385_s6  ;;  %s5386_s7 = smov 1024  }
  0x12   :  { %77 = sst [smem:[#allocation12 + $0x1]] %s5386_s7  ;;  %s5387_s9 = smov 4  }
  0x13   :  { %79 = sst [smem:[#allocation12 + $0x2]] %s5387_s9  ;;  %s5388_s11 = smov 256  }
  0x14   :  { %s4290_s8 = sshll.u32 %s58_s29, 26  ;;  %81 = sst [smem:[#allocation12 + $0x3]] %s5388_s11 }
  0x15   :  { %s4291_s10 = sadd.s32 134217728, %s4290_s8  ;;  %83 = sst [smem:[#allocation12 + $0x4]] %s5388_s11 }
  0x16   :  { %s5389_s12 = smov 16   ;;  %s5390_s1 = smov [#allocation6]  }
  0x17   :  { %85 = sst [smem:[#allocation12 + $0x5]] %s5389_s12  ;;  %s5391_s13 = smov [#allocation11]  }
  0x18   :  { %87 = dma.general %s67_s30, 4096, %s69_s5, %s5390_s1, %s5391_s13, [#allocation12], %s4291_s10, 0  }
  0x19   :  { %s92_s16 = scalar_lea.hbm %s8686_s2, 128  ;;  %s97_s17 = sld [smem:[#allocation0]]  }
  0x1a   :  { %s105_s18 = sshll.u32 %s92_s16, 4  ;;  %s5392_s19 = smov [#allocation7]   ;;  %s106_s18 = int_to_ptr.hbm [resolvable:$true] %s105_s18 }
  0x1b   :  { %s107_s20 = sshll.u32 %s5392_s19, 4  ;;  %s5393_s21 = smov 3072   ;;  %s108_s20 = int_to_ptr.vmem [resolvable:$true] %s107_s20 }
  0x1c   :  { %114 = sst [smem:[#allocation14]] %s5393_s21  ;;  %s5394_s22 = smov 1024  }
  0x1d   :  { %116 = sst [smem:[#allocation14 + $0x1]] %s5394_s22  ;;  %s5395_s24 = smov 4  }
  0x1e   :  { %118 = sst [smem:[#allocation14 + $0x2]] %s5395_s24  ;;  %s5396_s26 = smov 256  }
  0x1f   :  { %s4292_s23 = sshll.u32 %s97_s17, 26  ;;  %120 = sst [smem:[#allocation14 + $0x3]] %s5396_s26 }
  0x20   :  { %s4293_s25 = sadd.s32 134217728, %s4292_s23  ;;  %122 = sst [smem:[#allocation14 + $0x4]] %s5396_s26 }
  0x21   :  { %s5397_s0 = smov 16   ;;  %s5398_s2 = smov [#allocation6]  }
  0x22   :  { %124 = sst [smem:[#allocation14 + $0x5]] %s5397_s0  ;;  %s5399_s27 = smov [#allocation13]  }
  0x23   :  { %126 = dma.general %s106_s18, 4096, %s108_s20, %s5398_s2, %s5399_s27, [#allocation14], %s4293_s25, 0  }
  0x24   :  { %5370 = dma.done.wait [#allocation3], 4096  }
  0x25   :  { %5371 = vsyncadd [#allocation3], 4294963200 }
  0x26   :  { %5372 = dma.done.wait [#allocation6], 8192  }
  0x27   :  { %5373 = vsyncadd [#allocation6], 4294959104  ;;  %v147_v0 = vld [vmem:[#allocation2 + $0x40] sm:$0xff]  ;;  %v140_v1 = vld [vmem:[#allocation2 + $0x8] sm:$0xff]  ;;  %vm331_vm0 = vcmask 261120   ;;  %s5400_s28 = smov [#allocation8]  }
  0x28   :  { %v139_v2 = vld [vmem:[#allocation2] sm:$0xff]  ;;  %v179_v3 = vmul.f32 0.17677669, %v147_v0  ;;  %v172_v4 = vmul.f32 0.17677669, %v140_v1  ;;  %v149_v6 = vld [vmem:[#allocation2 + $0x50] sm:$0xff] }
  0x29   :  { %v171_v5 = vmul.f32 0.17677669, %v139_v2  ;;  %v142_v7 = vld [vmem:[#allocation2 + $0x18] sm:$0xff]  ;;  %v141_v8 = vld [vmem:[#allocation2 + $0x10] sm:$0xff]  ;;  %v181_v9 = vmul.f32 0.17677669, %v149_v6 }
  0x2a   :  { %654 = vxpose.xlu2.b32.start [1/4] (short) %v179_v3, 128  ;;  %299 = vxpose.xlu1.b32.start [1/4] (short) %v172_v4, 128  ;;  %v174_v10 = vmul.f32 0.17677669, %v142_v7  ;;  %v173_v11 = vmul.f32 0.17677669, %v141_v8  ;;  %v151_v12 = vld [vmem:[#allocation2 + $0x60] sm:$0xff]  ;;  %v144_v13 = vld [vmem:[#allocation2 + $0x28] sm:$0xff] }
  0x2b   :  { %267 = vxpose.xlu0.b32.start [1/4] (short) %v171_v5, 128  ;;  %v143_v14 = vld [vmem:[#allocation2 + $0x20] sm:$0xff]  ;;  %v183_v15 = vmul.f32 0.17677669, %v151_v12  ;;  %v176_v16 = vmul.f32 0.17677669, %v144_v13  ;;  %v153_v18 = vld [vmem:[#allocation2 + $0x70] sm:$0xff] }
  0x2c   :  { %v175_v17 = vmul.f32 0.17677669, %v143_v14  ;;  %v146_v19 = vld [vmem:[#allocation2 + $0x38] sm:$0xff]  ;;  %v145_v20 = vld [vmem:[#allocation2 + $0x30] sm:$0xff]  ;;  %v185_v21 = vmul.f32 0.17677669, %v153_v18 }
  0x2d   :  { %v178_v22 = vmul.f32 0.17677669, %v146_v19  ;;  %v177_v23 = vmul.f32 0.17677669, %v145_v20  ;;  %v156_v24 = vld [vmem:[#allocation2 + $0x88] sm:$0xff]  ;;  %v155_v25 = vld [vmem:[#allocation2 + $0x80] sm:$0xff] }
  0x2e   :  { %v209_v26 = vld [vmem:[#allocation5 + $0x30] sm:$0xff]  ;;  %v210_v27 = vld [vmem:[#allocation5 + $0x38] sm:$0xff]  ;;  %v207_v28 = vld [vmem:[#allocation5 + $0x20] sm:$0xff]  ;;  %v188_v33 = vmul.f32 0.17677669, %v156_v24  ;;  %s4272_s29 = sshll.u32 %s5400_s28, 4  ;;  %s4273_s29 = int_to_ptr.vmem [resolvable:$true] %s4272_s29 }
  0x2f   :  { %v148_v29 = vld [vmem:[#allocation2 + $0x48] sm:$0xff]  ;;  %440 = vmatpush.msra.mxu0 %v209_v26  ;;  %553 = vmatpush.msra.mxu1 %v210_v27  ;;  %v205_v31 = vld [vmem:[#allocation5 + $0x10] sm:$0xff]  ;;  %v206_v32 = vld [vmem:[#allocation5 + $0x18] sm:$0xff]  ;;  %v187_v34 = vmul.f32 0.17677669, %v155_v25  ;;  %s4274_s5 = sshll.u32 %s8687_s3, 4  ;;  %s4275_s5 = int_to_ptr.hbm [resolvable:$true] %s4274_s5 }
  0x30   :  { %v208_v30 = vld [vmem:[#allocation5 + $0x28] sm:$0xff]  ;;  %v180_v35 = vmul.f32 0.17677669, %v148_v29  ;;  %v203_v36 = vld [vmem:[#allocation5] sm:$0xff]  ;;  %v158_v38 = vld [vmem:[#allocation2 + $0x98] sm:$0xff]  ;;  %s5401_s6 = smov 256  }
  0x31   :  { %441 = vmatpush.msra.mxu0 %v207_v28  ;;  %554 = vmatpush.msra.mxu1 %v208_v30  ;;  %v204_v37 = vld [vmem:[#allocation5 + $0x8] sm:$0xff]  ;;  %v157_v39 = vld [vmem:[#allocation2 + $0x90] sm:$0xff]  ;;  %v150_v40 = vld [vmem:[#allocation2 + $0x58] sm:$0xff]  ;;  %v190_v41 = vmul.f32 0.17677669, %v158_v38  ;;  %s5402_s7 = smov 16  }
  0x32   :  { %655 = vxpose.xlu2.b32.cont [2/4] (short) %v181_v9, 128  ;;  %300 = vxpose.xlu1.b32.cont [2/4] (short) %v174_v10, 128  ;;  %v189_v42 = vmul.f32 0.17677669, %v157_v39  ;;  %v182_v43 = vmul.f32 0.17677669, %v150_v40  ;;  %v225_v44 = vld [vmem:[#allocation5 + $0xb0] sm:$0xff]  ;;  %v226_v45 = vld [vmem:[#allocation5 + $0xb8] sm:$0xff] }
  0x33   :  { %268 = vxpose.xlu0.b32.cont [2/4] (short) %v173_v11, 128  ;;  %442 = vmatpush.msra.mxu0 %v205_v31  ;;  %v160_v46 = vld [vmem:[#allocation2 + $0xa8] sm:$0xff]  ;;  %v159_v47 = vld [vmem:[#allocation2 + $0xa0] sm:$0xff]  ;;  %v162_v52 = vld [vmem:[#allocation2 + $0xb8] sm:$0xff] }
  0x34   :  { %555 = vmatpush.msra.mxu1 %v206_v32  ;;  %v152_v48 = vld [vmem:[#allocation2 + $0x68] sm:$0xff]  ;;  %v192_v49 = vmul.f32 0.17677669, %v160_v46  ;;  %v191_v50 = vmul.f32 0.17677669, %v159_v47  ;;  %v161_v53 = vld [vmem:[#allocation2 + $0xb0] sm:$0xff] }
  0x35   :  { %443 = vmatpush.msra.mxu0 %v203_v36  ;;  %v184_v51 = vmul.f32 0.17677669, %v152_v48  ;;  %v154_v54 = vld [vmem:[#allocation2 + $0x78] sm:$0xff]  ;;  %v194_v55 = vmul.f32 0.17677669, %v162_v52  ;;  %v217_v2 = vld [vmem:[#allocation5 + $0x70] sm:$0xff] }
  0x36   :  { %556 = vmatpush.msra.mxu1 %v204_v37  ;;  %v193_v56 = vmul.f32 0.17677669, %v161_v53  ;;  %v186_v57 = vmul.f32 0.17677669, %v154_v54  ;;  %v218_v3 = vld [vmem:[#allocation5 + $0x78] sm:$0xff]  ;;  %v215_v4 = vld [vmem:[#allocation5 + $0x60] sm:$0xff]  ;;  %826 = vmatpush.msra.mxu2 %v217_v2 }
  0x37   :  { %1212 = vmatpush.msrb.mxu0 %v225_v44  ;;  %939 = vmatpush.msra.mxu3 %v218_v3  ;;  %v216_v7 = vld [vmem:[#allocation5 + $0x68] sm:$0xff]  ;;  %v213_v8 = vld [vmem:[#allocation5 + $0x50] sm:$0xff]  ;;  %v214_v9 = vld [vmem:[#allocation5 + $0x58] sm:$0xff] }
  0x38   :  { %1325 = vmatpush.msrb.mxu1 %v226_v45  ;;  %827 = vmatpush.msra.mxu2 %v215_v4  ;;  %v223_v11 = vld [vmem:[#allocation5 + $0xa0] sm:$0xff]  ;;  %v224_v12 = vld [vmem:[#allocation5 + $0xa8] sm:$0xff]  ;;  %v234_v18 = vld [vmem:[#allocation5 + $0xf8] sm:$0xff] }
  0x39   :  { %940 = vmatpush.msra.mxu3 %v216_v7  ;;  %v211_v13 = vld [vmem:[#allocation5 + $0x40] sm:$0xff]  ;;  %1213 = vmatpush.msrb.mxu0 %v223_v11  ;;  %v232_v52 = vld [vmem:[#allocation5 + $0xe8] sm:$0xff] }
  0x3a   :  { %656 = vxpose.xlu2.b32.cont [3/4] (short) %v183_v15, 128  ;;  %301 = vxpose.xlu1.b32.cont [3/4] (short) %v176_v16, 128  ;;  %v212_v16 = vld [vmem:[#allocation5 + $0x48] sm:$0xff]  ;;  %v163_v38 = vld [vmem:[#allocation2 + $0xc0] sm:$0xff] }
  0x3b   :  { %269 = vxpose.xlu0.b32.cont [3/4] (short) %v175_v17, 128  ;;  %828 = vmatpush.msra.mxu2 %v213_v8  ;;  %v233_v17 = vld [vmem:[#allocation5 + $0xf0] sm:$0xff]  ;;  %v168_v53 = vld [vmem:[#allocation2 + $0xe8] sm:$0xff]  ;;  %v167_v54 = vld [vmem:[#allocation2 + $0xe0] sm:$0xff] }
  0x3c   :  { %941 = vmatpush.msra.mxu3 %v214_v9  ;;  %1326 = vmatpush.msrb.mxu1 %v224_v12 }
  0x3d   :  { %829 = vmatpush.msra.mxu2 %v211_v13 }
  0x3e   :  { %942 = vmatpush.msra.mxu3 %v212_v16 }
  0x3f   :  { %1598 = vmatpush.msrb.mxu2 %v233_v17 }
  0x40   :  { %1711 = vmatpush.msrb.mxu3 %v234_v18 }
  0x42   :  { %657 = vxpose.xlu2.b32.end [4/4] (short) %v185_v21, 128  ;;  %302 = vxpose.xlu1.b32.end [4/4] (short) %v178_v22, 128 }
  0x43   :  { %270 = vxpose.xlu0.b32.end [4/4] (short) %v177_v23, 128  ;;  %1712 = vmatpush.msrb.mxu3 %v232_v52 }
  0xaa   :  { %1072 = vxpose.xlu2.b32.start [1/4] (short) %v188_v33, 128  ;;  %1040 = vxpose.xlu1.b32.start [1/4] (short) %v187_v34, 128 }
  0xab   :  { %686 = vxpose.xlu0.b32.start [1/4] (short) %v180_v35, 128  ;;  %v164_v35 = vld [vmem:[#allocation2 + $0xc8] sm:$0xff] }
  0xac   :  { %v196_v39 = vmul.f32 0.17677669, %v164_v35  ;;  %v220_v35 = vld [vmem:[#allocation5 + $0x88] sm:$0xff] }
  0xb2   :  { %1073 = vxpose.xlu2.b32.cont [2/4] (short) %v190_v41, 128  ;;  %1041 = vxpose.xlu1.b32.cont [2/4] (short) %v189_v42, 128  ;;  %v195_v41 = vmul.f32 0.17677669, %v163_v38  ;;  %v166_v42 = vld [vmem:[#allocation2 + $0xd8] sm:$0xff] }
  0xb3   :  { %687 = vxpose.xlu0.b32.cont [2/4] (short) %v182_v43, 128  ;;  %v165_v43 = vld [vmem:[#allocation2 + $0xd0] sm:$0xff]  ;;  %v198_v46 = vmul.f32 0.17677669, %v166_v42  ;;  %v230_v38 = vld [vmem:[#allocation5 + $0xd8] sm:$0xff] }
  0xb4   :  { %v197_v48 = vmul.f32 0.17677669, %v165_v43  ;;  %1713 = vmatpush.msrb.mxu3 %v230_v38 }
  0xba   :  { %1074 = vxpose.xlu2.b32.cont [3/4] (short) %v192_v49, 128  ;;  %1042 = vxpose.xlu1.b32.cont [3/4] (short) %v191_v50, 128  ;;  %v221_v49 = vld [vmem:[#allocation5 + $0x90] sm:$0xff]  ;;  %v222_v50 = vld [vmem:[#allocation5 + $0x98] sm:$0xff] }
  0xbb   :  { %688 = vxpose.xlu0.b32.cont [3/4] (short) %v184_v51, 128  ;;  %v231_v51 = vld [vmem:[#allocation5 + $0xe0] sm:$0xff]  ;;  %1214 = vmatpush.msrb.mxu0 %v221_v49 }
  0xbc   :  { %1327 = vmatpush.msrb.mxu1 %v222_v50  ;;  %1599 = vmatpush.msrb.mxu2 %v231_v51 }
  0xbe   :  { %1328 = vmatpush.msrb.mxu1 %v220_v35 }
  0xc2   :  { %1075 = vxpose.xlu2.b32.end [4/4] (short) %v194_v55, 128  ;;  %1043 = vxpose.xlu1.b32.end [4/4] (short) %v193_v56, 128 }
  0xc3   :  { %689 = vxpose.xlu0.b32.end [4/4] (short) %v186_v57, 128  ;;  %v670_v0 = vpop.trf.xlu2  ;;  %v200_v57 = vmul.f32 0.17677669, %v168_v53 }
  0xc4   :  { %4358 = vmatmul.msk.f32.vlgmr.msra.gmra.mxu2 %vm331_vm0, %v670_v0  ;;  %4390 = vmatmul.msk.f32.vlgmr.msra.gmra.mxu3 %vm331_vm0, %v670_v0  ;;  %v169_v0 = vld [vmem:[#allocation2 + $0xf0] sm:$0xff] }
  0xcb   :  { %v671_v6 = vpop.trf.xlu2 }
  0xcc   :  { %4359 = vmatmul.msk.f32.gmra.mxu2 %vm331_vm0, %v671_v6  ;;  %4391 = vmatmul.msk.f32.gmra.mxu3 %vm331_vm0, %v671_v6  ;;  %v201_v6 = vmul.f32 0.17677669, %v169_v0 }
  0xce   :  { %v5434_v59 = vpop.trf.xlu1 }
  0xcf   :  { %v283_v58 = vpop.trf.xlu0 }
  0xd0   :  { %4294 = vmatmul.msk.f32.vlgmr.msra.gmra.mxu0 %vm331_vm0, %v283_v58  ;;  %4326 = vmatmul.msk.f32.vlgmr.msra.gmra.mxu1 %vm331_vm0, %v283_v58 }
  0xd3   :  { %v672_v15 = vpop.trf.xlu2 }
  0xd4   :  { %4360 = vmatmul.msk.f32.gmra.mxu2 %vm331_vm0, %v672_v15  ;;  %4392 = vmatmul.msk.f32.gmra.mxu3 %vm331_vm0, %v672_v15 }
  0xd6   :  { %v5438_v61 = vpop.trf.xlu1 }
  0xd7   :  { %v284_v60 = vpop.trf.xlu0 }
  0xd8   :  { %4295 = vmatmul.msk.f32.gmra.mxu0 %vm331_vm0, %v284_v60  ;;  %4327 = vmatmul.msk.f32.gmra.mxu1 %vm331_vm0, %v284_v60  ;;  %v199_v60 = vmul.f32 0.17677669, %v167_v54 }
  0xdb   :  { %v673_v21 = vpop.trf.xlu2 }
  0xdc   :  { %4361 = vmatmul.msk.f32.gmra.mxu2 %vm331_vm0, %v673_v21  ;;  %4393 = vmatmul.msk.f32.gmra.mxu3 %vm331_vm0, %v673_v21 }
  0xde   :  { %v5442_v63 = vpop.trf.xlu1 }
  0xdf   :  { %v285_v62 = vpop.trf.xlu0 }
  0xe0   :  { %4296 = vmatmul.msk.f32.gmra.mxu0 %vm331_vm0, %v285_v62  ;;  %4328 = vmatmul.msk.f32.gmra.mxu1 %vm331_vm0, %v285_v62  ;;  %v170_v62 = vld [vmem:[#allocation2 + $0xf8] sm:$0xff] }
  0xe1   :  { %v202_v3 = vmul.f32 0.17677669, %v170_v62 }
  0xe3   :  { %v674_v24 = vpop.trf.xlu2 }
  0xe4   :  { %4362 = vmatmul.msk.f32.gmra.mxu2 %vm331_vm0, %v674_v24  ;;  %4394 = vmatmul.msk.f32.gmra.mxu3 %vm331_vm0, %v674_v24 }
  0xe6   :  { %v5446_v5 = vpop.trf.xlu1 }
  0xe7   :  { %v286_v1 = vpop.trf.xlu0 }
  0xe8   :  { %4297 = vmatmul.msk.f32.gmra.mxu0 %vm331_vm0, %v286_v1  ;;  %4329 = vmatmul.msk.f32.gmra.mxu1 %vm331_vm0, %v286_v1 }
  0xeb   :  { %v675_v27 = vpop.trf.xlu2 }
  0xec   :  { %4363 = vmatmul.msk.f32.gmra.mxu2 %vm331_vm0, %v675_v27  ;;  %4395 = vmatmul.msk.f32.gmra.mxu3 %vm331_vm0, %v675_v27 }
  0xee   :  { %v5450_v14 = vpop.trf.xlu1 }
  0xef   :  { %v287_v10 = vpop.trf.xlu0 }
  0xf0   :  { %4298 = vmatmul.msk.f32.gmra.mxu0 %vm331_vm0, %v287_v10  ;;  %4330 = vmatmul.msk.f32.gmra.mxu1 %vm331_vm0, %v287_v10 }
  0xf3   :  { %v676_v30 = vpop.trf.xlu2 }
  0xf4   :  { %4364 = vmatmul.msk.f32.gmra.mxu2 %vm331_vm0, %v676_v30  ;;  %4396 = vmatmul.msk.f32.gmra.mxu3 %vm331_vm0, %v676_v30 }
  0xf6   :  { %v5456_v20 = vpop.trf.xlu1 }
  0xf7   :  { %v288_v19 = vpop.trf.xlu0 }
  0xf8   :  { %4299 = vmatmul.msk.f32.gmra.mxu0 %vm331_vm0, %v288_v19  ;;  %4331 = vmatmul.msk.f32.gmra.mxu1 %vm331_vm0, %v288_v19 }
  0xfb   :  { %v677_v33 = vpop.trf.xlu2 }
  0xfc   :  { %4365 = vmatmul.msk.f32.gmra.mxu2 %vm331_vm0, %v677_v33  ;;  %4397 = vmatmul.msk.f32.gmra.mxu3 %vm331_vm0, %v677_v33 }
  0xfe   :  { %v5462_v23 = vpop.trf.xlu1 }
  0xff   :  { %v289_v22 = vpop.trf.xlu0 }
 0x100   :  { %4300 = vmatmul.msk.f32.gmra.mxu0 %vm331_vm0, %v289_v22  ;;  %4332 = vmatmul.msk.f32.gmra.mxu1 %vm331_vm0, %v289_v22 }
 0x103   :  { %v678_v37 = vpop.trf.xlu2 }
 0x104   :  { %4366 = vmatmul.msk.f32.gmra.mxu2 %vm331_vm0, %v678_v37  ;;  %4398 = vmatmul.msk.f32.gmra.mxu3 %vm331_vm0, %v678_v37  ;;  %v229_v37 = vld [vmem:[#allocation5 + $0xd0] sm:$0xff] }
 0x105   :  { %1600 = vmatpush.msrb.mxu2 %v229_v37 }
 0x106   :  { %v5470_v26 = vpop.trf.xlu1 }
 0x107   :  { %v290_v25 = vpop.trf.xlu0 }
 0x108   :  { %4301 = vmatmul.msk.f32.gmra.mxu0 %vm331_vm0, %v290_v25  ;;  %4333 = vmatmul.msk.f32.gmra.mxu1 %vm331_vm0, %v290_v25 }
 0x10b   :  { %v679_v45 = vpop.trf.xlu2 }
 0x10c   :  { %4367 = vmatmul.msk.f32.gmra.mxu2 %vm331_vm0, %v679_v45  ;;  %4399 = vmatmul.msk.f32.gmra.mxu3 %vm331_vm0, %v679_v45 }
 0x10e   :  { %v5476_v29 = vpop.trf.xlu1 }
 0x10f   :  { %v291_v28 = vpop.trf.xlu0 }
 0x110   :  { %4302 = vmatmul.msk.f32.gmra.mxu0 %vm331_vm0, %v291_v28  ;;  %4334 = vmatmul.msk.f32.gmra.mxu1 %vm331_vm0, %v291_v28 }
 0x113   :  { %v680_v56 = vpop.trf.xlu2 }
 0x114   :  { %4368 = vmatmul.msk.f32.gmra.mxu2 %vm331_vm0, %v680_v56  ;;  %4400 = vmatmul.msk.f32.gmra.mxu3 %vm331_vm0, %v680_v56 }
 0x116   :  { %v5482_v32 = vpop.trf.xlu1 }
 0x117   :  { %v292_v31 = vpop.trf.xlu0 }
 0x118   :  { %4303 = vmatmul.msk.f32.gmra.mxu0 %vm331_vm0, %v292_v31  ;;  %4335 = vmatmul.msk.f32.gmra.mxu1 %vm331_vm0, %v292_v31 }
 0x11b   :  { %v681_v2 = vpop.trf.xlu2 }
 0x11c   :  { %4369 = vmatmul.msk.f32.gmra.mxu2 %vm331_vm0, %v681_v2  ;;  %4401 = vmatmul.msk.f32.gmra.mxu3 %vm331_vm0, %v681_v2 }
 0x11e   :  { %v5488_v36 = vpop.trf.xlu1 }
 0x11f   :  { %v293_v34 = vpop.trf.xlu0 }
 0x120   :  { %4304 = vmatmul.msk.f32.gmra.mxu0 %vm331_vm0, %v293_v34  ;;  %4336 = vmatmul.msk.f32.gmra.mxu1 %vm331_vm0, %v293_v34 }
 0x123   :  { %v682_v8 = vpop.trf.xlu2 }
 0x124   :  { %4370 = vmatmul.msk.f32.gmra.mxu2 %vm331_vm0, %v682_v8  ;;  %4402 = vmatmul.msk.f32.gmra.mxu3 %vm331_vm0, %v682_v8 }
 0x126   :  { %v5494_v44 = vpop.trf.xlu1 }
 0x127   :  { %v294_v40 = vpop.trf.xlu0 }
 0x128   :  { %4305 = vmatmul.msk.f32.gmra.mxu0 %vm331_vm0, %v294_v40  ;;  %4337 = vmatmul.msk.f32.gmra.mxu1 %vm331_vm0, %v294_v40 }
 0x12a   :  { %1458 = vxpose.xlu1.b32.start [1/4] (short) %v196_v39, 128 }
 0x12b   :  { %1426 = vxpose.xlu0.b32.start [1/4] (short) %v195_v41, 128  ;;  %v683_v13 = vpop.trf.xlu2 }
 0x12c   :  { %4371 = vmatmul.msk.f32.gmra.mxu2 %vm331_vm0, %v683_v13  ;;  %4403 = vmatmul.msk.f32.gmra.mxu3 %vm331_vm0, %v683_v13 }
 0x12e   :  { %v5500_v55 = vpop.trf.xlu1 }
 0x12f   :  { %v295_v47 = vpop.trf.xlu0 }
 0x130   :  { %4306 = vmatmul.msk.f32.gmra.mxu0 %vm331_vm0, %v295_v47  ;;  %4338 = vmatmul.msk.f32.gmra.mxu1 %vm331_vm0, %v295_v47 }
 0x132   :  { %1459 = vxpose.xlu1.b32.cont [2/4] (short) %v198_v46, 128 }
 0x133   :  { %1427 = vxpose.xlu0.b32.cont [2/4] (short) %v197_v48, 128  ;;  %v684_v18 = vpop.trf.xlu2 }
 0x134   :  { %4372 = vmatmul.msk.f32.gmra.mxu2 %vm331_vm0, %v684_v18  ;;  %4404 = vmatmul.msk.f32.gmra.mxu3 %vm331_vm0, %v684_v18 }
 0x136   :  { %v5506_v1 = vpop.trf.xlu1 }
 0x137   :  { %v296_v58 = vpop.trf.xlu0 }
 0x138   :  { %4307 = vmatmul.msk.f32.gmra.mxu0 %vm331_vm0, %v296_v58  ;;  %4339 = vmatmul.msk.f32.gmra.mxu1 %vm331_vm0, %v296_v58 }
 0x13a   :  { %1460 = vxpose.xlu1.b32.cont [3/4] (short) %v200_v57, 128 }
 0x13b   :  { %1428 = vxpose.xlu0.b32.cont [3/4] (short) %v199_v60, 128  ;;  %v685_v22 = vpop.trf.xlu2 }
 0x13c   :  { %4373 = vmatmul.msk.f32.gmra.mxu2 %vm331_vm0, %v685_v22  ;;  %4405 = vmatmul.msk.f32.gmra.mxu3 %vm331_vm0, %v685_v22 }
 0x13e   :  { %v5512_v7 = vpop.trf.xlu1 }
 0x13f   :  { %v297_v4 = vpop.trf.xlu0 }
 0x140   :  { %4308 = vmatmul.msk.f32.gmra.mxu0 %vm331_vm0, %v297_v4  ;;  %4340 = vmatmul.msk.f32.gmra.mxu1 %vm331_vm0, %v297_v4 }
 0x142   :  { %1461 = vxpose.xlu1.b32.end [4/4] (short) %v202_v3, 128 }
 0x143   :  { %1429 = vxpose.xlu0.b32.end [4/4] (short) %v201_v6, 128  ;;  %v5560_v27 = vpop.trf.xlu2 }
 0x146   :  { %v5522_v12 = vpop.trf.xlu1 }
 0x147   :  { %v298_v9 = vpop.trf.xlu0  ;;  %v5586_v41 = vpop.f32.mrf.mxu2 }
 0x148   :  { %4309 = vmatmul.msk.f32.gmra.mxu0 %vm331_vm0, %v298_v9  ;;  %4341 = vmatmul.msk.f32.gmra.mxu1 %vm331_vm0, %v298_v9  ;;  %9028 = vst [vmem:[#allocation28_spill] sm:$0xff] %v5586_v41  ;;  %v5588_v42 = vpop.f32.mrf.mxu3 }
 0x149   :  { %9029 = vst [vmem:[#allocation29_spill] sm:$0xff] %v5588_v42 }
 0x14b   :  { %v5574_v33 = vpop.trf.xlu2 }
 0x14c   :  { %9025 = vst [vmem:[#allocation25_spill] sm:$0xff] %v5574_v33 }
 0x14d   :  { %v5518_v10 = vpop.f32.mrf.mxu0  ;;  %v5520_v11 = vpop.f32.mrf.mxu1 }
 0x14e   :  { %9018 = vst [vmem:[#allocation18_spill] sm:$0xff] %v5518_v10  ;;  %v5534_v17 = vpop.trf.xlu1  ;;  %v1812_v4 = vmax.f32 %v5518_v10, %v5520_v11 }
 0x14f   :  { %9019 = vst [vmem:[#allocation19_spill] sm:$0xff] %v5520_v11  ;;  %v702_v28 = vpop.trf.xlu0  ;;  %v5604_v48 = vpop.f32.mrf.mxu2 }
 0x150   :  { %4310 = vmatmul.msk.f32.gmra.mxu0 %vm331_vm0, %v5434_v59  ;;  %4342 = vmatmul.msk.f32.gmra.mxu1 %vm331_vm0, %v5434_v59  ;;  %9033 = vst [vmem:[#allocation33_spill] sm:$0xff] %v5604_v48  ;;  %v5606_v49 = vpop.f32.mrf.mxu3 }
 0x151   :  { %4374 = vmatmul.msk.f32.gmra.mxu2 %vm331_vm0, %v702_v28  ;;  %4406 = vmatmul.msk.f32.gmra.mxu3 %vm331_vm0, %v702_v28  ;;  %9034 = vst [vmem:[#allocation34_spill] sm:$0xff] %v5606_v49 }
 0x153   :  { %v5596_v43 = vpop.trf.xlu2 }
 0x154   :  { %9030 = vst [vmem:[#allocation30_spill] sm:$0xff] %v5596_v43 }
 0x155   :  { %v5530_v15 = vpop.f32.mrf.mxu0  ;;  %v5532_v16 = vpop.f32.mrf.mxu1 }
 0x156   :  { %v5546_v21 = vpop.trf.xlu1 }
 0x157   :  { %v703_v34 = vpop.trf.xlu0  ;;  %v5622_v54 = vpop.f32.mrf.mxu2 }
 0x158   :  { %4311 = vmatmul.msk.f32.gmra.mxu0 %vm331_vm0, %v5438_v61  ;;  %4343 = vmatmul.msk.f32.gmra.mxu1 %vm331_vm0, %v5438_v61  ;;  %9038 = vst [vmem:[#allocation38_spill] sm:$0xff] %v5622_v54  ;;  %v5624_v56 = vpop.f32.mrf.mxu3 }
 0x159   :  { %4375 = vmatmul.msk.f32.gmra.mxu2 %vm331_vm0, %v703_v34  ;;  %4407 = vmatmul.msk.f32.gmra.mxu3 %vm331_vm0, %v703_v34  ;;  %9039 = vst [vmem:[#allocation39_spill] sm:$0xff] %v5624_v56 }
 0x15b   :  { %v5614_v51 = vpop.trf.xlu2 }
 0x15c   :  { %9035 = vst [vmem:[#allocation35_spill] sm:$0xff] %v5614_v51 }
 0x15d   :  { %v5542_v59 = vpop.f32.mrf.mxu0  ;;  %v5544_v19 = vpop.f32.mrf.mxu1 }
 0x15e   :  { %9020 = vst [vmem:[#allocation20_spill] sm:$0xff] %v5544_v19  ;;  %v5558_v25 = vpop.trf.xlu1 }
 0x15f   :  { %v704_v45 = vpop.trf.xlu0  ;;  %v5640_v0 = vpop.f32.mrf.mxu2 }
 0x160   :  { %4312 = vmatmul.msk.f32.gmra.mxu0 %vm331_vm0, %v5442_v63  ;;  %4344 = vmatmul.msk.f32.gmra.mxu1 %vm331_vm0, %v5442_v63  ;;  %9043 = vst [vmem:[#allocation43_spill] sm:$0xff] %v5640_v0  ;;  %v5642_v2 = vpop.f32.mrf.mxu3 }
 0x161   :  { %4376 = vmatmul.msk.f32.gmra.mxu2 %vm331_vm0, %v704_v45  ;;  %4408 = vmatmul.msk.f32.gmra.mxu3 %vm331_vm0, %v704_v45  ;;  %9044 = vst [vmem:[#allocation44_spill] sm:$0xff] %v5642_v2 }
 0x163   :  { %v5633_v58 = vpop.trf.xlu2 }
 0x164   :  { %9040 = vst [vmem:[#allocation40_spill] sm:$0xff] %v5633_v58 }
 0x165   :  { %v5554_v61 = vpop.f32.mrf.mxu0  ;;  %v5556_v24 = vpop.f32.mrf.mxu1 }
 0x166   :  { %9021 = vst [vmem:[#allocation21_spill] sm:$0xff] %v5554_v61  ;;  %v5572_v31 = vpop.trf.xlu1  ;;  %v1821_v28 = vmax.f32 %v5554_v61, %v5556_v24 }
 0x167   :  { %9022 = vst [vmem:[#allocation22_spill] sm:$0xff] %v5556_v24  ;;  %v5658_v9 = vpop.f32.mrf.mxu2 }
 0x168   :  { %4313 = vmatmul.msk.f32.gmra.mxu0 %vm331_vm0, %v5446_v5  ;;  %4345 = vmatmul.msk.f32.gmra.mxu1 %vm331_vm0, %v5446_v5  ;;  %v219_v5 = vld [vmem:[#allocation5 + $0x80] sm:$0xff]  ;;  %9047 = vst [vmem:[#allocation47_spill] sm:$0xff] %v5658_v9  ;;  %v5660_v13 = vpop.f32.mrf.mxu3 }
 0x169   :  { %1215 = vmatpush.msrb.mxu0 %v219_v5  ;;  %9048 = vst [vmem:[#allocation48_spill] sm:$0xff] %v5660_v13 }
 0x16d   :  { %v5568_v63 = vpop.f32.mrf.mxu0  ;;  %v5570_v30 = vpop.f32.mrf.mxu1 }
 0x16e   :  { %9023 = vst [vmem:[#allocation23_spill] sm:$0xff] %v5568_v63  ;;  %v1824_v45 = vmax.f32 %v5568_v63, %v5570_v30 }
 0x16f   :  { %9024 = vst [vmem:[#allocation24_spill] sm:$0xff] %v5570_v30  ;;  %v5678_v35 = vpop.f32.mrf.mxu2 }
 0x170   :  { %4314 = vmatmul.msk.f32.gmra.mxu0 %vm331_vm0, %v5450_v14  ;;  %4346 = vmatmul.msk.f32.gmra.mxu1 %vm331_vm0, %v5450_v14  ;;  %v5590_v14 = vpop.trf.xlu1  ;;  %9050 = vst [vmem:[#allocation50_spill] sm:$0xff] %v5678_v35  ;;  %v5680_v37 = vpop.f32.mrf.mxu3 }
 0x171   :  { %9051 = vst [vmem:[#allocation51_spill] sm:$0xff] %v5680_v37 }
 0x175   :  { %v5582_v39 = vpop.f32.mrf.mxu0  ;;  %v5584_v40 = vpop.f32.mrf.mxu1 }
 0x176   :  { %9026 = vst [vmem:[#allocation26_spill] sm:$0xff] %v5582_v39 }
 0x177   :  { %9027 = vst [vmem:[#allocation27_spill] sm:$0xff] %v5584_v40 }
 0x178   :  { %4315 = vmatmul.msk.f32.gmra.mxu0 %vm331_vm0, %v5456_v20  ;;  %4347 = vmatmul.msk.f32.gmra.mxu1 %vm331_vm0, %v5456_v20  ;;  %v5608_v50 = vpop.trf.xlu1  ;;  %v705_v20 = vpop.trf.xlu0 }
 0x179   :  { %4377 = vmatmul.msk.f32.gmra.mxu2 %vm331_vm0, %v705_v20  ;;  %4409 = vmatmul.msk.f32.gmra.mxu3 %vm331_vm0, %v705_v20 }
 0x17d   :  { %v5600_v46 = vpop.f32.mrf.mxu0  ;;  %v5602_v47 = vpop.f32.mrf.mxu1 }
 0x17e   :  { %9031 = vst [vmem:[#allocation31_spill] sm:$0xff] %v5600_v46 }
 0x17f   :  { %9032 = vst [vmem:[#allocation32_spill] sm:$0xff] %v5602_v47 }
 0x180   :  { %4316 = vmatmul.msk.f32.gmra.mxu0 %vm331_vm0, %v5462_v23  ;;  %4348 = vmatmul.msk.f32.gmra.mxu1 %vm331_vm0, %v5462_v23  ;;  %v5626_v57 = vpop.trf.xlu1  ;;  %v706_v23 = vpop.trf.xlu0 }
 0x181   :  { %4378 = vmatmul.msk.f32.gmra.mxu2 %vm331_vm0, %v706_v23  ;;  %4410 = vmatmul.msk.f32.gmra.mxu3 %vm331_vm0, %v706_v23 }
 0x185   :  { %v5618_v52 = vpop.f32.mrf.mxu0  ;;  %v5620_v53 = vpop.f32.mrf.mxu1 }
 0x186   :  { %9036 = vst [vmem:[#allocation36_spill] sm:$0xff] %v5618_v52 }
 0x187   :  { %9037 = vst [vmem:[#allocation37_spill] sm:$0xff] %v5620_v53 }
 0x188   :  { %4317 = vmatmul.msk.f32.gmra.mxu0 %vm331_vm0, %v5470_v26  ;;  %4349 = vmatmul.msk.f32.gmra.mxu1 %vm331_vm0, %v5470_v26  ;;  %v5644_v3 = vpop.trf.xlu1  ;;  %v707_v26 = vpop.trf.xlu0 }
 0x189   :  { %4379 = vmatmul.msk.f32.gmra.mxu2 %vm331_vm0, %v707_v26  ;;  %4411 = vmatmul.msk.f32.gmra.mxu3 %vm331_vm0, %v707_v26 }
 0x18d   :  { %v5636_v60 = vpop.f32.mrf.mxu0  ;;  %v5638_v62 = vpop.f32.mrf.mxu1 }
 0x18e   :  { %9041 = vst [vmem:[#allocation41_spill] sm:$0xff] %v5636_v60 }
 0x18f   :  { %9042 = vst [vmem:[#allocation42_spill] sm:$0xff] %v5638_v62 }
 0x190   :  { %4318 = vmatmul.msk.f32.gmra.mxu0 %vm331_vm0, %v5476_v29  ;;  %4350 = vmatmul.msk.f32.gmra.mxu1 %vm331_vm0, %v5476_v29  ;;  %v5662_v18 = vpop.trf.xlu1  ;;  %v5668_v29 = vpop.trf.xlu2 }
 0x191   :  { %9049 = vst [vmem:[#allocation49_spill] sm:$0xff] %v5668_v29  ;;  %v708_v22 = vpop.trf.xlu0 }
 0x192   :  { %4380 = vmatmul.msk.f32.gmra.mxu2 %vm331_vm0, %v708_v22  ;;  %4412 = vmatmul.msk.f32.gmra.mxu3 %vm331_vm0, %v708_v22  ;;  %v1827_v22 = vmax.f32 %v5582_v39, %v5584_v40  ;;  %v227_v40 = vld [vmem:[#allocation5 + $0xc0] sm:$0xff]  ;;  %v228_v39 = vld [vmem:[#allocation5 + $0xc8] sm:$0xff] }
 0x193   :  { %1813 = vmax.xlane.f32.xlu2 %v1812_v4  ;;  %v5698_v4 = vpop.f32.mrf.mxu2  ;;  %1601 = vmatpush.msrb.mxu2 %v227_v40  ;;  %v1833_v40 = vmax.f32 %v5618_v52, %v5620_v53 }
 0x194   :  { %9053 = vst [vmem:[#allocation53_spill] sm:$0xff] %v5698_v4  ;;  %1714 = vmatpush.msrb.mxu3 %v228_v39 }
 0x195   :  { %v5654_v6 = vpop.f32.mrf.mxu0  ;;  %v5656_v8 = vpop.f32.mrf.mxu1 }
 0x196   :  { %9045 = vst [vmem:[#allocation45_spill] sm:$0xff] %v5654_v6 }
 0x197   :  { %9046 = vst [vmem:[#allocation46_spill] sm:$0xff] %v5656_v8 }
 0x198   :  { %4319 = vmatmul.msk.f32.gmra.mxu0 %vm331_vm0, %v5482_v32  ;;  %4351 = vmatmul.msk.f32.gmra.mxu1 %vm331_vm0, %v5482_v32  ;;  %v5682_v32 = vpop.trf.xlu1  ;;  %v5690_v20 = vpop.trf.xlu2 }
 0x199   :  { %v709_v38 = vpop.trf.xlu0  ;;  %9052 = vst [vmem:[#allocation52_spill] sm:$0xff] %v5690_v20 }
 0x19a   :  { %4381 = vmatmul.msk.f32.gmra.mxu2 %vm331_vm0, %v709_v38  ;;  %4413 = vmatmul.msk.f32.gmra.mxu3 %vm331_vm0, %v709_v38  ;;  %v1830_v38 = vmax.f32 %v5600_v46, %v5602_v47 }
 0x19b   :  { %1822 = vmax.xlane.f32.xlu2 %v1821_v28  ;;  %v5700_v28 = vpop.f32.mrf.mxu3  ;;  %v5718_v61 = vpop.f32.mrf.mxu2 }
 0x19c   :  { %9054 = vst [vmem:[#allocation54_spill] sm:$0xff] %v5700_v28 }
 0x19d   :  { %v5674_v34 = vpop.f32.mrf.mxu0  ;;  %v5676_v5 = vpop.f32.mrf.mxu1  ;;  %9056 = vst [vmem:[#allocation56_spill] sm:$0xff] %v5718_v61 }
 0x1a0   :  { %4320 = vmatmul.msk.f32.gmra.mxu0 %vm331_vm0, %v5488_v36  ;;  %4352 = vmatmul.msk.f32.gmra.mxu1 %vm331_vm0, %v5488_v36  ;;  %v5702_v36 = vpop.trf.xlu1  ;;  %v5711_v11 = vpop.trf.xlu2 }
 0x1a1   :  { %9055 = vst [vmem:[#allocation55_spill] sm:$0xff] %v5711_v11 }
 0x1a3   :  { %1825 = vmax.xlane.f32.xlu2 %v1824_v45  ;;  %v710_v45 = vpop.trf.xlu0  ;;  %v5720_v30 = vpop.f32.mrf.mxu3 }
 0x1a4   :  { %9057 = vst [vmem:[#allocation57_spill] sm:$0xff] %v5720_v30  ;;  %4382 = vmatmul.msk.f32.gmra.mxu2 %vm331_vm0, %v710_v45  ;;  %4414 = vmatmul.msk.f32.gmra.mxu3 %vm331_vm0, %v710_v45 }
 0x1a5   :  { %v5694_v23 = vpop.f32.mrf.mxu0  ;;  %v5696_v26 = vpop.f32.mrf.mxu1 }
 0x1a8   :  { %4321 = vmatmul.msk.f32.gmra.mxu0 %vm331_vm0, %v5494_v44  ;;  %4353 = vmatmul.msk.f32.gmra.mxu1 %vm331_vm0, %v5494_v44  ;;  %v5722_v44 = vpop.trf.xlu1  ;;  %v5736_v20 = vpop.trf.xlu2 }
 0x1a9   :  { %9059 = vst [vmem:[#allocation59_spill] sm:$0xff] %v5736_v20 }
 0x1ab   :  { %1828 = vmax.xlane.f32.xlu2 %v1827_v22  ;;  %v711_v22 = vpop.trf.xlu0  ;;  %v5740_v29 = vpop.f32.mrf.mxu3 }
 0x1ac   :  { %9061 = vst [vmem:[#allocation61_spill] sm:$0xff] %v5740_v29  ;;  %4383 = vmatmul.msk.f32.gmra.mxu2 %vm331_vm0, %v711_v22  ;;  %4415 = vmatmul.msk.f32.gmra.mxu3 %vm331_vm0, %v711_v22  ;;  %v1836_v22 = vmax.f32 %v5636_v60, %v5638_v62 }
 0x1ad   :  { %v5714_v10 = vpop.f32.mrf.mxu0  ;;  %v5716_v24 = vpop.f32.mrf.mxu1 }
 0x1b0   :  { %4322 = vmatmul.msk.f32.gmra.mxu0 %vm331_vm0, %v5500_v55  ;;  %4354 = vmatmul.msk.f32.gmra.mxu1 %vm331_vm0, %v5500_v55  ;;  %v5738_v55 = vpop.f32.mrf.mxu2  ;;  %v5742_v58 = vpop.trf.xlu1 }
 0x1b1   :  { %9060 = vst [vmem:[#allocation60_spill] sm:$0xff] %v5738_v55 }
 0x1b3   :  { %1831 = vmax.xlane.f32.xlu2 %v1830_v38  ;;  %v712_v39 = vpop.trf.xlu0  ;;  %v5758_v47 = vpop.f32.mrf.mxu3 }
 0x1b4   :  { %9064 = vst [vmem:[#allocation64_spill] sm:$0xff] %v5758_v47  ;;  %4384 = vmatmul.msk.f32.gmra.mxu2 %vm331_vm0, %v712_v39  ;;  %4416 = vmatmul.msk.f32.gmra.mxu3 %vm331_vm0, %v712_v39  ;;  %v1839_v39 = vmax.f32 %v5654_v6, %v5656_v8 }
 0x1b5   :  { %v5732_v63 = vpop.f32.mrf.mxu0  ;;  %v5734_v11 = vpop.f32.mrf.mxu1 }
 0x1b6   :  { %9058 = vst [vmem:[#allocation58_spill] sm:$0xff] %v5734_v11 }
 0x1b8   :  { %4323 = vmatmul.msk.f32.gmra.mxu0 %vm331_vm0, %v5506_v1  ;;  %4355 = vmatmul.msk.f32.gmra.mxu1 %vm331_vm0, %v5506_v1  ;;  %v5756_v20 = vpop.f32.mrf.mxu2  ;;  %v5760_v46 = vpop.trf.xlu1 }
 0x1b9   :  { %9063 = vst [vmem:[#allocation63_spill] sm:$0xff] %v5756_v20  ;;  %v5766_v1 = vpop.trf.xlu2 }
 0x1ba   :  { %9065 = vst [vmem:[#allocation65_spill] sm:$0xff] %v5766_v1 }
 0x1bb   :  { %1834 = vmax.xlane.f32.xlu2 %v1833_v40  ;;  %v713_v40 = vpop.trf.xlu0  ;;  %v5778_v43 = vpop.f32.mrf.mxu3 }
 0x1bc   :  { %9068 = vst [vmem:[#allocation68_spill] sm:$0xff] %v5778_v43  ;;  %4385 = vmatmul.msk.f32.gmra.mxu2 %vm331_vm0, %v713_v40  ;;  %4417 = vmatmul.msk.f32.gmra.mxu3 %vm331_vm0, %v713_v40  ;;  %v1842_v40 = vmax.f32 %v5674_v34, %v5676_v5 }
 0x1bd   :  { %v5752_v45 = vpop.f32.mrf.mxu0  ;;  %v5754_v38 = vpop.f32.mrf.mxu1 }
 0x1be   :  { %9062 = vst [vmem:[#allocation62_spill] sm:$0xff] %v5754_v38 }
 0x1c0   :  { %4324 = vmatmul.msk.f32.gmra.mxu0 %vm331_vm0, %v5512_v7  ;;  %4356 = vmatmul.msk.f32.gmra.mxu1 %vm331_vm0, %v5512_v7  ;;  %v5776_v51 = vpop.f32.mrf.mxu2  ;;  %v5780_v7 = vpop.trf.xlu1 }
 0x1c1   :  { %9067 = vst [vmem:[#allocation67_spill] sm:$0xff] %v5776_v51  ;;  %v5788_v1 = vpop.trf.xlu2 }
 0x1c2   :  { %9069 = vst [vmem:[#allocation69_spill] sm:$0xff] %v5788_v1 }
 0x1c3   :  { %1837 = vmax.xlane.f32.xlu2 %v1836_v22  ;;  %v714_v22 = vpop.trf.xlu0  ;;  %v5798_v29 = vpop.f32.mrf.mxu3 }
 0x1c4   :  { %9073 = vst [vmem:[#allocation73_spill] sm:$0xff] %v5798_v29  ;;  %4386 = vmatmul.msk.f32.gmra.mxu2 %vm331_vm0, %v714_v22  ;;  %4418 = vmatmul.msk.f32.gmra.mxu3 %vm331_vm0, %v714_v22  ;;  %v1845_v22 = vmax.f32 %v5694_v23, %v5696_v26 }
 0x1c5   :  { %v5772_v53 = vpop.f32.mrf.mxu0  ;;  %v5774_v52 = vpop.f32.mrf.mxu1 }
 0x1c6   :  { %9066 = vst [vmem:[#allocation66_spill] sm:$0xff] %v5774_v52 }
 0x1c8   :  { %4325 = vmatmul.msk.f32.gmra.mxu0 %vm331_vm0, %v5522_v12  ;;  %4357 = vmatmul.msk.f32.gmra.mxu1 %vm331_vm0, %v5522_v12  ;;  %v5796_v55 = vpop.f32.mrf.mxu2  ;;  %v5800_v12 = vpop.trf.xlu1 }
 0x1c9   :  { %9072 = vst [vmem:[#allocation72_spill] sm:$0xff] %v5796_v55  ;;  %v5809_v1 = vpop.trf.xlu2 }
 0x1ca   :  { %9074 = vst [vmem:[#allocation74_spill] sm:$0xff] %v5809_v1 }
 0x1cb   :  { %1840 = vmax.xlane.f32.xlu2 %v1839_v39  ;;  %v715_v39 = vpop.trf.xlu0  ;;  %v5818_v29 = vpop.f32.mrf.mxu3 }
 0x1cc   :  { %9078 = vst [vmem:[#allocation78_spill] sm:$0xff] %v5818_v29  ;;  %4387 = vmatmul.msk.f32.gmra.mxu2 %vm331_vm0, %v715_v39  ;;  %4419 = vmatmul.msk.f32.gmra.mxu3 %vm331_vm0, %v715_v39  ;;  %v1848_v39 = vmax.f32 %v5714_v10, %v5716_v24 }
 0x1cd   :  { %v5792_v62 = vpop.f32.mrf.mxu0  ;;  %v5794_v60 = vpop.f32.mrf.mxu1 }
 0x1ce   :  { %9070 = vst [vmem:[#allocation70_spill] sm:$0xff] %v5792_v62 }
 0x1cf   :  { %9071 = vst [vmem:[#allocation71_spill] sm:$0xff] %v5794_v60 }
 0x1d0   :  { %4422 = vmatmul.msk.f32.vlgmr.msrb.gmra.mxu0 %vm331_vm0, %v5534_v17  ;;  %4454 = vmatmul.msk.f32.vlgmr.msrb.gmra.mxu1 %vm331_vm0, %v5534_v17  ;;  %v5816_v55 = vpop.f32.mrf.mxu2  ;;  %v5820_v17 = vpop.trf.xlu1 }
 0x1d1   :  { %9077 = vst [vmem:[#allocation77_spill] sm:$0xff] %v5816_v55 }
 0x1d2   :  { %9079 = vst [vmem:[#allocation79_spill] sm:$0xff] %v5820_v17  ;;  %v5834_v17 = vpop.trf.xlu2 }
 0x1d3   :  { %1843 = vmax.xlane.f32.xlu2 %v1842_v40  ;;  %v716_v40 = vpop.trf.xlu0  ;;  %9082 = vst [vmem:[#allocation82_spill] sm:$0xff] %v5834_v17  ;;  %v5838_v51 = vpop.f32.mrf.mxu3 }
 0x1d4   :  { %9084 = vst [vmem:[#allocation84_spill] sm:$0xff] %v5838_v51  ;;  %4388 = vmatmul.msk.f32.gmra.mxu2 %vm331_vm0, %v716_v40  ;;  %4420 = vmatmul.msk.f32.gmra.mxu3 %vm331_vm0, %v716_v40  ;;  %v1851_v40 = vmax.f32 %v5732_v63, %v5734_v11 }
 0x1d5   :  { %v5812_v8 = vpop.f32.mrf.mxu0  ;;  %v5814_v6 = vpop.f32.mrf.mxu1 }
 0x1d6   :  { %9075 = vst [vmem:[#allocation75_spill] sm:$0xff] %v5812_v8 }
 0x1d7   :  { %9076 = vst [vmem:[#allocation76_spill] sm:$0xff] %v5814_v6 }
 0x1d8   :  { %4423 = vmatmul.msk.f32.gmra.mxu0 %vm331_vm0, %v5546_v21  ;;  %4455 = vmatmul.msk.f32.gmra.mxu1 %vm331_vm0, %v5546_v21  ;;  %v5836_v29 = vpop.f32.mrf.mxu2  ;;  %v5840_v21 = vpop.trf.xlu1 }
 0x1d9   :  { %9083 = vst [vmem:[#allocation83_spill] sm:$0xff] %v5836_v29 }
 0x1da   :  { %9085 = vst [vmem:[#allocation85_spill] sm:$0xff] %v5840_v21 }
 0x1db   :  { %1846 = vmax.xlane.f32.xlu2 %v1845_v22  ;;  %v717_v22 = vpop.trf.xlu0  ;;  %v5856_v51 = vpop.f32.mrf.mxu3 }
 0x1dc   :  { %9089 = vst [vmem:[#allocation89_spill] sm:$0xff] %v5856_v51  ;;  %4389 = vmatmul.msk.f32.gmra.mxu2 %vm331_vm0, %v717_v22  ;;  %4421 = vmatmul.msk.f32.gmra.mxu3 %vm331_vm0, %v717_v22  ;;  %v1854_v22 = vmax.f32 %v5752_v45, %v5754_v38 }
 0x1dd   :  { %v5830_v1 = vpop.f32.mrf.mxu0  ;;  %v5832_v55 = vpop.f32.mrf.mxu1 }
 0x1de   :  { %9080 = vst [vmem:[#allocation80_spill] sm:$0xff] %v5830_v1 }
 0x1df   :  { %9081 = vst [vmem:[#allocation81_spill] sm:$0xff] %v5832_v55 }
 0x1e0   :  { %4424 = vmatmul.msk.f32.gmra.mxu0 %vm331_vm0, %v5558_v25  ;;  %4456 = vmatmul.msk.f32.gmra.mxu1 %vm331_vm0, %v5558_v25  ;;  %v5854_v21 = vpop.f32.mrf.mxu2  ;;  %v5858_v43 = vpop.trf.xlu1 }
 0x1e1   :  { %9088 = vst [vmem:[#allocation88_spill] sm:$0xff] %v5854_v21  ;;  %v5864_v25 = vpop.trf.xlu2 }
 0x1e2   :  { %9090 = vst [vmem:[#allocation90_spill] sm:$0xff] %v5858_v43 }
 0x1e3   :  { %1849 = vmax.xlane.f32.xlu2 %v1848_v39  ;;  %9091 = vst [vmem:[#allocation91_spill] sm:$0xff] %v5864_v25  ;;  %v1442_v39 = vpop.trf.xlu0  ;;  %v5876_v33 = vpop.f32.mrf.mxu3 }
 0x1e4   :  { %9095 = vst [vmem:[#allocation95_spill] sm:$0xff] %v5876_v33  ;;  %4486 = vmatmul.msk.f32.vlgmr.msrb.gmra.mxu2 %vm331_vm0, %v1442_v39  ;;  %4518 = vmatmul.msk.f32.vlgmr.msrb.gmra.mxu3 %vm331_vm0, %v1442_v39  ;;  %v1857_v39 = vmax.f32 %v5772_v53, %v5774_v52 }
 0x1e5   :  { %v5850_v17 = vpop.f32.mrf.mxu0  ;;  %v5852_v29 = vpop.f32.mrf.mxu1 }
 0x1e6   :  { %9086 = vst [vmem:[#allocation86_spill] sm:$0xff] %v5850_v17 }
 0x1e7   :  { %9087 = vst [vmem:[#allocation87_spill] sm:$0xff] %v5852_v29 }
 0x1e8   :  { %4425 = vmatmul.msk.f32.gmra.mxu0 %vm331_vm0, %v5572_v31  ;;  %4457 = vmatmul.msk.f32.gmra.mxu1 %vm331_vm0, %v5572_v31  ;;  %v5874_v51 = vpop.f32.mrf.mxu2  ;;  %v5878_v31 = vpop.trf.xlu1 }
 0x1e9   :  { %9094 = vst [vmem:[#allocation94_spill] sm:$0xff] %v5874_v51  ;;  %v5886_v25 = vpop.trf.xlu2 }
 0x1ea   :  { %9096 = vst [vmem:[#allocation96_spill] sm:$0xff] %v5878_v31 }
 0x1eb   :  { %1852 = vmax.xlane.f32.xlu2 %v1851_v40  ;;  %v1443_v40 = vpop.trf.xlu0  ;;  %9097 = vst [vmem:[#allocation97_spill] sm:$0xff] %v5886_v25  ;;  %v5896_v11 = vpop.f32.mrf.mxu3 }
 0x1ec   :  { %9101 = vst [vmem:[#allocation101_spill] sm:$0xff] %v5896_v11  ;;  %4487 = vmatmul.msk.f32.gmra.mxu2 %vm331_vm0, %v1443_v40  ;;  %4519 = vmatmul.msk.f32.gmra.mxu3 %vm331_vm0, %v1443_v40  ;;  %v1860_v40 = vmax.f32 %v5792_v62, %v5794_v60 }
 0x1ed   :  { %v5870_v21 = vpop.f32.mrf.mxu0  ;;  %v5872_v43 = vpop.f32.mrf.mxu1 }
 0x1ee   :  { %9092 = vst [vmem:[#allocation92_spill] sm:$0xff] %v5870_v21 }
 0x1ef   :  { %9093 = vst [vmem:[#allocation93_spill] sm:$0xff] %v5872_v43 }
 0x1f0   :  { %4426 = vmatmul.msk.f32.gmra.mxu0 %vm331_vm0, %v5590_v14  ;;  %4458 = vmatmul.msk.f32.gmra.mxu1 %vm331_vm0, %v5590_v14  ;;  %v5894_v33 = vpop.f32.mrf.mxu2  ;;  %v5902_v14 = vpop.trf.xlu1 }
 0x1f1   :  { %9100 = vst [vmem:[#allocation100_spill] sm:$0xff] %v5894_v33  ;;  %v5907_v25 = vpop.trf.xlu2 }
 0x1f2   :  { %9102 = vst [vmem:[#allocation102_spill] sm:$0xff] %v5902_v14 }
 0x1f3   :  { %1855 = vmax.xlane.f32.xlu2 %v1854_v22  ;;  %v1444_v22 = vpop.trf.xlu0  ;;  %9103 = vst [vmem:[#allocation103_spill] sm:$0xff] %v5907_v25 }
 0x1f4   :  { %4488 = vmatmul.msk.f32.gmra.mxu2 %vm331_vm0, %v1444_v22  ;;  %4520 = vmatmul.msk.f32.gmra.mxu3 %vm331_vm0, %v1444_v22 }
 0x1f5   :  { %v5890_v51 = vpop.f32.mrf.mxu0  ;;  %v5892_v31 = vpop.f32.mrf.mxu1 }
 0x1f6   :  { %9098 = vst [vmem:[#allocation98_spill] sm:$0xff] %v5890_v51 }
 0x1f7   :  { %9099 = vst [vmem:[#allocation99_spill] sm:$0xff] %v5892_v31 }
 0x1f8   :  { %4427 = vmatmul.msk.f32.gmra.mxu0 %vm331_vm0, %v5608_v50  ;;  %4459 = vmatmul.msk.f32.gmra.mxu1 %vm331_vm0, %v5608_v50  ;;  %v5914_v38 = vpop.f32.mrf.mxu2  ;;  %v5916_v50 = vpop.f32.mrf.mxu3 }
 0x1f9   :  { %9106 = vst [vmem:[#allocation106_spill] sm:$0xff] %v5914_v38  ;;  %v5926_v14 = vpop.trf.xlu1 }
 0x1fa   :  { %9107 = vst [vmem:[#allocation107_spill] sm:$0xff] %v5916_v50 }
 0x1fb   :  { %1858 = vmax.xlane.f32.xlu2 %v1857_v39  ;;  %v1818_v39 = vmax.f32 %v5542_v59, %v5544_v19  ;;  %v1445_v25 = vpop.trf.xlu0  ;;  %9108 = vst [vmem:[#allocation108_spill] sm:$0xff] %v5926_v14 }
 0x1fc   :  { %4489 = vmatmul.msk.f32.gmra.mxu2 %vm331_vm0, %v1445_v25  ;;  %4521 = vmatmul.msk.f32.gmra.mxu3 %vm331_vm0, %v1445_v25 }
 0x1fd   :  { %v5910_v33 = vpop.f32.mrf.mxu0  ;;  %v5912_v11 = vpop.f32.mrf.mxu1 }
 0x1fe   :  { %9104 = vst [vmem:[#allocation104_spill] sm:$0xff] %v5910_v33 }
 0x1ff   :  { %9105 = vst [vmem:[#allocation105_spill] sm:$0xff] %v5912_v11 }
 0x200   :  { %4428 = vmatmul.msk.f32.gmra.mxu0 %vm331_vm0, %v5626_v57  ;;  %4460 = vmatmul.msk.f32.gmra.mxu1 %vm331_vm0, %v5626_v57  ;;  %v5936_v52 = vpop.f32.mrf.mxu2  ;;  %v5938_v19 = vpop.f32.mrf.mxu3 }
 0x201   :  { %9112 = vst [vmem:[#allocation112_spill] sm:$0xff] %v5936_v52  ;;  %v5949_v60 = vpop.trf.xlu1 }
 0x202   :  { %1819 = vmax.xlane.f32.xlu1 %v1818_v39  ;;  %9113 = vst [vmem:[#allocation113_spill] sm:$0xff] %v5938_v19  ;;  %v1863_v39 = vmax.f32 %v5812_v8, %v5814_v6 }
 0x203   :  { %1861 = vmax.xlane.f32.xlu2 %v1860_v40  ;;  %v1446_v22 = vpop.trf.xlu0  ;;  %v1866_v40 = vmax.f32 %v5830_v1, %v5832_v55  ;;  %9114 = vst [vmem:[#allocation114_spill] sm:$0xff] %v5949_v60  ;;  %v1815_v55 = vmax.f32 %v5530_v15, %v5532_v16 }
 0x204   :  { %4490 = vmatmul.msk.f32.gmra.mxu2 %vm331_vm0, %v1446_v22  ;;  %4522 = vmatmul.msk.f32.gmra.mxu3 %vm331_vm0, %v1446_v22 }
 0x205   :  { %v5930_v38 = vpop.f32.mrf.mxu0  ;;  %v5932_v50 = vpop.f32.mrf.mxu1 }
 0x206   :  { %9109 = vst [vmem:[#allocation109_spill] sm:$0xff] %v5930_v38  ;;  %v5934_v57 = vpop.xlane.xlu2 %1813 }
 0x207   :  { %9110 = vst [vmem:[#allocation110_spill] sm:$0xff] %v5932_v50 }
 0x208   :  { %9111 = vst [vmem:[#allocation111_spill] sm:$0xff] %v5934_v57  ;;  %4429 = vmatmul.msk.f32.gmra.mxu0 %vm331_vm0, %v5644_v3  ;;  %4461 = vmatmul.msk.f32.gmra.mxu1 %vm331_vm0, %v5644_v3  ;;  %v5958_v57 = vpop.f32.mrf.mxu2  ;;  %v5960_v3 = vpop.f32.mrf.mxu3 }
 0x209   :  { %9118 = vst [vmem:[#allocation118_spill] sm:$0xff] %v5958_v57 }
 0x20a   :  { %1864 = vmax.xlane.f32.xlu1 %v1863_v39  ;;  %9119 = vst [vmem:[#allocation119_spill] sm:$0xff] %v5960_v3  ;;  %v1869_v39 = vmax.f32 %v5850_v17, %v5852_v29 }
 0x20b   :  { %1867 = vmax.xlane.f32.xlu2 %v1866_v40  ;;  %v1447_v25 = vpop.trf.xlu0  ;;  %v1872_v40 = vmax.f32 %v5870_v21, %v5872_v43  ;;  %v1878_v43 = vmax.f32 %v5910_v33, %v5912_v11 }
 0x20c   :  { %4491 = vmatmul.msk.f32.gmra.mxu2 %vm331_vm0, %v1447_v25  ;;  %4523 = vmatmul.msk.f32.gmra.mxu3 %vm331_vm0, %v1447_v25 }
 0x20d   :  { %v5952_v62 = vpop.f32.mrf.mxu0  ;;  %v5954_v6 = vpop.f32.mrf.mxu1 }
 0x20e   :  { %9115 = vst [vmem:[#allocation115_spill] sm:$0xff] %v5952_v62  ;;  %v5956_v8 = vpop.xlane.xlu2 %1822  ;;  %v1884_v11 = vmax.f32 %v5952_v62, %v5954_v6 }
 0x20f   :  { %9116 = vst [vmem:[#allocation116_spill] sm:$0xff] %v5954_v6 }
 0x210   :  { %9117 = vst [vmem:[#allocation117_spill] sm:$0xff] %v5956_v8  ;;  %4430 = vmatmul.msk.f32.gmra.mxu0 %vm331_vm0, %v5662_v18  ;;  %4462 = vmatmul.msk.f32.gmra.mxu1 %vm331_vm0, %v5662_v18  ;;  %v5980_v18 = vpop.f32.mrf.mxu2  ;;  %v5982_v60 = vpop.f32.mrf.mxu3 }
 0x212   :  { %1870 = vmax.xlane.f32.xlu1 %v1869_v39  ;;  %v1875_v39 = vmax.f32 %v5890_v51, %v5892_v31 }
 0x213   :  { %1873 = vmax.xlane.f32.xlu2 %v1872_v40  ;;  %v1448_v22 = vpop.trf.xlu0  ;;  %v1881_v40 = vmax.f32 %v5930_v38, %v5932_v50 }
 0x214   :  { %1816 = vmax.xlane.f32.xlu0 %v1815_v55  ;;  %v5990_v55 = vpop.trf.xlu1  ;;  %4492 = vmatmul.msk.f32.gmra.mxu2 %vm331_vm0, %v1448_v22 }
 0x215   :  { %v5974_v29 = vpop.f32.mrf.mxu0  ;;  %v5976_v17 = vpop.f32.mrf.mxu1  ;;  %9122 = vst [vmem:[#allocation122_spill] sm:$0xff] %v5990_v55  ;;  %4524 = vmatmul.msk.f32.gmra.mxu3 %vm331_vm0, %v1448_v22 }
 0x216   :  { %9120 = vst [vmem:[#allocation120_spill] sm:$0xff] %v5974_v29  ;;  %v5978_v1 = vpop.xlane.xlu2 %1825 }
 0x217   :  { %9121 = vst [vmem:[#allocation121_spill] sm:$0xff] %v5976_v17 }
 0x218   :  { %4431 = vmatmul.msk.f32.gmra.mxu0 %vm331_vm0, %v5682_v32  ;;  %4463 = vmatmul.msk.f32.gmra.mxu1 %vm331_vm0, %v5682_v32  ;;  %v6004_v51 = vpop.f32.mrf.mxu2  ;;  %v6006_v55 = vpop.f32.mrf.mxu3 }
 0x219   :  { %9124 = vst [vmem:[#allocation124_spill] sm:$0xff] %v6004_v51 }
 0x21a   :  { %1876 = vmax.xlane.f32.xlu1 %v1875_v39  ;;  %9125 = vst [vmem:[#allocation125_spill] sm:$0xff] %v6006_v55  ;;  %v1887_v39 = vmax.f32 %v5974_v29, %v5976_v17 }
 0x21b   :  { %1882 = vmax.xlane.f32.xlu2 %v1881_v40 }
 0x21c   :  { %1879 = vmax.xlane.f32.xlu0 %v1878_v43  ;;  %v1449_v43 = vpop.trf.xlu0  ;;  %v6018_v40 = vpop.trf.xlu1 }
 0x21d   :  { %v5998_v21 = vpop.f32.mrf.mxu0  ;;  %v6000_v31 = vpop.f32.mrf.mxu1  ;;  %9126 = vst [vmem:[#allocation126_spill] sm:$0xff] %v6018_v40  ;;  %4493 = vmatmul.msk.f32.gmra.mxu2 %vm331_vm0, %v1449_v43  ;;  %4525 = vmatmul.msk.f32.gmra.mxu3 %vm331_vm0, %v1449_v43 }
 0x21e   :  { %9123 = vst [vmem:[#allocation123_spill] sm:$0xff] %v6000_v31  ;;  %v6002_v32 = vpop.xlane.xlu2 %1828  ;;  %v1890_v25 = vmax.f32 %v5998_v21, %v6000_v31 }
 0x220   :  { %4432 = vmatmul.msk.f32.gmra.mxu0 %vm331_vm0, %v5702_v36  ;;  %4464 = vmatmul.msk.f32.gmra.mxu1 %vm331_vm0, %v5702_v36  ;;  %v6028_v6 = vpop.f32.mrf.mxu2  ;;  %v6030_v62 = vpop.f32.mrf.mxu3 }
 0x222   :  { %1885 = vmax.xlane.f32.xlu1 %v1884_v11 }
 0x223   :  { %1891 = vmax.xlane.f32.xlu2 %v1890_v25 }
 0x224   :  { %1888 = vmax.xlane.f32.xlu0 %v1887_v39  ;;  %v1450_v22 = vpop.trf.xlu0  ;;  %v6039_v25 = vpop.trf.xlu1 }
 0x225   :  { %v6022_v33 = vpop.f32.mrf.mxu0  ;;  %v6024_v50 = vpop.f32.mrf.mxu1  ;;  %9129 = vst [vmem:[#allocation129_spill] sm:$0xff] %v6039_v25  ;;  %4494 = vmatmul.msk.f32.gmra.mxu2 %vm331_vm0, %v1450_v22  ;;  %4526 = vmatmul.msk.f32.gmra.mxu3 %vm331_vm0, %v1450_v22 }
 0x226   :  { %9127 = vst [vmem:[#allocation127_spill] sm:$0xff] %v6022_v33  ;;  %v6026_v36 = vpop.xlane.xlu2 %1831  ;;  %v1893_v11 = vmax.f32 %v6022_v33, %v6024_v50 }
 0x227   :  { %9128 = vst [vmem:[#allocation128_spill] sm:$0xff] %v6024_v50 }
 0x228   :  { %4433 = vmatmul.msk.f32.gmra.mxu0 %vm331_vm0, %v5722_v44  ;;  %4465 = vmatmul.msk.f32.gmra.mxu1 %vm331_vm0, %v5722_v44  ;;  %v6050_v33 = vpop.f32.mrf.mxu2  ;;  %v6052_v44 = vpop.f32.mrf.mxu3 }
 0x229   :  { %9132 = vst [vmem:[#allocation132_spill] sm:$0xff] %v6052_v44 }
 0x22a   :  { %1894 = vmax.xlane.f32.xlu1 %v1893_v11 }
 0x22c   :  { %v1451_v43 = vpop.trf.xlu0 }
 0x22d   :  { %v6042_v39 = vpop.f32.mrf.mxu0  ;;  %v6044_v38 = vpop.f32.mrf.mxu1  ;;  %4495 = vmatmul.msk.f32.gmra.mxu2 %vm331_vm0, %v1451_v43  ;;  %4527 = vmatmul.msk.f32.gmra.mxu3 %vm331_vm0, %v1451_v43 }
 0x22e   :  { %9130 = vst [vmem:[#allocation130_spill] sm:$0xff] %v6042_v39  ;;  %v1896_v40 = vmax.f32 %v6042_v39, %v6044_v38  ;;  %v6048_v50 = vpop.xlane.xlu2 %1834 }
 0x22f   :  { %9131 = vst [vmem:[#allocation131_spill] sm:$0xff] %v6044_v38 }
 0x230   :  { %4434 = vmatmul.msk.f32.gmra.mxu0 %vm331_vm0, %v5742_v58  ;;  %4466 = vmatmul.msk.f32.gmra.mxu1 %vm331_vm0, %v5742_v58  ;;  %v6068_v14 = vpop.f32.mrf.mxu2  ;;  %v6070_v8 = vpop.f32.mrf.mxu3 }
 0x231   :  { %1897 = vmax.xlane.f32.xlu0 %v1896_v40  ;;  %v6076_v58 = vpop.trf.xlu1 }
 0x232   :  { %9135 = vst [vmem:[#allocation135_spill] sm:$0xff] %v6076_v58 }
 0x234   :  { %v1452_v40 = vpop.trf.xlu0 }
 0x235   :  { %v6060_v11 = vpop.f32.mrf.mxu0  ;;  %v6062_v25 = vpop.f32.mrf.mxu1  ;;  %4496 = vmatmul.msk.f32.gmra.mxu2 %vm331_vm0, %v1452_v40  ;;  %4528 = vmatmul.msk.f32.gmra.mxu3 %vm331_vm0, %v1452_v40 }
 0x236   :  { %9133 = vst [vmem:[#allocation133_spill] sm:$0xff] %v6060_v11  ;;  %v1899_v38 = vmax.f32 %v6060_v11, %v6062_v25  ;;  %v6066_v39 = vpop.xlane.xlu2 %1837 }
 0x237   :  { %9134 = vst [vmem:[#allocation134_spill] sm:$0xff] %v6062_v25 }
 0x238   :  { %4435 = vmatmul.msk.f32.gmra.mxu0 %vm331_vm0, %v5760_v46  ;;  %4467 = vmatmul.msk.f32.gmra.mxu1 %vm331_vm0, %v5760_v46  ;;  %v6088_v29 = vpop.f32.mrf.mxu2  ;;  %v1908_v46 = vmax.f32 %v5586_v41, %v5588_v42 }
 0x239   :  { %1900 = vmax.xlane.f32.xlu2 %v1899_v38  ;;  %v6092_v38 = vpop.f32.mrf.mxu3  ;;  %v6098_v58 = vpop.trf.xlu1 }
 0x23a   :  { %9138 = vst [vmem:[#allocation138_spill] sm:$0xff] %v6098_v58 }
 0x23c   :  { %v1453_v43 = vpop.trf.xlu0 }
 0x23d   :  { %v6080_v22 = vpop.f32.mrf.mxu0  ;;  %v6082_v25 = vpop.f32.mrf.mxu1  ;;  %4497 = vmatmul.msk.f32.gmra.mxu2 %vm331_vm0, %v1453_v43  ;;  %4529 = vmatmul.msk.f32.gmra.mxu3 %vm331_vm0, %v1453_v43  ;;  %v1914_v43 = vmax.f32 %v5622_v54, %v5624_v56  ;;  %v9149_v56 = vld [vmem:[#allocation25_spill] sm:$0xff] }
 0x23e   :  { %9136 = vst [vmem:[#allocation136_spill] sm:$0xff] %v6080_v22  ;;  %v1902_v11 = vmax.f32 %v6080_v22, %v6082_v25  ;;  %v6086_v17 = vpop.xlane.xlu2 %1840 }
 0x23f   :  { %9137 = vst [vmem:[#allocation137_spill] sm:$0xff] %v6082_v25 }
 0x240   :  { %4436 = vmatmul.msk.f32.gmra.mxu0 %vm331_vm0, %v5780_v7  ;;  %4468 = vmatmul.msk.f32.gmra.mxu1 %vm331_vm0, %v5780_v7  ;;  %v6108_v31 = vpop.f32.mrf.mxu2  ;;  %v1911_v7 = vmax.f32 %v5604_v48, %v5606_v49 }
 0x241   :  { %1909 = vmax.xlane.f32.xlu2 %v1908_v46  ;;  %1903 = vmax.xlane.f32.xlu1 %v1902_v11  ;;  %9141 = vst [vmem:[#allocation141_spill] sm:$0xff] %v6108_v31  ;;  %v1917_v11 = vmax.f32 %v5640_v0, %v5642_v2  ;;  %v6116_v58 = vpop.f32.mrf.mxu3 }
 0x242   :  { %9142 = vst [vmem:[#allocation142_spill] sm:$0xff] %v6116_v58 }
 0x244   :  { %v1454_v49 = vpop.trf.xlu0 }
 0x245   :  { %v6102_v25 = vpop.f32.mrf.mxu0  ;;  %v6104_v42 = vpop.f32.mrf.mxu1  ;;  %4498 = vmatmul.msk.f32.gmra.mxu2 %vm331_vm0, %v1454_v49  ;;  %4530 = vmatmul.msk.f32.gmra.mxu3 %vm331_vm0, %v1454_v49  ;;  %v1923_v49 = vmax.f32 %v5678_v35, %v5680_v37  ;;  %v9161_v37 = vld [vmem:[#allocation60_spill] sm:$0xff] }
 0x246   :  { %9139 = vst [vmem:[#allocation139_spill] sm:$0xff] %v6102_v25  ;;  %v1905_v41 = vmax.f32 %v6102_v25, %v6104_v42  ;;  %v1844_v22 = vpop.xlane.xlu2 %1843 }
 0x247   :  { %9140 = vst [vmem:[#allocation140_spill] sm:$0xff] %v6104_v42  ;;  %v2216_v46 = vsub.f32 %v5674_v34, %v1844_v22  ;;  %v2217_v40 = vsub.f32 %v5676_v5, %v1844_v22  ;;  %v6123_v34 = vpop.trf.xlu1 }
 0x248   :  { %4437 = vmatmul.msk.f32.gmra.mxu0 %vm331_vm0, %v5800_v12  ;;  %4469 = vmatmul.msk.f32.gmra.mxu1 %vm331_vm0, %v5800_v12  ;;  %9143 = vst [vmem:[#allocation143_spill] sm:$0xff] %v6123_v34  ;;  %v6130_v12 = vpop.f32.mrf.mxu2  ;;  %v9158_v34 = vld [vmem:[#allocation58_spill] sm:$0xff] }
 0x249   :  { %v2492_v42 = vmul.f32 1.442695, %v2216_v46  ;;  %v2494_v25 = vmul.f32 1.442695, %v2217_v40  ;;  %1918 = vmax.xlane.f32.xlu2 %v1917_v11  ;;  %1912 = vmax.xlane.f32.xlu1 %v1911_v7  ;;  %v1920_v7 = vmax.f32 %v5658_v9, %v5660_v13  ;;  %v6138_v11 = vpop.f32.mrf.mxu3 }
 0x24a   :  { %1906 = vmax.xlane.f32.xlu0 %v1905_v41  ;;  %v1926_v41 = vmax.f32 %v5698_v4, %v5700_v28  ;;  %v9157_v28 = vld [vmem:[#allocation77_spill] sm:$0xff] }
 0x24b   :  { %4578 = vpow2.f32 %v2492_v42 }
 0x24c   :  { %4580 = vpow2.f32 %v2494_v25 }
 0x24d   :  { %v6126_v5 = vpop.f32.mrf.mxu0  ;;  %v6128_v22 = vpop.f32.mrf.mxu1 }
 0x24e   :  { %9144 = vst [vmem:[#allocation144_spill] sm:$0xff] %v6126_v5  ;;  %v1847_v48 = vpop.xlane.xlu2 %1846  ;;  %v9175_v5 = vld [vmem:[#allocation35_spill] sm:$0xff] }
 0x24f   :  { %9145 = vst [vmem:[#allocation145_spill] sm:$0xff] %v6128_v22  ;;  %v2218_v42 = vsub.f32 %v5694_v23, %v1847_v48  ;;  %v2219_v25 = vsub.f32 %v5696_v26, %v1847_v48  ;;  %v1455_v26 = vpop.trf.xlu0  ;;  %v6176_v54 = vpop.trf.xlu1  ;;  %v9185_v22 = vld [vmem:[#allocation40_spill] sm:$0xff] }
 0x250   :  { %4438 = vmatmul.msk.f32.gmra.mxu0 %vm331_vm0, %v5560_v27  ;;  %4470 = vmatmul.msk.f32.gmra.mxu1 %vm331_vm0, %v5560_v27  ;;  %9150 = vst [vmem:[#allocation25_spill] sm:$0xff] %v6176_v54 }
 0x251   :  { %v6146_v46 = vpop.eup %4578  ;;  %v2496_v40 = vmul.f32 1.442695, %v2218_v42  ;;  %v2498_v2 = vmul.f32 1.442695, %v2219_v25  ;;  %1927 = vmax.xlane.f32.xlu2 %v1926_v41  ;;  %1921 = vmax.xlane.f32.xlu1 %v1920_v7  ;;  %v6160_v7 = vpop.f32.mrf.mxu2  ;;  %v1929_v25 = vmax.f32 %v5718_v61, %v5720_v30  ;;  %v9162_v30 = vld [vmem:[#allocation30_spill] sm:$0xff] }
 0x252   :  { %v6148_v23 = vpop.eup %4580  ;;  %1915 = vmax.xlane.f32.xlu0 %v1914_v43  ;;  %v1935_v43 = vmax.f32 %v5756_v20, %v5758_v47  ;;  %4499 = vmatmul.msk.f32.gmra.mxu2 %vm331_vm0, %v1455_v26  ;;  %v9171_v47 = vld [vmem:[#allocation62_spill] sm:$0xff]  ;;  %v9174_v20 = vld [vmem:[#allocation72_spill] sm:$0xff] }
 0x253   :  { %4582 = vpow2.f32 %v2496_v40  ;;  %v6153_v48 = vadd.f32 %v6148_v23, %v6146_v46  ;;  %4531 = vmatmul.msk.f32.gmra.mxu3 %vm331_vm0, %v1455_v26  ;;  %v9160_v26 = vld [vmem:[#allocation61_spill] sm:$0xff] }
 0x254   :  { %4584 = vpow2.f32 %v2498_v2  ;;  %v1932_v35 = vmax.f32 %v9161_v37, %v9160_v26  ;;  %v9170_v26 = vld [vmem:[#allocation94_spill] sm:$0xff] }
 0x255   :  { %9146 = vst [vmem:[#allocation146_spill] sm:$0xff] %v6153_v48  ;;  %v6156_v27 = vpop.f32.mrf.mxu0  ;;  %v6158_v42 = vpop.f32.mrf.mxu1 }
 0x256   :  { %9147 = vst [vmem:[#allocation147_spill] sm:$0xff] %v6156_v27  ;;  %v1850_v41 = vpop.xlane.xlu2 %1849  ;;  %v6168_v48 = vpop.f32.mrf.mxu3 }
 0x257   :  { %9148 = vst [vmem:[#allocation148_spill] sm:$0xff] %v6158_v42  ;;  %v2220_v40 = vsub.f32 %v5714_v10, %v1850_v41  ;;  %v2221_v2 = vsub.f32 %v5716_v24, %v1850_v41  ;;  %v1456_v61 = vpop.trf.xlu0 }
 0x258   :  { %4439 = vmatmul.msk.f32.gmra.mxu0 %vm331_vm0, %v9149_v56  ;;  %4471 = vmatmul.msk.f32.gmra.mxu1 %vm331_vm0, %v9149_v56 }
 0x259   :  { %v6178_v0 = vpop.eup %4582  ;;  %v2500_v13 = vmul.f32 1.442695, %v2220_v40  ;;  %v2502_v9 = vmul.f32 1.442695, %v2221_v2  ;;  %1936 = vmax.xlane.f32.xlu2 %v1935_v43  ;;  %1930 = vmax.xlane.f32.xlu1 %v1929_v25  ;;  %v6192_v43 = vpop.f32.mrf.mxu2  ;;  %v9154_v25 = vld [vmem:[#allocation68_spill] sm:$0xff]  ;;  %v9155_v2 = vld [vmem:[#allocation67_spill] sm:$0xff] }
 0x25a   :  { %v6180_v10 = vpop.eup %4584  ;;  %1924 = vmax.xlane.f32.xlu0 %v1923_v49  ;;  %v1938_v49 = vmax.f32 %v9155_v2, %v9154_v25  ;;  %4500 = vmatmul.msk.f32.gmra.mxu2 %vm331_vm0, %v1456_v61 }
 0x25b   :  { %4586 = vpow2.f32 %v2500_v13  ;;  %v6185_v24 = vadd.f32 %v6180_v10, %v6178_v0  ;;  %v9156_v13 = vld [vmem:[#allocation78_spill] sm:$0xff]  ;;  %4532 = vmatmul.msk.f32.gmra.mxu3 %vm331_vm0, %v1456_v61  ;;  %v9173_v61 = vld [vmem:[#allocation73_spill] sm:$0xff] }
 0x25c   :  { %4588 = vpow2.f32 %v2502_v9  ;;  %v1944_v4 = vmax.f32 %v9157_v28, %v9156_v13 }
 0x25d   :  { %9151 = vst [vmem:[#allocation149_spill] sm:$0xff] %v6185_v24  ;;  %v6188_v56 = vpop.f32.mrf.mxu0  ;;  %v6190_v41 = vpop.f32.mrf.mxu1 }
 0x25e   :  { %9152 = vst [vmem:[#allocation150_spill] sm:$0xff] %v6188_v56  ;;  %v1853_v40 = vpop.xlane.xlu2 %1852  ;;  %v6200_v9 = vpop.f32.mrf.mxu3 }
 0x25f   :  { %9153 = vst [vmem:[#allocation151_spill] sm:$0xff] %v6190_v41  ;;  %v2222_v54 = vsub.f32 %v5732_v63, %v1853_v40  ;;  %v2223_v24 = vsub.f32 %v9158_v34, %v1853_v40  ;;  %v6212_v34 = vpop.trf.xlu1 }
 0x260   :  { %9159 = vst [vmem:[#allocation58_spill] sm:$0xff] %v6200_v9  ;;  %4440 = vmatmul.msk.f32.gmra.mxu0 %vm331_vm0, %v9162_v30  ;;  %4472 = vmatmul.msk.f32.gmra.mxu1 %vm331_vm0, %v9162_v30 }
 0x261   :  { %v6208_v25 = vpop.eup %4586  ;;  %v2504_v2 = vmul.f32 1.442695, %v2222_v54  ;;  %v2506_v13 = vmul.f32 1.442695, %v2223_v24  ;;  %1945 = vmax.xlane.f32.xlu2 %v1944_v4  ;;  %1939 = vmax.xlane.f32.xlu1 %v1938_v49  ;;  %9163 = vst [vmem:[#allocation30_spill] sm:$0xff] %v6212_v34  ;;  %v6224_v24 = vpop.f32.mrf.mxu2  ;;  %v9168_v49 = vld [vmem:[#allocation83_spill] sm:$0xff] }
 0x262   :  { %v6210_v63 = vpop.eup %4588  ;;  %1933 = vmax.xlane.f32.xlu0 %v1932_v35  ;;  %v9167_v35 = vld [vmem:[#allocation84_spill] sm:$0xff] }
 0x263   :  { %4590 = vpow2.f32 %v2504_v2  ;;  %v6217_v40 = vadd.f32 %v6210_v63, %v6208_v25  ;;  %v1947_v34 = vmax.f32 %v9168_v49, %v9167_v35  ;;  %v9169_v2 = vld [vmem:[#allocation95_spill] sm:$0xff] }
 0x264   :  { %4592 = vpow2.f32 %v2506_v13  ;;  %v1953_v37 = vmax.f32 %v9170_v26, %v9169_v2  ;;  %v9182_v2 = vld [vmem:[#allocation66_spill] sm:$0xff]  ;;  %v9184_v26 = vld [vmem:[#allocation88_spill] sm:$0xff] }
 0x265   :  { %9164 = vst [vmem:[#allocation152_spill] sm:$0xff] %v6217_v40  ;;  %v6220_v30 = vpop.f32.mrf.mxu0  ;;  %v6222_v54 = vpop.f32.mrf.mxu1 }
 0x266   :  { %9165 = vst [vmem:[#allocation153_spill] sm:$0xff] %v6220_v30  ;;  %v1856_v4 = vpop.xlane.xlu2 %1855  ;;  %v6232_v13 = vpop.f32.mrf.mxu3  ;;  %v1941_v30 = vmax.f32 %v9174_v20, %v9173_v61 }
 0x267   :  { %9166 = vst [vmem:[#allocation154_spill] sm:$0xff] %v6222_v54  ;;  %v2224_v28 = vsub.f32 %v5752_v45, %v1856_v4  ;;  %v2225_v40 = vsub.f32 %v9171_v47, %v1856_v4  ;;  %v1457_v47 = vpop.trf.xlu0  ;;  %v6249_v61 = vpop.trf.xlu1 }
 0x268   :  { %9172 = vst [vmem:[#allocation62_spill] sm:$0xff] %v6232_v13  ;;  %4441 = vmatmul.msk.f32.gmra.mxu0 %vm331_vm0, %v9175_v5  ;;  %4473 = vmatmul.msk.f32.gmra.mxu1 %vm331_vm0, %v9175_v5 }
 0x269   :  { %v6240_v54 = vpop.eup %4590  ;;  %v2508_v35 = vmul.f32 1.442695, %v2224_v28  ;;  %v2510_v49 = vmul.f32 1.442695, %v2225_v40  ;;  %1954 = vmax.xlane.f32.xlu2 %v1953_v37  ;;  %1948 = vmax.xlane.f32.xlu1 %v1947_v34  ;;  %9177 = vst [vmem:[#allocation155_spill] sm:$0xff] %v6249_v61  ;;  %v9180_v34 = vld [vmem:[#allocation101_spill] sm:$0xff] }
 0x26a   :  { %v6242_v45 = vpop.eup %4592  ;;  %1942 = vmax.xlane.f32.xlu0 %v1941_v30  ;;  %4501 = vmatmul.msk.f32.gmra.mxu2 %vm331_vm0, %v1457_v47  ;;  %v9181_v40 = vld [vmem:[#allocation100_spill] sm:$0xff] }
 0x26b   :  { %4594 = vpow2.f32 %v2508_v35  ;;  %v6247_v4 = vadd.f32 %v6242_v45, %v6240_v54  ;;  %4533 = vmatmul.msk.f32.gmra.mxu3 %vm331_vm0, %v1457_v47  ;;  %v1956_v30 = vmax.f32 %v9181_v40, %v9180_v34  ;;  %v1962_v35 = vmax.f32 %v5936_v52, %v5938_v19  ;;  %v6268_v47 = vpop.f32.mrf.mxu2 }
 0x26c   :  { %4596 = vpow2.f32 %v2510_v49  ;;  %v9183_v49 = vld [vmem:[#allocation89_spill] sm:$0xff] }
 0x26d   :  { %9176 = vst [vmem:[#allocation35_spill] sm:$0xff] %v6247_v4  ;;  %v6252_v28 = vpop.f32.mrf.mxu0  ;;  %v6254_v37 = vpop.f32.mrf.mxu1  ;;  %v1950_v61 = vmax.f32 %v9184_v26, %v9183_v49  ;;  %v9193_v49 = vld [vmem:[#allocation106_spill] sm:$0xff]  ;;  %v9194_v26 = vld [vmem:[#allocation49_spill] sm:$0xff] }
 0x26e   :  { %9178 = vst [vmem:[#allocation156_spill] sm:$0xff] %v6252_v28  ;;  %v1859_v5 = vpop.xlane.xlu2 %1858  ;;  %v6270_v28 = vpop.f32.mrf.mxu3 }
 0x26f   :  { %9179 = vst [vmem:[#allocation157_spill] sm:$0xff] %v6254_v37  ;;  %v2226_v20 = vsub.f32 %v5772_v53, %v1859_v5  ;;  %v2227_v4 = vsub.f32 %v9182_v2, %v1859_v5  ;;  %v9186_v2 = vld [vmem:[#allocation79_spill] sm:$0xff] }
 0x270   :  { %4442 = vmatmul.msk.f32.gmra.mxu0 %vm331_vm0, %v9185_v22  ;;  %4474 = vmatmul.msk.f32.gmra.mxu1 %vm331_vm0, %v9185_v22 }
 0x271   :  { %v4595_v34 = vpop.eup %4594  ;;  %v2512_v40 = vmul.f32 1.442695, %v2226_v20  ;;  %v2514_v19 = vmul.f32 1.442695, %v2227_v4  ;;  %1957 = vmax.xlane.f32.xlu1 %v1956_v30  ;;  %1963 = vmax.xlane.f32.xlu2 %v1962_v35  ;;  %v9191_v35 = vld [vmem:[#allocation20_spill] sm:$0xff] }
 0x272   :  { %v4597_v53 = vpop.eup %4596  ;;  %1951 = vmax.xlane.f32.xlu0 %v1950_v61  ;;  %4502 = vmatmul.msk.f32.gmra.mxu2 %vm331_vm0, %v9186_v2  ;;  %v1965_v61 = vmax.f32 %v5958_v57, %v5960_v3 }
 0x273   :  { %4598 = vpow2.f32 %v2512_v40  ;;  %v6274_v5 = vadd.f32 %v4597_v53, %v4595_v34  ;;  %4534 = vmatmul.msk.f32.gmra.mxu3 %vm331_vm0, %v9186_v2  ;;  %v1971_v40 = vmax.f32 %v6004_v51, %v6006_v55 }
 0x274   :  { %4600 = vpow2.f32 %v2514_v19 }
 0x275   :  { %9187 = vst [vmem:[#allocation66_spill] sm:$0xff] %v6274_v5  ;;  %v6278_v22 = vpop.f32.mrf.mxu0  ;;  %v6280_v52 = vpop.f32.mrf.mxu1  ;;  %v9192_v5 = vld [vmem:[#allocation107_spill] sm:$0xff] }
 0x276   :  { %9188 = vst [vmem:[#allocation40_spill] sm:$0xff] %v6278_v22  ;;  %v1820_v20 = vpop.xlane.xlu1 %1819  ;;  %v6282_v4 = vpop.xlane.xlu2 %1861  ;;  %v1959_v2 = vmax.f32 %v9193_v49, %v9192_v5  ;;  %v9205_v5 = vld [vmem:[#allocation90_spill] sm:$0xff] }
 0x277   :  { %9189 = vst [vmem:[#allocation79_spill] sm:$0xff] %v6280_v52  ;;  %v2200_v30 = vsub.f32 %v5542_v59, %v1820_v20  ;;  %v2201_v19 = vsub.f32 %v9191_v35, %v1820_v20  ;;  %v6298_v22 = vpop.f32.mrf.mxu3  ;;  %v9197_v20 = vld [vmem:[#allocation85_spill] sm:$0xff] }
 0x278   :  { %9190 = vst [vmem:[#allocation158_spill] sm:$0xff] %v6282_v4  ;;  %4443 = vmatmul.msk.f32.gmra.mxu0 %vm331_vm0, %v9194_v26  ;;  %4475 = vmatmul.msk.f32.gmra.mxu1 %vm331_vm0, %v9194_v26  ;;  %v6296_v4 = vpop.f32.mrf.mxu2 }
 0x279   :  { %9195 = vst [vmem:[#allocation20_spill] sm:$0xff] %v6296_v4  ;;  %v4599_v3 = vpop.eup %4598  ;;  %v2460_v57 = vmul.f32 1.442695, %v2200_v30  ;;  %v2462_v55 = vmul.f32 1.442695, %v2201_v19  ;;  %1966 = vmax.xlane.f32.xlu1 %v1965_v61  ;;  %1972 = vmax.xlane.f32.xlu2 %v1971_v40  ;;  %v9201_v19 = vld [vmem:[#allocation52_spill] sm:$0xff] }
 0x27a   :  { %9196 = vst [vmem:[#allocation49_spill] sm:$0xff] %v6298_v22  ;;  %v4601_v59 = vpop.eup %4600  ;;  %1960 = vmax.xlane.f32.xlu0 %v1959_v2  ;;  %3348 = vmatpush.xpose.msra.mxu0 %v4599_v3 }
 0x27b   :  { %4602 = vpow2.f32 %v2460_v57  ;;  %3377 = vmatpush.xpose.msra.mxu1 %v4601_v59  ;;  %4503 = vmatmul.msk.f32.gmra.mxu2 %vm331_vm0, %v9197_v20  ;;  %v6302_v35 = vadd.f32 %v4601_v59, %v4599_v3  ;;  %v1974_v57 = vmax.f32 %v6028_v6, %v6030_v62  ;;  %v1980_v3 = vmax.f32 %v6068_v14, %v6070_v8 }
 0x27c   :  { %4604 = vpow2.f32 %v2462_v55  ;;  %4535 = vmatmul.msk.f32.gmra.mxu3 %vm331_vm0, %v9197_v20  ;;  %v1968_v55 = vmax.f32 %v5980_v18, %v5982_v60 }
 0x27d   :  { %9198 = vst [vmem:[#allocation85_spill] sm:$0xff] %v6302_v35  ;;  %v6306_v26 = vpop.f32.mrf.mxu0  ;;  %v6308_v30 = vpop.f32.mrf.mxu1 }
 0x27e   :  { %9199 = vst [vmem:[#allocation159_spill] sm:$0xff] %v6306_v26  ;;  %v6310_v61 = vpop.xlane.xlu1 %1864  ;;  %3349 = vmatpush.xpose.msra.mxu0 %v4595_v34  ;;  %v6312_v40 = vpop.xlane.xlu2 %1867 }
 0x27f   :  { %9200 = vst [vmem:[#allocation160_spill] sm:$0xff] %v6308_v30  ;;  %3378 = vmatpush.xpose.msra.mxu1 %v4597_v53  ;;  %v6326_v34 = vpop.f32.mrf.mxu3  ;;  %v9204_v53 = vld [vmem:[#allocation45_spill] sm:$0xff] }
 0x280   :  { %4444 = vmatmul.msk.f32.gmra.mxu0 %vm331_vm0, %v9201_v19  ;;  %4476 = vmatmul.msk.f32.gmra.mxu1 %vm331_vm0, %v9201_v19  ;;  %v6324_v2 = vpop.f32.mrf.mxu2  ;;  %9203 = vst [vmem:[#allocation161_spill] sm:$0xff] %v6326_v34  ;;  %v2214_v35 = vsub.f32 %v9204_v53, %v6086_v17 }
 0x281   :  { %9202 = vst [vmem:[#allocation52_spill] sm:$0xff] %v6324_v2  ;;  %v6328_v59 = vpop.eup %4602  ;;  %1975 = vmax.xlane.f32.xlu1 %v1974_v57  ;;  %1981 = vmax.xlane.f32.xlu2 %v1980_v3  ;;  %v9207_v57 = vld [vmem:[#allocation46_spill] sm:$0xff]  ;;  %v9212_v2 = vld [vmem:[#allocation55_spill] sm:$0xff] }
 0x282   :  { %v6330_v20 = vpop.eup %4604  ;;  %1969 = vmax.xlane.f32.xlu0 %v1968_v55  ;;  %3350 = vmatpush.xpose.msra.mxu0 %v6240_v54  ;;  %v2215_v3 = vsub.f32 %v9207_v57, %v6086_v17  ;;  %v9208_v54 = vld [vmem:[#allocation41_spill] sm:$0xff]  ;;  %v2488_v17 = vmul.f32 1.442695, %v2214_v35  ;;  %v1989_v57 = vmax.f32 %v6130_v12, %v6138_v11 }
 0x283   :  { %3379 = vmatpush.xpose.msra.mxu1 %v6242_v45  ;;  %4504 = vmatmul.msk.f32.gmra.mxu2 %vm331_vm0, %v9205_v5  ;;  %v6340_v19 = vadd.f32 %v6330_v20, %v6328_v59  ;;  %v2212_v55 = vsub.f32 %v9208_v54, %v6066_v39  ;;  %v9211_v45 = vld [vmem:[#allocation42_spill] sm:$0xff] }
 0x284   :  { %4536 = vmatmul.msk.f32.gmra.mxu3 %vm331_vm0, %v9205_v5  ;;  %v2213_v4 = vsub.f32 %v9211_v45, %v6066_v39  ;;  %v1983_v5 = vmax.f32 %v6088_v29, %v6092_v38  ;;  %v2490_v51 = vmul.f32 1.442695, %v2215_v3  ;;  %v1977_v39 = vmax.f32 %v6050_v33, %v6052_v44  ;;  %v9216_v44 = vld [vmem:[#allocation96_spill] sm:$0xff] }
 0x285   :  { %9206 = vst [vmem:[#allocation45_spill] sm:$0xff] %v6340_v19  ;;  %v6348_v49 = vpop.f32.mrf.mxu0  ;;  %v6350_v53 = vpop.f32.mrf.mxu1  ;;  %v2484_v35 = vmul.f32 1.442695, %v2212_v55  ;;  %4606 = vpow2.f32 %v2488_v17  ;;  %v9220_v17 = vld [vmem:[#allocation31_spill] sm:$0xff] }
 0x286   :  { %9209 = vst [vmem:[#allocation90_spill] sm:$0xff] %v6348_v49  ;;  %v6354_v22 = vpop.xlane.xlu1 %1870  ;;  %3351 = vmatpush.xpose.msra.mxu0 %v6208_v25  ;;  %v6357_v19 = vpop.xlane.xlu2 %1873  ;;  %v2486_v3 = vmul.f32 1.442695, %v2213_v4  ;;  %4608 = vpow2.f32 %v2490_v51 }
 0x287   :  { %9210 = vst [vmem:[#allocation46_spill] sm:$0xff] %v6350_v53  ;;  %3380 = vmatpush.xpose.msra.mxu1 %v6210_v63  ;;  %v1817_v54 = vpop.xlane.xlu0 %1816  ;;  %v6374_v63 = vpop.f32.mrf.mxu3  ;;  %4610 = vpow2.f32 %v2484_v35 }
 0x288   :  { %v2198_v45 = vsub.f32 %v5530_v15, %v1817_v54  ;;  %v2199_v25 = vsub.f32 %v5532_v16, %v1817_v54  ;;  %4445 = vmatmul.msk.f32.gmra.mxu0 %vm331_vm0, %v9212_v2  ;;  %4477 = vmatmul.msk.f32.gmra.mxu1 %vm331_vm0, %v9212_v2  ;;  %v6372_v34 = vpop.f32.mrf.mxu2  ;;  %9214 = vst [vmem:[#allocation42_spill] sm:$0xff] %v6374_v63  ;;  %v9215_v15 = vld [vmem:[#allocation36_spill] sm:$0xff]  ;;  %v9217_v2 = vld [vmem:[#allocation37_spill] sm:$0xff]  ;;  %4612 = vpow2.f32 %v2486_v3 }
 0x289   :  { %1984 = vmax.xlane.f32.xlu1 %v1983_v5  ;;  %1990 = vmax.xlane.f32.xlu2 %v1989_v57  ;;  %9213 = vst [vmem:[#allocation41_spill] sm:$0xff] %v6372_v34  ;;  %v2210_v16 = vsub.f32 %v9215_v15, %v6048_v50  ;;  %v2211_v55 = vsub.f32 %v9217_v2, %v6048_v50  ;;  %v9222_v15 = vld [vmem:[#allocation59_spill] sm:$0xff] }
 0x28a   :  { %1978 = vmax.xlane.f32.xlu0 %v1977_v39  ;;  %3352 = vmatpush.xpose.msra.mxu0 %v6178_v0  ;;  %v2456_v54 = vmul.f32 1.442695, %v2198_v45  ;;  %v2458_v5 = vmul.f32 1.442695, %v2199_v25  ;;  %v2208_v57 = vsub.f32 %v9220_v17, %v6026_v36  ;;  %v1992_v50 = vmax.f32 %v6160_v7, %v6168_v48  ;;  %v9221_v25 = vld [vmem:[#allocation32_spill] sm:$0xff] }
 0x28b   :  { %3381 = vmatpush.xpose.msra.mxu1 %v6180_v10  ;;  %4505 = vmatmul.msk.f32.gmra.mxu2 %vm331_vm0, %v9216_v44  ;;  %v2480_v51 = vmul.f32 1.442695, %v2210_v16  ;;  %v2209_v35 = vsub.f32 %v9221_v25, %v6026_v36  ;;  %v2482_v3 = vmul.f32 1.442695, %v2211_v55  ;;  %v6412_v16 = vpop.eup %4606  ;;  %v9229_v25 = vld [vmem:[#allocation26_spill] sm:$0xff] }
 0x28c   :  { %4537 = vmatmul.msk.f32.gmra.mxu3 %vm331_vm0, %v9216_v44  ;;  %v1998_v44 = vmax.f32 %v6224_v24, %v6232_v13  ;;  %4614 = vpow2.f32 %v2456_v54  ;;  %9223 = vst [vmem:[#allocation96_spill] sm:$0xff] %v6412_v16  ;;  %v6420_v55 = vpop.eup %4608  ;;  %v2206_v34 = vsub.f32 %v9229_v25, %v6002_v32  ;;  %v9239_v13 = vld [vmem:[#allocation65_spill] sm:$0xff] }
 0x28d   :  { %v6386_v0 = vpop.f32.mrf.mxu0  ;;  %v6388_v4 = vpop.f32.mrf.mxu1  ;;  %4616 = vpow2.f32 %v2458_v5  ;;  %9227 = vst [vmem:[#allocation32_spill] sm:$0xff] %v6420_v55  ;;  %v9228_v5 = vld [vmem:[#allocation24_spill] sm:$0xff] }
 0x28e   :  { %9218 = vst [vmem:[#allocation55_spill] sm:$0xff] %v6386_v0  ;;  %v6392_v10 = vpop.xlane.xlu1 %1876  ;;  %3353 = vmatpush.xpose.msra.mxu0 %v6146_v46  ;;  %v6395_v39 = vpop.xlane.xlu2 %1882  ;;  %v1986_v46 = vmax.f32 %v6108_v31, %v6116_v58  ;;  %v2205_v17 = vsub.f32 %v9228_v5, %v5978_v1  ;;  %v2476_v58 = vmul.f32 1.442695, %v2208_v57  ;;  %4618 = vpow2.f32 %v2480_v51 }
 0x28f   :  { %9219 = vst [vmem:[#allocation36_spill] sm:$0xff] %v6388_v4  ;;  %3382 = vmatpush.xpose.msra.mxu1 %v6148_v23  ;;  %v6402_v45 = vpop.xlane.xlu0 %1879  ;;  %v9224_v23 = vld [vmem:[#allocation23_spill] sm:$0xff]  ;;  %v6418_v36 = vpop.f32.mrf.mxu3  ;;  %4620 = vpow2.f32 %v2482_v3  ;;  %v2007_v3 = vmax.f32 %v6156_v27, %v6158_v42  ;;  %v9241_v27 = vld [vmem:[#allocation117_spill] sm:$0xff] }
 0x290   :  { %4446 = vmatmul.msk.f32.gmra.mxu0 %vm331_vm0, %v9222_v15  ;;  %4478 = vmatmul.msk.f32.gmra.mxu1 %vm331_vm0, %v9222_v15  ;;  %v2204_v54 = vsub.f32 %v9224_v23, %v5978_v1  ;;  %v6416_v2 = vpop.f32.mrf.mxu2  ;;  %9226 = vst [vmem:[#allocation31_spill] sm:$0xff] %v6418_v36  ;;  %v9230_v15 = vld [vmem:[#allocation27_spill] sm:$0xff]  ;;  %v2478_v1 = vmul.f32 1.442695, %v2209_v35  ;;  %v2470_v25 = vmul.f32 1.442695, %v2205_v17  ;;  %4622 = vpow2.f32 %v2476_v58 }
 0x291   :  { %1993 = vmax.xlane.f32.xlu1 %v1992_v50  ;;  %1999 = vmax.xlane.f32.xlu2 %v1998_v44  ;;  %9225 = vst [vmem:[#allocation37_spill] sm:$0xff] %v6416_v2  ;;  %v2207_v63 = vsub.f32 %v9230_v15, %v6002_v32  ;;  %v6429_v50 = vpop.eup %4610  ;;  %v9232_v44 = vld [vmem:[#allocation102_spill] sm:$0xff]  ;;  %v2472_v15 = vmul.f32 1.442695, %v2206_v34  ;;  %v9236_v58 = vld [vmem:[#allocation123_spill] sm:$0xff]  ;;  %v9237_v2 = vld [vmem:[#allocation120_spill] sm:$0xff] }
 0x292   :  { %1987 = vmax.xlane.f32.xlu0 %v1986_v46  ;;  %3354 = vmatpush.xpose.msra.mxu0 %v6412_v16  ;;  %9231 = vst [vmem:[#allocation59_spill] sm:$0xff] %v6429_v50  ;;  %v6434_v23 = vpop.eup %4612  ;;  %v2468_v57 = vmul.f32 1.442695, %v2204_v54  ;;  %v1995_v54 = vmax.f32 %v6192_v43, %v6200_v9  ;;  %4624 = vpow2.f32 %v2478_v1  ;;  %v9238_v36 = vld [vmem:[#allocation121_spill] sm:$0xff] }
 0x293   :  { %3383 = vmatpush.xpose.msra.mxu1 %v6420_v55  ;;  %4506 = vmatmul.msk.f32.gmra.mxu2 %vm331_vm0, %v9232_v44  ;;  %9233 = vst [vmem:[#allocation23_spill] sm:$0xff] %v6434_v23  ;;  %v6438_v32 = vpop.eup %4614  ;;  %v2474_v55 = vmul.f32 1.442695, %v2207_v63 }
 0x294   :  { %4538 = vmatmul.msk.f32.gmra.mxu3 %vm331_vm0, %v9232_v44  ;;  %v6444_v51 = vpop.eup %4616  ;;  %v2001_v44 = vmax.f32 %v6268_v47, %v6270_v28  ;;  %4626 = vpow2.f32 %v2468_v57  ;;  %v9248_v57 = vld [vmem:[#allocation108_spill] sm:$0xff] }
 0x295   :  { %v6440_v46 = vpop.f32.mrf.mxu0  ;;  %v6442_v5 = vpop.f32.mrf.mxu1  ;;  %4628 = vpow2.f32 %v2470_v25 }
 0x296   :  { %9234 = vst [vmem:[#allocation24_spill] sm:$0xff] %v6440_v46  ;;  %v6446_v16 = vpop.xlane.xlu1 %1885  ;;  %3355 = vmatpush.xpose.msra.mxu0 %v6429_v50  ;;  %v1892_v35 = vpop.xlane.xlu2 %1891  ;;  %4630 = vpow2.f32 %v2472_v15 }
 0x297   :  { %9235 = vst [vmem:[#allocation26_spill] sm:$0xff] %v6442_v5  ;;  %3384 = vmatpush.xpose.msra.mxu1 %v6434_v23  ;;  %v2248_v34 = vsub.f32 %v5998_v21, %v1892_v35  ;;  %v1889_v63 = vpop.xlane.xlu0 %1888  ;;  %v2249_v17 = vsub.f32 %v9236_v58, %v1892_v35  ;;  %v6464_v42 = vpop.eup %4618  ;;  %v9242_v23 = vld [vmem:[#allocation21_spill] sm:$0xff]  ;;  %4632 = vpow2.f32 %v2474_v55  ;;  %v9254_v55 = vld [vmem:[#allocation156_spill] sm:$0xff] }
 0x298   :  { %v2246_v50 = vsub.f32 %v9237_v2, %v1889_v63  ;;  %v2247_v31 = vsub.f32 %v9238_v36, %v1889_v63  ;;  %4447 = vmatmul.msk.f32.gmra.mxu0 %vm331_vm0, %v9239_v13  ;;  %4479 = vmatmul.msk.f32.gmra.mxu1 %vm331_vm0, %v9239_v13  ;;  %9240 = vst [vmem:[#allocation27_spill] sm:$0xff] %v6464_v42  ;;  %v6468_v1 = vpop.f32.mrf.mxu2  ;;  %v6470_v2 = vpop.f32.mrf.mxu3  ;;  %v9247_v13 = vld [vmem:[#allocation22_spill] sm:$0xff] }
 0x299   :  { %v2202_v9 = vsub.f32 %v9242_v23, %v9241_v27  ;;  %v2556_v21 = vmul.f32 1.442695, %v2248_v34  ;;  %2008 = vmax.xlane.f32.xlu2 %v2007_v3  ;;  %2002 = vmax.xlane.f32.xlu1 %v2001_v44  ;;  %9243 = vst [vmem:[#allocation102_spill] sm:$0xff] %v6468_v1  ;;  %v6474_v36 = vadd.f32 %v6444_v51, %v6438_v32  ;;  %v6476_v35 = vpop.eup %4620  ;;  %v2558_v58 = vmul.f32 1.442695, %v2249_v17 }
 0x29a   :  { %9244 = vst [vmem:[#allocation123_spill] sm:$0xff] %v6470_v2  ;;  %v2203_v63 = vsub.f32 %v9247_v13, %v9241_v27  ;;  %1996 = vmax.xlane.f32.xlu0 %v1995_v54  ;;  %3356 = vmatpush.xpose.msra.mxu0 %v6464_v42  ;;  %v2552_v23 = vmul.f32 1.442695, %v2246_v50  ;;  %v6484_v3 = vpop.eup %4622  ;;  %v2554_v44 = vmul.f32 1.442695, %v2247_v31  ;;  %v2010_v34 = vmax.f32 %v6188_v56, %v6190_v41  ;;  %v9258_v42 = vld [vmem:[#allocation145_spill] sm:$0xff] }
 0x29b   :  { %9245 = vst [vmem:[#allocation120_spill] sm:$0xff] %v6474_v36  ;;  %3385 = vmatpush.xpose.msra.mxu1 %v6476_v35  ;;  %4507 = vmatmul.msk.f32.gmra.mxu2 %vm331_vm0, %v9248_v57  ;;  %v2464_v27 = vmul.f32 1.442695, %v2202_v9  ;;  %4634 = vpow2.f32 %v2556_v21  ;;  %v6492_v15 = vpop.eup %4624  ;;  %v2016_v9 = vmax.f32 %v9254_v55, %v6254_v37  ;;  %v9255_v21 = vld [vmem:[#allocation127_spill] sm:$0xff]  ;;  %v9259_v36 = vld [vmem:[#allocation144_spill] sm:$0xff]  ;;  %v9260_v41 = vld [vmem:[#allocation69_spill] sm:$0xff] }
 0x29c   :  { %9246 = vst [vmem:[#allocation121_spill] sm:$0xff] %v6476_v35  ;;  %4539 = vmatmul.msk.f32.gmra.mxu3 %vm331_vm0, %v9248_v57  ;;  %v2466_v50 = vmul.f32 1.442695, %v2203_v63  ;;  %4636 = vpow2.f32 %v2558_v58  ;;  %v6497_v31 = vpop.eup %4626  ;;  %v9256_v57 = vld [vmem:[#allocation128_spill] sm:$0xff]  ;;  %v2004_v58 = vmax.f32 %v9259_v36, %v9258_v42  ;;  %v9272_v36 = vld [vmem:[#allocation18_spill] sm:$0xff] }
 0x29d   :  { %9249 = vst [vmem:[#allocation65_spill] sm:$0xff] %v6484_v3  ;;  %v6488_v25 = vpop.f32.mrf.mxu0  ;;  %v6490_v54 = vpop.f32.mrf.mxu1  ;;  %4638 = vpow2.f32 %v2552_v23 }
 0x29e   :  { %9250 = vst [vmem:[#allocation117_spill] sm:$0xff] %v6488_v25  ;;  %v1895_v17 = vpop.xlane.xlu1 %1894  ;;  %3357 = vmatpush.xpose.msra.mxu0 %v6484_v3  ;;  %v6504_v63 = vpop.eup %4628  ;;  %4640 = vpow2.f32 %v2554_v44 }
 0x29f   :  { %9251 = vst [vmem:[#allocation21_spill] sm:$0xff] %v6490_v54  ;;  %v2250_v13 = vsub.f32 %v9255_v21, %v1895_v17  ;;  %v2251_v35 = vsub.f32 %v9256_v57, %v1895_v17  ;;  %3386 = vmatpush.xpose.msra.mxu1 %v6492_v15  ;;  %v6512_v3 = vpop.eup %4630  ;;  %4642 = vpow2.f32 %v2464_v27  ;;  %v9265_v27 = vld [vmem:[#allocation114_spill] sm:$0xff] }
 0x2a0   :  { %9252 = vst [vmem:[#allocation22_spill] sm:$0xff] %v6492_v15  ;;  %4448 = vmatmul.msk.f32.gmra.mxu0 %vm331_vm0, %v9260_v41  ;;  %4480 = vmatmul.msk.f32.gmra.mxu1 %vm331_vm0, %v9260_v41  ;;  %v6514_v17 = vpop.eup %4632  ;;  %4644 = vpow2.f32 %v2466_v50  ;;  %v6520_v57 = vpop.f32.mrf.mxu2 }
 0x2a1   :  { %9253 = vst [vmem:[#allocation108_spill] sm:$0xff] %v6497_v31  ;;  %v2560_v23 = vmul.f32 1.442695, %v2250_v13  ;;  %v2562_v21 = vmul.f32 1.442695, %v2251_v35  ;;  %2017 = vmax.xlane.f32.xlu2 %v2016_v9  ;;  %2011 = vmax.xlane.f32.xlu1 %v2010_v34  ;;  %v6517_v44 = vpop.eup %4634  ;;  %v6522_v41 = vpop.f32.mrf.mxu3  ;;  %v9266_v9 = vld [vmem:[#allocation130_spill] sm:$0xff] }
 0x2a2   :  { %9257 = vst [vmem:[#allocation127_spill] sm:$0xff] %v6504_v63  ;;  %2005 = vmax.xlane.f32.xlu0 %v2004_v58  ;;  %3358 = vmatpush.xpose.msra.mxu0 %v6512_v3  ;;  %v6526_v35 = vpop.eup %4636  ;;  %v9267_v58 = vld [vmem:[#allocation131_spill] sm:$0xff] }
 0x2a3   :  { %9261 = vst [vmem:[#allocation128_spill] sm:$0xff] %v6512_v3  ;;  %4646 = vpow2.f32 %v2560_v23  ;;  %3387 = vmatpush.xpose.msra.mxu1 %v6514_v17  ;;  %4508 = vmatmul.msk.f32.gmra.mxu2 %vm331_vm0, %v9265_v27  ;;  %v6530_v50 = vpop.eup %4638  ;;  %v6540_v3 = vadd.f32 %v6526_v35, %v6517_v44 }
 0x2a4   :  { %9262 = vst [vmem:[#allocation69_spill] sm:$0xff] %v6514_v17  ;;  %4648 = vpow2.f32 %v2562_v21  ;;  %v1898_v34 = vpop.xlane.xlu0 %1897  ;;  %4540 = vmatmul.msk.f32.gmra.mxu3 %vm331_vm0, %v9265_v27  ;;  %v6542_v42 = vpop.eup %4640  ;;  %v9271_v21 = vld [vmem:[#allocation111_spill] sm:$0xff]  ;;  %v9273_v27 = vld [vmem:[#allocation40_spill] sm:$0xff] }
 0x2a5   :  { %9263 = vst [vmem:[#allocation162_spill] sm:$0xff] %v6520_v57  ;;  %v2252_v13 = vsub.f32 %v9266_v9, %v1898_v34  ;;  %v2253_v23 = vsub.f32 %v9267_v58, %v1898_v34  ;;  %v6534_v15 = vpop.f32.mrf.mxu0  ;;  %v6536_v17 = vpop.f32.mrf.mxu1  ;;  %v2196_v56 = vsub.f32 %v9272_v36, %v9271_v21  ;;  %v2019_v37 = vmax.f32 %v9273_v27, %v6280_v52  ;;  %v9277_v36 = vld [vmem:[#allocation19_spill] sm:$0xff]  ;;  %v9278_v27 = vld [vmem:[#allocation154_spill] sm:$0xff] }
 0x2a6   :  { %9264 = vst [vmem:[#allocation163_spill] sm:$0xff] %v6522_v41  ;;  %3359 = vmatpush.xpose.msra.mxu0 %v6497_v31  ;;  %v6549_v9 = vpop.eup %4642  ;;  %v2025_v34 = vmax.f32 %v6348_v49, %v6350_v53  ;;  %v2197_v52 = vsub.f32 %v9277_v36, %v9271_v21  ;;  %v9279_v31 = vld [vmem:[#allocation153_spill] sm:$0xff]  ;;  %v9280_v57 = vld [vmem:[#allocation74_spill] sm:$0xff] }
 0x2a7   :  { %9268 = vst [vmem:[#allocation114_spill] sm:$0xff] %v6534_v15  ;;  %v2564_v58 = vmul.f32 1.442695, %v2252_v13  ;;  %v2566_v55 = vmul.f32 1.442695, %v2253_v23  ;;  %3388 = vmatpush.xpose.msra.mxu1 %v6504_v63  ;;  %v6558_v1 = vpop.eup %4644  ;;  %v2013_v2 = vmax.f32 %v9279_v31, %v9278_v27  ;;  %v9283_v63 = vld [vmem:[#allocation122_spill] sm:$0xff] }
 0x2a8   :  { %9269 = vst [vmem:[#allocation130_spill] sm:$0xff] %v6536_v17  ;;  %4449 = vmatmul.msk.f32.gmra.mxu0 %vm331_vm0, %v9280_v57  ;;  %4481 = vmatmul.msk.f32.gmra.mxu1 %vm331_vm0, %v9280_v57  ;;  %v6574_v21 = vpop.f32.mrf.mxu2 }
 0x2a9   :  { %9270 = vst [vmem:[#allocation131_spill] sm:$0xff] %v6540_v3  ;;  %v6556_v3 = vadd.f32 %v6542_v42, %v6530_v50  ;;  %v6568_v13 = vpop.eup %4646  ;;  %4650 = vpow2.f32 %v2564_v58  ;;  %2026 = vmax.xlane.f32.xlu2 %v2025_v34  ;;  %2020 = vmax.xlane.f32.xlu1 %v2019_v37  ;;  %v6576_v36 = vpop.f32.mrf.mxu3  ;;  %v2454_v37 = vmul.f32 1.442695, %v2197_v52  ;;  %v2028_v52 = vmax.f32 %v6386_v0, %v6388_v4  ;;  %v9329_v4 = vld [vmem:[#allocation50_spill] sm:$0xff]  ;;  %v9330_v0 = vld [vmem:[#allocation51_spill] sm:$0xff] }
 0x2aa   :  { %9274 = vst [vmem:[#allocation111_spill] sm:$0xff] %v6549_v9  ;;  %v6570_v23 = vpop.eup %4648  ;;  %4652 = vpow2.f32 %v2566_v55  ;;  %2014 = vmax.xlane.f32.xlu0 %v2013_v2  ;;  %3360 = vmatpush.xpose.msra.mxu0 %v6549_v9  ;;  %v9286_v55 = vld [vmem:[#allocation134_spill] sm:$0xff] }
 0x2ab   :  { %9275 = vst [vmem:[#allocation18_spill] sm:$0xff] %v6556_v3  ;;  %v2452_v3 = vmul.f32 1.442695, %v2196_v56  ;;  %3389 = vmatpush.xpose.msra.mxu1 %v6558_v1  ;;  %4509 = vmatmul.msk.f32.gmra.mxu2 %vm331_vm0, %v9283_v63  ;;  %v6582_v57 = vadd.f32 %v6570_v23, %v6568_v13  ;;  %v9285_v56 = vld [vmem:[#allocation133_spill] sm:$0xff] }
 0x2ac   :  { %9276 = vst [vmem:[#allocation164_spill] sm:$0xff] %v6558_v1  ;;  %v1901_v34 = vpop.xlane.xlu2 %1900  ;;  %4541 = vmatmul.msk.f32.gmra.mxu3 %vm331_vm0, %v9283_v63 }
 0x2ad   :  { %9281 = vst [vmem:[#allocation19_spill] sm:$0xff] %v6574_v21  ;;  %v2254_v2 = vsub.f32 %v9285_v56, %v1901_v34  ;;  %v2255_v58 = vsub.f32 %v9286_v55, %v1901_v34  ;;  %v6588_v1 = vpop.f32.mrf.mxu0  ;;  %v6590_v9 = vpop.f32.mrf.mxu1  ;;  %4654 = vpow2.f32 %v2452_v3  ;;  %v2022_v3 = vmax.f32 %v6306_v26, %v6308_v30  ;;  %v9289_v56 = vld [vmem:[#allocation82_spill] sm:$0xff]  ;;  %v9328_v30 = vld [vmem:[#allocation57_spill] sm:$0xff] }
 0x2ae   :  { %9282 = vst [vmem:[#allocation74_spill] sm:$0xff] %v6576_v36  ;;  %3361 = vmatpush.xpose.msra.mxu0 %v6328_v59  ;;  %4656 = vpow2.f32 %v2454_v37  ;;  %v9311_v36 = vld [vmem:[#allocation97_spill] sm:$0xff] }
 0x2af   :  { %9284 = vst [vmem:[#allocation122_spill] sm:$0xff] %v6582_v57  ;;  %v6593_v27 = vpop.eup %4650  ;;  %v2034_v57 = vmax.f32 %v6488_v25, %v6490_v54  ;;  %v2568_v63 = vmul.f32 1.442695, %v2254_v2  ;;  %v2570_v31 = vmul.f32 1.442695, %v2255_v58  ;;  %3390 = vmatpush.xpose.msra.mxu1 %v6330_v20  ;;  %v9293_v2 = vld [vmem:[#allocation126_spill] sm:$0xff] }
 0x2b0   :  { %9287 = vst [vmem:[#allocation133_spill] sm:$0xff] %v6588_v1  ;;  %v6600_v34 = vpop.eup %4652  ;;  %4450 = vmatmul.msk.f32.gmra.mxu0 %vm331_vm0, %v9289_v56  ;;  %4482 = vmatmul.msk.f32.gmra.mxu1 %vm331_vm0, %v9289_v56  ;;  %v6614_v20 = vpop.f32.mrf.mxu2 }
 0x2b1   :  { %9288 = vst [vmem:[#allocation134_spill] sm:$0xff] %v6590_v9  ;;  %4658 = vpow2.f32 %v2568_v63  ;;  %2035 = vmax.xlane.f32.xlu2 %v2034_v57  ;;  %2029 = vmax.xlane.f32.xlu1 %v2028_v52  ;;  %v6610_v59 = vadd.f32 %v6600_v34, %v6593_v27  ;;  %v6616_v37 = vpop.f32.mrf.mxu3 }
 0x2b2   :  { %4660 = vpow2.f32 %v2570_v31  ;;  %2023 = vmax.xlane.f32.xlu0 %v2022_v3  ;;  %3362 = vmatpush.xpose.msra.mxu0 %v6438_v32  ;;  %9291 = vst [vmem:[#allocation165_spill] sm:$0xff] %v6614_v20  ;;  %v9296_v31 = vld [vmem:[#allocation136_spill] sm:$0xff]  ;;  %v9297_v32 = vld [vmem:[#allocation137_spill] sm:$0xff]  ;;  %v9301_v20 = vld [vmem:[#allocation91_spill] sm:$0xff] }
 0x2b3   :  { %9290 = vst [vmem:[#allocation82_spill] sm:$0xff] %v6610_v59  ;;  %3391 = vmatpush.xpose.msra.mxu1 %v6444_v51  ;;  %4510 = vmatmul.msk.f32.gmra.mxu2 %vm331_vm0, %v9293_v2  ;;  %v6620_v55 = vpop.eup %4654 }
 0x2b4   :  { %9292 = vst [vmem:[#allocation166_spill] sm:$0xff] %v6616_v37  ;;  %v6622_v57 = vpop.xlane.xlu2 %1909  ;;  %v1904_v58 = vpop.xlane.xlu1 %1903  ;;  %4542 = vmatmul.msk.f32.gmra.mxu3 %vm331_vm0, %v9293_v2  ;;  %v2037_v2 = vmax.f32 %v6534_v15, %v6536_v17  ;;  %v9305_v37 = vld [vmem:[#allocation129_spill] sm:$0xff]  ;;  %v9324_v17 = vld [vmem:[#allocation63_spill] sm:$0xff] }
 0x2b5   :  { %9294 = vst [vmem:[#allocation126_spill] sm:$0xff] %v6620_v55  ;;  %v2256_v52 = vsub.f32 %v9296_v31, %v1904_v58  ;;  %v2257_v63 = vsub.f32 %v9297_v32, %v1904_v58  ;;  %v6628_v51 = vpop.f32.mrf.mxu0  ;;  %v6630_v3 = vpop.f32.mrf.mxu1  ;;  %v2031_v31 = vmax.f32 %v6440_v46, %v6442_v5 }
 0x2b6   :  { %9295 = vst [vmem:[#allocation167_spill] sm:$0xff] %v6622_v57  ;;  %v6632_v56 = vpop.eup %4656  ;;  %v2043_v59 = vmax.f32 %v6628_v51, %v6630_v3  ;;  %3363 = vmatpush.xpose.msra.mxu0 %v6620_v55 }
 0x2b7   :  { %9298 = vst [vmem:[#allocation136_spill] sm:$0xff] %v6628_v51  ;;  %v6637_v53 = vpop.eup %4658  ;;  %v2572_v49 = vmul.f32 1.442695, %v2256_v52  ;;  %3392 = vmatpush.xpose.msra.mxu1 %v6632_v56  ;;  %v2574_v32 = vmul.f32 1.442695, %v2257_v63 }
 0x2b8   :  { %9299 = vst [vmem:[#allocation137_spill] sm:$0xff] %v6630_v3  ;;  %v6642_v58 = vpop.eup %4660  ;;  %4451 = vmatmul.msk.f32.gmra.mxu0 %vm331_vm0, %v9301_v20  ;;  %4483 = vmatmul.msk.f32.gmra.mxu1 %vm331_vm0, %v9301_v20  ;;  %v6654_v52 = vpop.f32.mrf.mxu2  ;;  %v9326_v3 = vld [vmem:[#allocation56_spill] sm:$0xff] }
 0x2b9   :  { %9300 = vst [vmem:[#allocation168_spill] sm:$0xff] %v6632_v56  ;;  %2044 = vmax.xlane.f32.xlu2 %v2043_v59  ;;  %2038 = vmax.xlane.f32.xlu1 %v2037_v2  ;;  %v6652_v55 = vadd.f32 %v6642_v58, %v6637_v53  ;;  %4662 = vpow2.f32 %v2572_v49  ;;  %v6656_v56 = vpop.f32.mrf.mxu3  ;;  %v9308_v2 = vld [vmem:[#allocation139_spill] sm:$0xff] }
 0x2ba   :  { %2032 = vmax.xlane.f32.xlu0 %v2031_v31  ;;  %9303 = vst [vmem:[#allocation169_spill] sm:$0xff] %v6654_v52  ;;  %4664 = vpow2.f32 %v2574_v32  ;;  %v9309_v31 = vld [vmem:[#allocation140_spill] sm:$0xff]  ;;  %v2040_v32 = vmax.f32 %v6588_v1, %v6590_v9 }
 0x2bb   :  { %9302 = vst [vmem:[#allocation91_spill] sm:$0xff] %v6652_v55  ;;  %4511 = vmatmul.msk.f32.gmra.mxu2 %vm331_vm0, %v9305_v37 }
 0x2bc   :  { %9304 = vst [vmem:[#allocation170_spill] sm:$0xff] %v6656_v56  ;;  %v6660_v63 = vpop.xlane.xlu2 %1918  ;;  %v6662_v21 = vpop.xlane.xlu1 %1912  ;;  %4543 = vmatmul.msk.f32.gmra.mxu3 %vm331_vm0, %v9305_v37 }
 0x2bd   :  { %9306 = vst [vmem:[#allocation129_spill] sm:$0xff] %v6662_v21  ;;  %v1907_v59 = vpop.xlane.xlu0 %1906  ;;  %v6666_v20 = vpop.f32.mrf.mxu0 }
 0x2be   :  { %9307 = vst [vmem:[#allocation171_spill] sm:$0xff] %v6666_v20  ;;  %v2258_v49 = vsub.f32 %v9308_v2, %v1907_v59  ;;  %v2259_v55 = vsub.f32 %v9309_v31, %v1907_v59  ;;  %v6670_v52 = vpop.f32.mrf.mxu1 }
 0x2bf   :  { %9310 = vst [vmem:[#allocation139_spill] sm:$0xff] %v6670_v52  ;;  %v2046_v56 = vmax.f32 %v6666_v20, %v6670_v52  ;;  %v4663_v37 = vpop.eup %4662  ;;  %v9314_v52 = vld [vmem:[#allocation135_spill] sm:$0xff] }
 0x2c0   :  { %4452 = vmatmul.msk.f32.gmra.mxu0 %vm331_vm0, %v9311_v36  ;;  %4484 = vmatmul.msk.f32.gmra.mxu1 %vm331_vm0, %v9311_v36  ;;  %v2576_v41 = vmul.f32 1.442695, %v2258_v49  ;;  %v4665_v2 = vpop.eup %4664  ;;  %v2578_v5 = vmul.f32 1.442695, %v2259_v55  ;;  %v6680_v59 = vpop.f32.mrf.mxu2 }
 0x2c1   :  { %2047 = vmax.xlane.f32.xlu1 %v2046_v56  ;;  %9312 = vst [vmem:[#allocation140_spill] sm:$0xff] %v6680_v59  ;;  %v6682_v31 = vpop.f32.mrf.mxu3  ;;  %v6686_v9 = vadd.f32 %v4665_v2, %v4663_v37  ;;  %v9320_v59 = vld [vmem:[#allocation103_spill] sm:$0xff] }
 0x2c2   :  { %2041 = vmax.xlane.f32.xlu0 %v2040_v32  ;;  %9313 = vst [vmem:[#allocation97_spill] sm:$0xff] %v6682_v31  ;;  %4666 = vpow2.f32 %v2576_v41  ;;  %v9319_v32 = vld [vmem:[#allocation109_spill] sm:$0xff] }
 0x2c3   :  { %4512 = vmatmul.msk.f32.gmra.mxu2 %vm331_vm0, %v9314_v52  ;;  %9315 = vst [vmem:[#allocation135_spill] sm:$0xff] %v6686_v9  ;;  %4668 = vpow2.f32 %v2578_v5  ;;  %v2242_v9 = vsub.f32 %v9319_v32, %v6395_v39  ;;  %v9323_v5 = vld [vmem:[#allocation138_spill] sm:$0xff] }
 0x2c4   :  { %v6688_v1 = vpop.xlane.xlu2 %1927  ;;  %v6690_v20 = vpop.xlane.xlu1 %1921  ;;  %4544 = vmatmul.msk.f32.gmra.mxu3 %vm331_vm0, %v9314_v52 }
 0x2c5   :  { %v6694_v36 = vpop.xlane.xlu0 %1915  ;;  %v6696_v55 = vpop.f32.mrf.mxu0 }
 0x2c6   :  { %9316 = vst [vmem:[#allocation172_spill] sm:$0xff] %v6694_v36  ;;  %v6698_v56 = vpop.f32.mrf.mxu1 }
 0x2c7   :  { %9317 = vst [vmem:[#allocation173_spill] sm:$0xff] %v6696_v55  ;;  %v2049_v49 = vmax.f32 %v6696_v55, %v6698_v56 }
 0x2c8   :  { %9318 = vst [vmem:[#allocation174_spill] sm:$0xff] %v6698_v56  ;;  %4453 = vmatmul.msk.f32.gmra.mxu0 %vm331_vm0, %v9320_v59  ;;  %4485 = vmatmul.msk.f32.gmra.mxu1 %vm331_vm0, %v9320_v59  ;;  %v4667_v41 = vpop.eup %4666  ;;  %v6708_v52 = vpop.f32.mrf.mxu2  ;;  %v2544_v56 = vmul.f32 1.442695, %v2242_v9 }
 0x2c9   :  { %9321 = vst [vmem:[#allocation109_spill] sm:$0xff] %v6708_v52  ;;  %v6710_v31 = vpop.f32.mrf.mxu3  ;;  %v4669_v46 = vpop.eup %4668  ;;  %3406 = vmatpush.xpose.msra.mxu2 %v4667_v41 }
 0x2ca   :  { %2050 = vmax.xlane.f32.xlu0 %v2049_v49  ;;  %9322 = vst [vmem:[#allocation103_spill] sm:$0xff] %v6710_v31  ;;  %3435 = vmatpush.xpose.msra.mxu3 %v4669_v46  ;;  %v9325_v49 = vld [vmem:[#allocation64_spill] sm:$0xff]  ;;  %4670 = vpow2.f32 %v2544_v56  ;;  %v6730_v36 = vadd.f32 %v4669_v46, %v4667_v41 }
 0x2cb   :  { %4513 = vmatmul.msk.f32.gmra.mxu2 %vm331_vm0, %v9323_v5 }
 0x2cc   :  { %v1937_v55 = vpop.xlane.xlu2 %1936  ;;  %v1931_v32 = vpop.xlane.xlu1 %1930  ;;  %4545 = vmatmul.msk.f32.gmra.mxu3 %vm331_vm0, %v9323_v5  ;;  %9333 = vst [vmem:[#allocation64_spill] sm:$0xff] %v6730_v36 }
 0x2cd   :  { %v2278_v59 = vsub.f32 %v9324_v17, %v1937_v55  ;;  %v2279_v15 = vsub.f32 %v9325_v49, %v1937_v55  ;;  %v2274_v52 = vsub.f32 %v9326_v3, %v1931_v32  ;;  %v1925_v51 = vpop.xlane.xlu0 %1924  ;;  %v6719_v31 = vpop.f32.mrf.mxu0  ;;  %v2275_v26 = vsub.f32 %v9328_v30, %v1931_v32  ;;  %v9332_v3 = vld [vmem:[#allocation115_spill] sm:$0xff]  ;;  %3407 = vmatpush.xpose.msra.mxu2 %v4663_v37 }
 0x2ce   :  { %9327 = vst [vmem:[#allocation138_spill] sm:$0xff] %v6719_v31  ;;  %v2270_v9 = vsub.f32 %v9329_v4, %v1925_v51  ;;  %v2271_v54 = vsub.f32 %v9330_v0, %v1925_v51  ;;  %v6724_v25 = vpop.f32.mrf.mxu1  ;;  %v2244_v55 = vsub.f32 %v9332_v3, %v6446_v16  ;;  %3436 = vmatpush.xpose.msra.mxu3 %v4665_v2  ;;  %v9336_v51 = vld [vmem:[#allocation143_spill] sm:$0xff]  ;;  %v9344_v3 = vld [vmem:[#allocation61_spill] sm:$0xff] }
 0x2cf   :  { %9331 = vst [vmem:[#allocation63_spill] sm:$0xff] %v6724_v25  ;;  %v2616_v57 = vmul.f32 1.442695, %v2278_v59  ;;  %v2618_v5 = vmul.f32 1.442695, %v2279_v15  ;;  %v2052_v17 = vmax.f32 %v6719_v31, %v6724_v25  ;;  %v9339_v2 = vld [vmem:[#allocation67_spill] sm:$0xff] }
 0x2d0   :  { %v2608_v21 = vmul.f32 1.442695, %v2274_v52  ;;  %v2610_v49 = vmul.f32 1.442695, %v2275_v26  ;;  %v2600_v30 = vmul.f32 1.442695, %v2270_v9  ;;  %v6732_v4 = vpop.f32.mrf.mxu2  ;;  %v6747_v59 = vpop.eup %4670 }
 0x2d1   :  { %4672 = vpow2.f32 %v2616_v57  ;;  %2053 = vmax.xlane.f32.xlu2 %v2052_v17  ;;  %v2602_v0 = vmul.f32 1.442695, %v2271_v54  ;;  %9334 = vst [vmem:[#allocation56_spill] sm:$0xff] %v6732_v4  ;;  %v6734_v15 = vpop.f32.mrf.mxu3  ;;  %v2548_v56 = vmul.f32 1.442695, %v2244_v55  ;;  %3408 = vmatpush.xpose.msra.mxu2 %v6637_v53  ;;  %v9337_v54 = vld [vmem:[#allocation77_spill] sm:$0xff] }
 0x2d2   :  { %4674 = vpow2.f32 %v2618_v5  ;;  %9335 = vst [vmem:[#allocation57_spill] sm:$0xff] %v6734_v15  ;;  %3437 = vmatpush.xpose.msra.mxu3 %v6642_v58  ;;  %v9338_v57 = vld [vmem:[#allocation78_spill] sm:$0xff]  ;;  %v9342_v53 = vld [vmem:[#allocation68_spill] sm:$0xff]  ;;  %v9379_v4 = vld [vmem:[#allocation75_spill] sm:$0xff] }
 0x2d3   :  { %4676 = vpow2.f32 %v2608_v21  ;;  %4514 = vmatmul.msk.f32.gmra.mxu2 %vm331_vm0, %v9336_v51  ;;  %9341 = vst [vmem:[#allocation51_spill] sm:$0xff] %v6747_v59  ;;  %v9343_v5 = vld [vmem:[#allocation60_spill] sm:$0xff] }
 0x2d4   :  { %4678 = vpow2.f32 %v2610_v49  ;;  %v1946_v26 = vpop.xlane.xlu2 %1945  ;;  %v1940_v46 = vpop.xlane.xlu1 %1939  ;;  %4546 = vmatmul.msk.f32.gmra.mxu3 %vm331_vm0, %v9336_v51 }
 0x2d5   :  { %4680 = vpow2.f32 %v2600_v30  ;;  %v2284_v21 = vsub.f32 %v9337_v54, %v1946_v26  ;;  %v2285_v37 = vsub.f32 %v9338_v57, %v1946_v26  ;;  %v2280_v41 = vsub.f32 %v9339_v2, %v1940_v46  ;;  %v1934_v52 = vpop.xlane.xlu0 %1933  ;;  %v6745_v32 = vpop.f32.mrf.mxu0  ;;  %3409 = vmatpush.xpose.msra.mxu2 %v6593_v27 }
 0x2d6   :  { %9340 = vst [vmem:[#allocation50_spill] sm:$0xff] %v6745_v32  ;;  %4682 = vpow2.f32 %v2602_v0  ;;  %v2281_v9 = vsub.f32 %v9342_v53, %v1940_v46  ;;  %v2276_v17 = vsub.f32 %v9343_v5, %v1934_v52  ;;  %v2277_v55 = vsub.f32 %v9344_v3, %v1934_v52  ;;  %v6752_v49 = vpop.f32.mrf.mxu1  ;;  %v9346_v0 = vld [vmem:[#allocation116_spill] sm:$0xff]  ;;  %3438 = vmatpush.xpose.msra.mxu3 %v6600_v34 }
 0x2d7   :  { %9345 = vst [vmem:[#allocation115_spill] sm:$0xff] %v6752_v49  ;;  %v6754_v58 = vpop.eup %4672  ;;  %v2628_v30 = vmul.f32 1.442695, %v2284_v21  ;;  %v2630_v51 = vmul.f32 1.442695, %v2285_v37  ;;  %v2055_v54 = vmax.f32 %v6745_v32, %v6752_v49  ;;  %v2245_v2 = vsub.f32 %v9346_v0, %v6446_v16  ;;  %v9354_v0 = vld [vmem:[#allocation95_spill] sm:$0xff] }
 0x2d8   :  { %v2620_v26 = vmul.f32 1.442695, %v2280_v41  ;;  %v6758_v57 = vpop.eup %4674  ;;  %4684 = vpow2.f32 %v2548_v56  ;;  %v2622_v46 = vmul.f32 1.442695, %v2281_v9  ;;  %v2612_v21 = vmul.f32 1.442695, %v2276_v17  ;;  %v6774_v56 = vpop.f32.mrf.mxu2 }
 0x2d9   :  { %v6763_v52 = vpop.eup %4676  ;;  %4686 = vpow2.f32 %v2628_v30  ;;  %2056 = vmax.xlane.f32.xlu1 %v2055_v54  ;;  %v6768_v37 = vadd.f32 %v6758_v57, %v6754_v58  ;;  %v2614_v53 = vmul.f32 1.442695, %v2277_v55  ;;  %9348 = vst [vmem:[#allocation77_spill] sm:$0xff] %v6774_v56  ;;  %v6776_v27 = vpop.f32.mrf.mxu3  ;;  %v9350_v9 = vld [vmem:[#allocation25_spill] sm:$0xff]  ;;  %v9352_v17 = vld [vmem:[#allocation110_spill] sm:$0xff]  ;;  %3410 = vmatpush.xpose.msra.mxu2 %v6568_v13  ;;  %v9358_v13 = vld [vmem:[#allocation84_spill] sm:$0xff] }
 0x2da   :  { %v6770_v41 = vpop.eup %4678  ;;  %4688 = vpow2.f32 %v2630_v51  ;;  %9349 = vst [vmem:[#allocation78_spill] sm:$0xff] %v6776_v27  ;;  %v2243_v3 = vsub.f32 %v9352_v17, %v6395_v39  ;;  %v2550_v55 = vmul.f32 1.442695, %v2245_v2  ;;  %3439 = vmatpush.xpose.msra.mxu3 %v6570_v23  ;;  %v9359_v17 = vld [vmem:[#allocation72_spill] sm:$0xff]  ;;  %v9377_v56 = vld [vmem:[#allocation158_spill] sm:$0xff] }
 0x2db   :  { %9347 = vst [vmem:[#allocation143_spill] sm:$0xff] %v6768_v37  ;;  %v6772_v16 = vpop.eup %4680  ;;  %4690 = vpow2.f32 %v2620_v26  ;;  %4515 = vmatmul.msk.f32.gmra.mxu2 %vm331_vm0, %v9350_v9  ;;  %v6782_v34 = vadd.f32 %v6770_v41, %v6763_v52  ;;  %v9353_v26 = vld [vmem:[#allocation94_spill] sm:$0xff] }
 0x2dc   :  { %v6784_v5 = vpop.eup %4682  ;;  %4692 = vpow2.f32 %v2622_v46  ;;  %v1955_v30 = vpop.xlane.xlu2 %1954  ;;  %4547 = vmatmul.msk.f32.gmra.mxu3 %vm331_vm0, %v9350_v9  ;;  %v9360_v9 = vld [vmem:[#allocation73_spill] sm:$0xff] }
 0x2dd   :  { %9351 = vst [vmem:[#allocation67_spill] sm:$0xff] %v6782_v34  ;;  %v1949_v51 = vpop.xlane.xlu1 %1948  ;;  %4694 = vpow2.f32 %v2612_v21  ;;  %v2290_v54 = vsub.f32 %v9353_v26, %v1955_v30  ;;  %v2291_v37 = vsub.f32 %v9354_v0, %v1955_v30  ;;  %v9355_v34 = vld [vmem:[#allocation83_spill] sm:$0xff]  ;;  %v1943_v49 = vpop.xlane.xlu0 %1942  ;;  %3411 = vmatpush.xpose.msra.mxu2 %v6517_v44  ;;  %v9365_v44 = vld [vmem:[#allocation105_spill] sm:$0xff] }
 0x2de   :  { %v2286_v36 = vsub.f32 %v9355_v34, %v1949_v51  ;;  %v6795_v39 = vpop.f32.mrf.mxu0  ;;  %v6797_v2 = vpop.eup %4684  ;;  %4696 = vpow2.f32 %v2614_v53  ;;  %v2287_v46 = vsub.f32 %v9358_v13, %v1949_v51  ;;  %v2282_v32 = vsub.f32 %v9359_v17, %v1943_v49  ;;  %3440 = vmatpush.xpose.msra.mxu3 %v6526_v35 }
 0x2df   :  { %9356 = vst [vmem:[#allocation68_spill] sm:$0xff] %v6795_v39  ;;  %v2283_v21 = vsub.f32 %v9360_v9, %v1943_v49  ;;  %v6802_v25 = vpop.f32.mrf.mxu1  ;;  %v6804_v23 = vpop.eup %4686  ;;  %v2640_v26 = vmul.f32 1.442695, %v2290_v54  ;;  %v2642_v30 = vmul.f32 1.442695, %v2291_v37  ;;  %4698 = vpow2.f32 %v2550_v55  ;;  %v9363_v54 = vld [vmem:[#allocation104_spill] sm:$0xff] }
 0x2e0   :  { %9357 = vst [vmem:[#allocation60_spill] sm:$0xff] %v6797_v2  ;;  %v2632_v0 = vmul.f32 1.442695, %v2286_v36  ;;  %v2058_v34 = vmax.f32 %v6795_v39, %v6802_v25  ;;  %v6808_v31 = vpop.eup %4688  ;;  %v2634_v53 = vmul.f32 1.442695, %v2287_v46  ;;  %v6813_v51 = vadd.f32 %v6784_v5, %v6772_v16  ;;  %v6832_v35 = vpop.f32.mrf.mxu2 }
 0x2e1   :  { %9361 = vst [vmem:[#allocation61_spill] sm:$0xff] %v6802_v25  ;;  %v6815_v49 = vpop.eup %4690  ;;  %v2546_v13 = vmul.f32 1.442695, %v2243_v3  ;;  %v2240_v37 = vsub.f32 %v9363_v54, %v6402_v45  ;;  %4700 = vpow2.f32 %v2640_v26  ;;  %v6822_v36 = vadd.f32 %v6808_v31, %v6804_v23  ;;  %v9366_v3 = vld [vmem:[#allocation98_spill] sm:$0xff]  ;;  %3412 = vmatpush.xpose.msra.mxu2 %v6530_v50 }
 0x2e2   :  { %9362 = vst [vmem:[#allocation116_spill] sm:$0xff] %v6813_v51  ;;  %2059 = vmax.xlane.f32.xlu0 %v2058_v34  ;;  %v6824_v55 = vpop.eup %4692  ;;  %v2241_v46 = vsub.f32 %v9365_v44, %v6402_v45  ;;  %4702 = vpow2.f32 %v2642_v30  ;;  %v2624_v17 = vmul.f32 1.442695, %v2282_v32  ;;  %v2238_v54 = vsub.f32 %v9366_v3, %v6392_v10  ;;  %v6834_v34 = vpop.f32.mrf.mxu3  ;;  %v9369_v51 = vld [vmem:[#allocation30_spill] sm:$0xff]  ;;  %v9371_v32 = vld [vmem:[#allocation99_spill] sm:$0xff]  ;;  %3441 = vmatpush.xpose.msra.mxu3 %v6542_v42 }
 0x2e3   :  { %9364 = vst [vmem:[#allocation25_spill] sm:$0xff] %v6822_v36  ;;  %v6828_v9 = vpop.eup %4694  ;;  %4704 = vpow2.f32 %v2632_v0  ;;  %v2626_v26 = vmul.f32 1.442695, %v2283_v21  ;;  %4516 = vmatmul.msk.f32.gmra.mxu2 %vm331_vm0, %v9369_v51  ;;  %v6840_v36 = vadd.f32 %v6824_v55, %v6815_v49  ;;  %v2239_v30 = vsub.f32 %v9371_v32, %v6392_v10  ;;  %v9375_v32 = vld [vmem:[#allocation89_spill] sm:$0xff] }
 0x2e4   :  { %9367 = vst [vmem:[#allocation110_spill] sm:$0xff] %v6832_v35  ;;  %v6842_v45 = vpop.eup %4696  ;;  %4706 = vpow2.f32 %v2634_v53  ;;  %v6849_v0 = vpop.xlane.xlu2 %1963  ;;  %4548 = vmatmul.msk.f32.gmra.mxu3 %vm331_vm0, %v9369_v51  ;;  %v2540_v44 = vmul.f32 1.442695, %v2240_v37  ;;  %v2542_v10 = vmul.f32 1.442695, %v2241_v46  ;;  %v9374_v53 = vld [vmem:[#allocation88_spill] sm:$0xff]  ;;  %v2230_v46 = vsub.f32 %v9379_v4, %v6310_v61 }
 0x2e5   :  { %9368 = vst [vmem:[#allocation94_spill] sm:$0xff] %v6834_v34  ;;  %v6847_v21 = vpop.xlane.xlu1 %1957  ;;  %4708 = vpow2.f32 %v2546_v13  ;;  %v1952_v3 = vpop.xlane.xlu0 %1951  ;;  %v9378_v51 = vld [vmem:[#allocation70_spill] sm:$0xff]  ;;  %v2536_v37 = vmul.f32 1.442695, %v2238_v54  ;;  %3413 = vmatpush.xpose.msra.mxu2 %v6797_v2  ;;  %v9381_v54 = vld [vmem:[#allocation92_spill] sm:$0xff] }
 0x2e6   :  { %9370 = vst [vmem:[#allocation95_spill] sm:$0xff] %v6840_v36  ;;  %v6854_v36 = vpop.f32.mrf.mxu0  ;;  %v6856_v25 = vpop.eup %4698  ;;  %4710 = vpow2.f32 %v2624_v17  ;;  %v2288_v50 = vsub.f32 %v9374_v53, %v1952_v3  ;;  %v2289_v39 = vsub.f32 %v9375_v32, %v1952_v3  ;;  %v2228_v13 = vsub.f32 %v9378_v51, %v9377_v56 }
 0x2e7   :  { %9372 = vst [vmem:[#allocation83_spill] sm:$0xff] %v6854_v36  ;;  %v6860_v35 = vpop.f32.mrf.mxu1  ;;  %v4701_v34 = vpop.eup %4700  ;;  %4712 = vpow2.f32 %v2626_v26  ;;  %v2538_v17 = vmul.f32 1.442695, %v2239_v30  ;;  %v6871_v3 = vadd.f32 %v6842_v45, %v6828_v9  ;;  %v2236_v26 = vsub.f32 %v9381_v54, %v6357_v19  ;;  %3442 = vmatpush.xpose.msra.mxu3 %v6856_v25  ;;  %v9383_v30 = vld [vmem:[#allocation93_spill] sm:$0xff]  ;;  %v9385_v54 = vld [vmem:[#allocation76_spill] sm:$0xff] }
 0x2e8   :  { %9373 = vst [vmem:[#allocation84_spill] sm:$0xff] %v6856_v25  ;;  %v2061_v42 = vmax.f32 %v6854_v36, %v6860_v35  ;;  %v4703_v27 = vpop.eup %4702  ;;  %3464 = vmatpush.xpose.msrb.mxu0 %v4701_v34  ;;  %4714 = vpow2.f32 %v2540_v44  ;;  %v2636_v32 = vmul.f32 1.442695, %v2288_v50  ;;  %v2638_v36 = vmul.f32 1.442695, %v2289_v39  ;;  %v6888_v25 = vpop.f32.mrf.mxu2 }
 0x2e9   :  { %9376 = vst [vmem:[#allocation72_spill] sm:$0xff] %v6860_v35  ;;  %v6873_v53 = vpop.eup %4704  ;;  %3493 = vmatpush.xpose.msrb.mxu1 %v4703_v27  ;;  %v6878_v51 = vadd.f32 %v4703_v27, %v4701_v34  ;;  %v2237_v35 = vsub.f32 %v9383_v30, %v6357_v19  ;;  %4716 = vpow2.f32 %v2542_v10  ;;  %v2516_v2 = vmul.f32 1.442695, %v2228_v13  ;;  %v9388_v27 = vld [vmem:[#allocation155_spill] sm:$0xff]  ;;  %v9390_v10 = vld [vmem:[#allocation80_spill] sm:$0xff]  ;;  %3414 = vmatpush.xpose.msra.mxu2 %v6747_v59  ;;  %v9391_v30 = vld [vmem:[#allocation86_spill] sm:$0xff] }
 0x2ea   :  { %9380 = vst [vmem:[#allocation73_spill] sm:$0xff] %v6871_v3  ;;  %v6880_v4 = vpop.eup %4706  ;;  %2062 = vmax.xlane.f32.xlu2 %v2061_v42  ;;  %v2231_v44 = vsub.f32 %v9385_v54, %v6310_v61  ;;  %4718 = vpow2.f32 %v2536_v37  ;;  %v6890_v50 = vpop.f32.mrf.mxu3  ;;  %v2520_v34 = vmul.f32 1.442695, %v2230_v46  ;;  %v2232_v13 = vsub.f32 %v9390_v10, %v6312_v40  ;;  %v9393_v10 = vld [vmem:[#allocation87_spill] sm:$0xff] }
 0x2eb   :  { %9382 = vst [vmem:[#allocation104_spill] sm:$0xff] %v6878_v51  ;;  %v6884_v3 = vpop.eup %4708  ;;  %4517 = vmatmul.msk.f32.gmra.mxu2 %vm331_vm0, %v9388_v27  ;;  %v6896_v19 = vadd.f32 %v6880_v4, %v6873_v53  ;;  %4720 = vpow2.f32 %v2538_v17  ;;  %v2234_v54 = vsub.f32 %v9391_v30, %v6354_v22  ;;  %v2532_v51 = vmul.f32 1.442695, %v2236_v26  ;;  %v9397_v30 = vld [vmem:[#allocation81_spill] sm:$0xff] }
 0x2ec   :  { %9384 = vst [vmem:[#allocation105_spill] sm:$0xff] %v6884_v3  ;;  %v6898_v39 = vpop.eup %4710  ;;  %v6905_v37 = vpop.xlane.xlu2 %1972  ;;  %4549 = vmatmul.msk.f32.gmra.mxu3 %vm331_vm0, %v9388_v27  ;;  %4722 = vpow2.f32 %v2636_v32  ;;  %v2534_v59 = vmul.f32 1.442695, %v2237_v35  ;;  %v2524_v15 = vmul.f32 1.442695, %v2232_v13 }
 0x2ed   :  { %9386 = vst [vmem:[#allocation98_spill] sm:$0xff] %v6888_v25  ;;  %v6903_v61 = vpop.xlane.xlu1 %1966  ;;  %v6909_v42 = vpop.eup %4712  ;;  %3443 = vmatpush.xpose.msra.mxu3 %v6884_v3  ;;  %4724 = vpow2.f32 %v2638_v36  ;;  %v2233_v3 = vsub.f32 %v9397_v30, %v6312_v40 }
 0x2ee   :  { %9387 = vst [vmem:[#allocation30_spill] sm:$0xff] %v6890_v50  ;;  %v6914_v46 = vpop.xlane.xlu0 %1960  ;;  %v6916_v17 = vpop.f32.mrf.mxu0  ;;  %4726 = vpow2.f32 %v2516_v2  ;;  %v2522_v50 = vmul.f32 1.442695, %v2231_v44  ;;  %v2528_v2 = vmul.f32 1.442695, %v2234_v54 }
 0x2ef   :  { %9389 = vst [vmem:[#allocation99_spill] sm:$0xff] %v6896_v19  ;;  %v2235_v19 = vsub.f32 %v9393_v10, %v6354_v22  ;;  %v6920_v25 = vpop.f32.mrf.mxu1  ;;  %v6922_v27 = vpop.eup %4714  ;;  %4728 = vpow2.f32 %v2520_v34  ;;  %v6933_v22 = vadd.f32 %v6909_v42, %v6898_v39  ;;  %v2526_v30 = vmul.f32 1.442695, %v2233_v3 }
 0x2f0   :  { %9392 = vst [vmem:[#allocation88_spill] sm:$0xff] %v6916_v17  ;;  %v2064_v26 = vmax.f32 %v6916_v17, %v6920_v25  ;;  %v6926_v32 = vpop.eup %4716  ;;  %3415 = vmatpush.xpose.msra.mxu2 %v6922_v27  ;;  %4730 = vpow2.f32 %v2532_v51  ;;  %v6940_v40 = vpop.f32.mrf.mxu2 }
 0x2f1   :  { %9394 = vst [vmem:[#allocation89_spill] sm:$0xff] %v6920_v25  ;;  %v6935_v36 = vpop.eup %4718  ;;  %3444 = vmatpush.xpose.msra.mxu3 %v6926_v32  ;;  %v2530_v44 = vmul.f32 1.442695, %v2235_v19  ;;  %4732 = vpow2.f32 %v2534_v59 }
 0x2f2   :  { %9395 = vst [vmem:[#allocation158_spill] sm:$0xff] %v6922_v27  ;;  %2065 = vmax.xlane.f32.xlu1 %v2064_v26  ;;  %v6938_v35 = vpop.eup %4720  ;;  %4734 = vpow2.f32 %v2522_v50  ;;  %v6942_v13 = vpop.f32.mrf.mxu3 }
 0x2f3   :  { %9396 = vst [vmem:[#allocation70_spill] sm:$0xff] %v6926_v32  ;;  %v4723_v34 = vpop.eup %4722  ;;  %4736 = vpow2.f32 %v2524_v15 }
 0x2f4   :  { %9398 = vst [vmem:[#allocation75_spill] sm:$0xff] %v6933_v22  ;;  %v4725_v10 = vpop.eup %4724  ;;  %3416 = vmatpush.xpose.msra.mxu2 %v6935_v36  ;;  %3465 = vmatpush.xpose.msrb.mxu0 %v4723_v34  ;;  %v1982_v54 = vpop.xlane.xlu2 %1981  ;;  %4738 = vpow2.f32 %v2528_v2 }
 0x2f5   :  { %9399 = vst [vmem:[#allocation92_spill] sm:$0xff] %v6935_v36  ;;  %v1976_v51 = vpop.xlane.xlu1 %1975  ;;  %v6945_v22 = vpop.eup %4726  ;;  %3445 = vmatpush.xpose.msra.mxu3 %v6938_v35  ;;  %3494 = vmatpush.xpose.msrb.mxu1 %v4725_v10  ;;  %v2308_v19 = vsub.f32 %v6068_v14, %v1982_v54  ;;  %4740 = vpow2.f32 %v2530_v44  ;;  %v2309_v25 = vsub.f32 %v6070_v8, %v1982_v54  ;;  %v9407_v44 = vld [vmem:[#allocation71_spill] sm:$0xff] }
 0x2f6   :  { %9400 = vst [vmem:[#allocation93_spill] sm:$0xff] %v6938_v35  ;;  %v2304_v59 = vsub.f32 %v6028_v6, %v1976_v51  ;;  %v2305_v50 = vsub.f32 %v6030_v62, %v1976_v51  ;;  %v1970_v26 = vpop.xlane.xlu0 %1969  ;;  %v6951_v15 = vpop.f32.mrf.mxu0  ;;  %v2229_v36 = vsub.f32 %v9407_v44, %v9377_v56  ;;  %4742 = vpow2.f32 %v2526_v30 }
 0x2f7   :  { %9401 = vst [vmem:[#allocation76_spill] sm:$0xff] %v6945_v22  ;;  %v6953_v3 = vpop.eup %4728  ;;  %v2300_v17 = vsub.f32 %v5980_v18, %v1970_v26  ;;  %v2301_v2 = vsub.f32 %v5982_v60, %v1970_v26  ;;  %v6958_v32 = vpop.f32.mrf.mxu1  ;;  %v2676_v51 = vmul.f32 1.442695, %v2308_v19  ;;  %v2678_v8 = vmul.f32 1.442695, %v2309_v25 }
 0x2f8   :  { %9402 = vst [vmem:[#allocation155_spill] sm:$0xff] %v6951_v15  ;;  %v6960_v27 = vpop.eup %4730  ;;  %v2668_v6 = vmul.f32 1.442695, %v2304_v59  ;;  %v2670_v62 = vmul.f32 1.442695, %v2305_v50  ;;  %v2067_v14 = vmax.f32 %v6951_v15, %v6958_v32  ;;  %3466 = vmatpush.xpose.msrb.mxu0 %v6873_v53  ;;  %v6970_v60 = vadd.f32 %v4725_v10, %v4723_v34  ;;  %v6980_v30 = vpop.f32.mrf.mxu2 }
 0x2f9   :  { %9403 = vst [vmem:[#allocation80_spill] sm:$0xff] %v6953_v3  ;;  %v6964_v35 = vpop.eup %4732  ;;  %3417 = vmatpush.xpose.msra.mxu2 %v6960_v27  ;;  %3495 = vmatpush.xpose.msrb.mxu1 %v6880_v4  ;;  %v2660_v54 = vmul.f32 1.442695, %v2300_v17  ;;  %v2662_v56 = vmul.f32 1.442695, %v2301_v2 }
 0x2fa   :  { %9404 = vst [vmem:[#allocation86_spill] sm:$0xff] %v6958_v32  ;;  %v6972_v18 = vpop.eup %4734  ;;  %4744 = vpow2.f32 %v2668_v6  ;;  %3446 = vmatpush.xpose.msra.mxu3 %v6964_v35  ;;  %2068 = vmax.xlane.f32.xlu0 %v2067_v14  ;;  %v6982_v53 = vpop.f32.mrf.mxu3  ;;  %v2518_v10 = vmul.f32 1.442695, %v2229_v36 }
 0x2fb   :  { %9405 = vst [vmem:[#allocation87_spill] sm:$0xff] %v6960_v27  ;;  %v6976_v59 = vpop.eup %4736  ;;  %4746 = vpow2.f32 %v2670_v62 }
 0x2fc   :  { %9406 = vst [vmem:[#allocation81_spill] sm:$0xff] %v6964_v35  ;;  %v6978_v25 = vpop.eup %4738  ;;  %4748 = vpow2.f32 %v2676_v51  ;;  %3467 = vmatpush.xpose.msrb.mxu0 %v6804_v23  ;;  %v1991_v17 = vpop.xlane.xlu2 %1990  ;;  %v9417_v51 = vld [vmem:[#allocation132_spill] sm:$0xff]  ;;  %v9458_v35 = vld [vmem:[#allocation33_spill] sm:$0xff] }
 0x2fd   :  { %9408 = vst [vmem:[#allocation71_spill] sm:$0xff] %v6970_v60  ;;  %v6984_v34 = vpop.eup %4740  ;;  %4750 = vpow2.f32 %v2678_v8  ;;  %3418 = vmatpush.xpose.msra.mxu2 %v6978_v25  ;;  %v1985_v4 = vpop.xlane.xlu1 %1984  ;;  %3496 = vmatpush.xpose.msrb.mxu1 %v6808_v31  ;;  %v2314_v26 = vsub.f32 %v6130_v12, %v1991_v17  ;;  %v2315_v23 = vsub.f32 %v6138_v11, %v1991_v17 }
 0x2fe   :  { %9409 = vst [vmem:[#allocation175_spill] sm:$0xff] %v6972_v18  ;;  %4752 = vpow2.f32 %v2660_v54  ;;  %3447 = vmatpush.xpose.msra.mxu3 %v6984_v34  ;;  %v2310_v50 = vsub.f32 %v6088_v29, %v1985_v4  ;;  %v2311_v19 = vsub.f32 %v6092_v38, %v1985_v4  ;;  %v1979_v2 = vpop.xlane.xlu0 %1978  ;;  %v6993_v36 = vpop.f32.mrf.mxu0 }
 0x2ff   :  { %9410 = vst [vmem:[#allocation176_spill] sm:$0xff] %v6976_v59  ;;  %v6995_v6 = vpop.eup %4742  ;;  %4754 = vpow2.f32 %v2662_v56  ;;  %v2306_v62 = vsub.f32 %v6050_v33, %v1979_v2  ;;  %v2307_v14 = vsub.f32 %v9417_v51, %v1979_v2  ;;  %v7000_v44 = vpop.f32.mrf.mxu1  ;;  %v2688_v8 = vmul.f32 1.442695, %v2314_v26  ;;  %v9419_v56 = vld [vmem:[#allocation53_spill] sm:$0xff] }
 0x300   :  { %9411 = vst [vmem:[#allocation177_spill] sm:$0xff] %v6978_v25  ;;  %v7002_v31 = vpop.eup %4744  ;;  %v2680_v29 = vmul.f32 1.442695, %v2310_v50  ;;  %v2682_v38 = vmul.f32 1.442695, %v2311_v19  ;;  %v2070_v12 = vmax.f32 %v6993_v36, %v7000_v44  ;;  %4756 = vpow2.f32 %v2518_v10  ;;  %3468 = vmatpush.xpose.msrb.mxu0 %v6898_v39  ;;  %v7024_v39 = vpop.f32.mrf.mxu2 }
 0x301   :  { %9412 = vst [vmem:[#allocation178_spill] sm:$0xff] %v6980_v30  ;;  %v7006_v54 = vpop.eup %4746  ;;  %v2272_v11 = vsub.f32 %v9419_v56, %v6688_v1  ;;  %v2690_v4 = vmul.f32 1.442695, %v2315_v23  ;;  %3419 = vmatpush.xpose.msra.mxu2 %v6976_v59  ;;  %3497 = vmatpush.xpose.msrb.mxu1 %v6909_v42  ;;  %v2672_v17 = vmul.f32 1.442695, %v2306_v62  ;;  %v9424_v62 = vld [vmem:[#allocation54_spill] sm:$0xff] }
 0x302   :  { %9413 = vst [vmem:[#allocation179_spill] sm:$0xff] %v6982_v53  ;;  %v7012_v33 = vpop.eup %4748  ;;  %4758 = vpow2.f32 %v2680_v29  ;;  %3448 = vmatpush.xpose.msra.mxu3 %v6995_v6  ;;  %v7018_v50 = vadd.f32 %v7006_v54, %v7002_v31  ;;  %v2674_v19 = vmul.f32 1.442695, %v2307_v14  ;;  %2071 = vmax.xlane.f32.xlu2 %v2070_v12  ;;  %v7026_v2 = vpop.f32.mrf.mxu3  ;;  %v2273_v51 = vsub.f32 %v9424_v62, %v6688_v1  ;;  %v9480_v59 = vld [vmem:[#allocation160_spill] sm:$0xff] }
 0x303   :  { %9414 = vst [vmem:[#allocation180_spill] sm:$0xff] %v6984_v34  ;;  %v7020_v10 = vpop.eup %4750  ;;  %4760 = vpow2.f32 %v2682_v38  ;;  %v2604_v29 = vmul.f32 1.442695, %v2272_v11 }
 0x304   :  { %9415 = vst [vmem:[#allocation181_spill] sm:$0xff] %v6993_v36  ;;  %v7022_v26 = vpop.eup %4752  ;;  %4762 = vpow2.f32 %v2688_v8  ;;  %v7030_v42 = vadd.f32 %v7020_v10, %v7012_v33  ;;  %3469 = vmatpush.xpose.msrb.mxu0 %v6815_v49  ;;  %v2000_v38 = vpop.xlane.xlu2 %1999  ;;  %v9427_v49 = vld [vmem:[#allocation62_spill] sm:$0xff] }
 0x305   :  { %9416 = vst [vmem:[#allocation182_spill] sm:$0xff] %v6995_v6  ;;  %v7032_v23 = vpop.eup %4754  ;;  %4764 = vpow2.f32 %v2690_v4  ;;  %3420 = vmatpush.xpose.msra.mxu2 %v6953_v3  ;;  %v1994_v14 = vpop.xlane.xlu1 %1993  ;;  %3498 = vmatpush.xpose.msrb.mxu1 %v6824_v55  ;;  %v2320_v56 = vsub.f32 %v6224_v24, %v2000_v38  ;;  %v2321_v62 = vsub.f32 %v9427_v49, %v2000_v38  ;;  %v2606_v38 = vmul.f32 1.442695, %v2273_v51 }
 0x306   :  { %9418 = vst [vmem:[#allocation132_spill] sm:$0xff] %v7000_v44  ;;  %4766 = vpow2.f32 %v2672_v17  ;;  %3449 = vmatpush.xpose.msra.mxu3 %v6972_v18  ;;  %v2316_v8 = vsub.f32 %v6160_v7, %v1994_v14  ;;  %v2317_v12 = vsub.f32 %v6168_v48, %v1994_v14  ;;  %v1988_v1 = vpop.xlane.xlu0 %1987  ;;  %v7043_v11 = vpop.f32.mrf.mxu0 }
 0x307   :  { %9420 = vst [vmem:[#allocation53_spill] sm:$0xff] %v7018_v50  ;;  %v7045_v4 = vpop.eup %4756  ;;  %4768 = vpow2.f32 %v2674_v19  ;;  %v9429_v50 = vld [vmem:[#allocation142_spill] sm:$0xff]  ;;  %v7050_v32 = vpop.f32.mrf.mxu1  ;;  %v2700_v14 = vmul.f32 1.442695, %v2320_v56  ;;  %v2702_v19 = vmul.f32 1.442695, %v2321_v62 }
 0x308   :  { %9421 = vst [vmem:[#allocation183_spill] sm:$0xff] %v7024_v39  ;;  %v2313_v60 = vsub.f32 %v9429_v50, %v1988_v1  ;;  %v7052_v55 = vpop.eup %4758  ;;  %v2692_v7 = vmul.f32 1.442695, %v2316_v8  ;;  %v2694_v48 = vmul.f32 1.442695, %v2317_v12  ;;  %v2073_v24 = vmax.f32 %v7043_v11, %v7050_v32  ;;  %3470 = vmatpush.xpose.msrb.mxu0 %v6754_v58  ;;  %v9433_v58 = vld [vmem:[#allocation47_spill] sm:$0xff]  ;;  %v7078_v49 = vpop.f32.mrf.mxu2 }
 0x309   :  { %9422 = vst [vmem:[#allocation184_spill] sm:$0xff] %v7026_v2  ;;  %v7056_v15 = vpop.eup %4760  ;;  %4770 = vpow2.f32 %v2604_v29  ;;  %3421 = vmatpush.xpose.msra.mxu2 %v6945_v22  ;;  %v7062_v50 = vadd.f32 %v7032_v23, %v7022_v26  ;;  %3499 = vmatpush.xpose.msrb.mxu1 %v6758_v57  ;;  %v2268_v12 = vsub.f32 %v9433_v58, %v6690_v20 }
 0x30a   :  { %9423 = vst [vmem:[#allocation185_spill] sm:$0xff] %v7030_v42  ;;  %v9428_v42 = vld [vmem:[#allocation141_spill] sm:$0xff]  ;;  %4772 = vpow2.f32 %v2692_v7  ;;  %3450 = vmatpush.xpose.msra.mxu3 %v7045_v4  ;;  %v7070_v29 = vadd.f32 %v7056_v15, %v7052_v55  ;;  %2074 = vmax.xlane.f32.xlu1 %v2073_v24  ;;  %v2686_v51 = vmul.f32 1.442695, %v2313_v60  ;;  %v7080_v62 = vpop.f32.mrf.mxu3 }
 0x30b   :  { %9425 = vst [vmem:[#allocation54_spill] sm:$0xff] %v7043_v11  ;;  %v2312_v17 = vsub.f32 %v9428_v42, %v1988_v1  ;;  %v7064_v42 = vpop.eup %4762  ;;  %4774 = vpow2.f32 %v2694_v48 }
 0x30c   :  { %9426 = vst [vmem:[#allocation186_spill] sm:$0xff] %v7045_v4  ;;  %v7072_v8 = vpop.eup %4764  ;;  %4776 = vpow2.f32 %v2700_v14  ;;  %3471 = vmatpush.xpose.msrb.mxu0 %v6828_v9  ;;  %v7089_v48 = vpop.xlane.xlu2 %2008  ;;  %v9437_v14 = vld [vmem:[#allocation48_spill] sm:$0xff] }
 0x30d   :  { %9430 = vst [vmem:[#allocation62_spill] sm:$0xff] %v7050_v32  ;;  %v2684_v56 = vmul.f32 1.442695, %v2312_v17  ;;  %v7076_v1 = vpop.eup %4766  ;;  %v7084_v57 = vadd.f32 %v7072_v8, %v7064_v42  ;;  %4778 = vpow2.f32 %v2702_v19  ;;  %v2003_v17 = vpop.xlane.xlu1 %2002  ;;  %v2269_v60 = vsub.f32 %v9437_v14, %v6690_v20  ;;  %3500 = vmatpush.xpose.msrb.mxu1 %v6842_v45  ;;  %v9441_v45 = vld [vmem:[#allocation58_spill] sm:$0xff] }
 0x30e   :  { %9431 = vst [vmem:[#allocation141_spill] sm:$0xff] %v7062_v50  ;;  %v7086_v7 = vpop.eup %4768  ;;  %4780 = vpow2.f32 %v2606_v38  ;;  %v2322_v24 = vsub.f32 %v6268_v47, %v2003_v17  ;;  %v1997_v58 = vpop.xlane.xlu0 %1996  ;;  %v2596_v50 = vmul.f32 1.442695, %v2268_v12  ;;  %v2323_v9 = vsub.f32 %v6270_v28, %v2003_v17  ;;  %v9443_v12 = vld [vmem:[#allocation43_spill] sm:$0xff] }
 0x30f   :  { %9432 = vst [vmem:[#allocation142_spill] sm:$0xff] %v7070_v29  ;;  %v7095_v29 = vpop.f32.mrf.mxu0  ;;  %4782 = vpow2.f32 %v2684_v56  ;;  %v2318_v19 = vsub.f32 %v6192_v43, %v1997_v58  ;;  %v7101_v44 = vpop.f32.mrf.mxu1  ;;  %v2319_v14 = vsub.f32 %v9441_v45, %v1997_v58  ;;  %v7113_v28 = vadd.f32 %v7086_v7, %v7076_v1 }
 0x310   :  { %9434 = vst [vmem:[#allocation47_spill] sm:$0xff] %v7078_v49  ;;  %4784 = vpow2.f32 %v2686_v51  ;;  %v2704_v20 = vmul.f32 1.442695, %v2322_v24  ;;  %v2076_v47 = vmax.f32 %v7095_v29, %v7101_v44  ;;  %v2706_v32 = vmul.f32 1.442695, %v2323_v9  ;;  %3472 = vmatpush.xpose.msrb.mxu0 %v6763_v52  ;;  %v9445_v52 = vld [vmem:[#allocation44_spill] sm:$0xff] }
 0x311   :  { %9435 = vst [vmem:[#allocation187_spill] sm:$0xff] %v7080_v62  ;;  %v2266_v56 = vsub.f32 %v9443_v12, %v6660_v63  ;;  %v2598_v51 = vmul.f32 1.442695, %v2269_v60  ;;  %3501 = vmatpush.xpose.msrb.mxu1 %v6770_v41  ;;  %v2267_v58 = vsub.f32 %v9445_v52, %v6660_v63  ;;  %4786 = vpow2.f32 %v2596_v50  ;;  %v7130_v12 = vpop.f32.mrf.mxu2  ;;  %v9451_v52 = vld [vmem:[#allocation38_spill] sm:$0xff] }
 0x312   :  { %9436 = vst [vmem:[#allocation188_spill] sm:$0xff] %v7084_v57  ;;  %v7097_v57 = vpop.eup %4770  ;;  %2077 = vmax.xlane.f32.xlu0 %v2076_v47  ;;  %v2696_v9 = vmul.f32 1.442695, %v2318_v19  ;;  %4788 = vpow2.f32 %v2704_v20  ;;  %v7132_v60 = vpop.f32.mrf.mxu3 }
 0x313   :  { %9438 = vst [vmem:[#allocation48_spill] sm:$0xff] %v7095_v29  ;;  %v7103_v38 = vpop.eup %4772  ;;  %4790 = vpow2.f32 %v2706_v32  ;;  %v2592_v20 = vmul.f32 1.442695, %v2266_v56  ;;  %v2594_v32 = vmul.f32 1.442695, %v2267_v58  ;;  %v9457_v58 = vld [vmem:[#allocation129_spill] sm:$0xff] }
 0x314   :  { %9439 = vst [vmem:[#allocation189_spill] sm:$0xff] %v7097_v57  ;;  %v7108_v36 = vpop.eup %4774  ;;  %3473 = vmatpush.xpose.msrb.mxu0 %v7097_v57  ;;  %v7141_v63 = vpop.xlane.xlu2 %2017  ;;  %4792 = vpow2.f32 %v2598_v51  ;;  %v9453_v57 = vld [vmem:[#allocation39_spill] sm:$0xff] }
 0x315   :  { %9440 = vst [vmem:[#allocation190_spill] sm:$0xff] %v7101_v44  ;;  %v7115_v43 = vpop.eup %4776  ;;  %v7122_v17 = vadd.f32 %v7108_v36, %v7103_v38  ;;  %v7143_v50 = vpop.xlane.xlu1 %2011  ;;  %4794 = vpow2.f32 %v2696_v9 }
 0x316   :  { %9442 = vst [vmem:[#allocation58_spill] sm:$0xff] %v7113_v28  ;;  %v7124_v24 = vpop.eup %4778  ;;  %v2698_v28 = vmul.f32 1.442695, %v2319_v14  ;;  %v9450_v14 = vld [vmem:[#allocation172_spill] sm:$0xff]  ;;  %v7150_v11 = vpop.xlane.xlu0 %2005 }
 0x317   :  { %9444 = vst [vmem:[#allocation43_spill] sm:$0xff] %v7122_v17  ;;  %v7128_v45 = vpop.eup %4780  ;;  %v7136_v41 = vadd.f32 %v7124_v24, %v7115_v43  ;;  %v2264_v17 = vsub.f32 %v9451_v52, %v9450_v14  ;;  %v2265_v44 = vsub.f32 %v9453_v57, %v9450_v14  ;;  %v7156_v29 = vpop.f32.mrf.mxu1  ;;  %v2262_v57 = vsub.f32 %v9458_v35, %v9457_v58  ;;  %v9459_v14 = vld [vmem:[#allocation34_spill] sm:$0xff] }
 0x318   :  { %9446 = vst [vmem:[#allocation44_spill] sm:$0xff] %v7128_v45  ;;  %v7138_v47 = vpop.eup %4782  ;;  %3502 = vmatpush.xpose.msrb.mxu1 %v7128_v45  ;;  %4796 = vpow2.f32 %v2698_v28  ;;  %3474 = vmatpush.xpose.msrb.mxu0 %v6772_v16 }
 0x319   :  { %9447 = vst [vmem:[#allocation191_spill] sm:$0xff] %v7130_v12  ;;  %v7145_v19 = vpop.eup %4784  ;;  %4798 = vpow2.f32 %v2592_v20  ;;  %v2588_v9 = vmul.f32 1.442695, %v2264_v17  ;;  %v2590_v27 = vmul.f32 1.442695, %v2265_v44 }
 0x31a   :  { %9448 = vst [vmem:[#allocation192_spill] sm:$0xff] %v7132_v60  ;;  %v7160_v51 = vpop.eup %4786  ;;  %v7165_v52 = vadd.f32 %v7145_v19, %v7138_v47  ;;  %4800 = vpow2.f32 %v2594_v32  ;;  %v9463_v32 = vld [vmem:[#allocation167_spill] sm:$0xff]  ;;  %v2584_v44 = vmul.f32 1.442695, %v2262_v57  ;;  %v7195_v25 = vpop.f32.mrf.mxu3 }
 0x31b   :  { %9449 = vst [vmem:[#allocation193_spill] sm:$0xff] %v7136_v41  ;;  %v7152_v41 = vpop.f32.mrf.mxu0  ;;  %v4789_v45 = vpop.eup %4788  ;;  %4802 = vpow2.f32 %v2588_v9 }
 0x31c   :  { %9452 = vst [vmem:[#allocation172_spill] sm:$0xff] %v7152_v41  ;;  %v2079_v56 = vmax.f32 %v7152_v41, %v7156_v29  ;;  %3503 = vmatpush.xpose.msrb.mxu1 %v6784_v5  ;;  %v4791_v28 = vpop.eup %4790  ;;  %3522 = vmatpush.xpose.msrb.mxu2 %v4789_v45  ;;  %v7179_v35 = vpop.xlane.xlu2 %2026  ;;  %4804 = vpow2.f32 %v2590_v27 }
 0x31d   :  { %9454 = vst [vmem:[#allocation38_spill] sm:$0xff] %v7156_v29  ;;  %v2263_v29 = vsub.f32 %v9459_v14, %v9457_v58  ;;  %v7172_v16 = vpop.eup %4792  ;;  %3551 = vmatpush.xpose.msrb.mxu3 %v4791_v28  ;;  %v7176_v20 = vadd.f32 %v4791_v28, %v4789_v45  ;;  %3475 = vmatpush.xpose.msrb.mxu0 %v7160_v51  ;;  %v7181_v5 = vpop.xlane.xlu1 %2020  ;;  %v9466_v45 = vld [vmem:[#allocation29_spill] sm:$0xff]  ;;  %4806 = vpow2.f32 %v2584_v44 }
 0x31e   :  { %9455 = vst [vmem:[#allocation39_spill] sm:$0xff] %v7160_v51  ;;  %2080 = vmax.xlane.f32.xlu2 %v2079_v56  ;;  %v4795_v41 = vpop.eup %4794  ;;  %v9464_v56 = vld [vmem:[#allocation28_spill] sm:$0xff]  ;;  %v7186_v14 = vpop.xlane.xlu0 %2014  ;;  %v2261_v28 = vsub.f32 %v9466_v45, %v9463_v32 }
 0x31f   :  { %9456 = vst [vmem:[#allocation194_spill] sm:$0xff] %v7165_v52  ;;  %v7174_v52 = vpop.f32.mrf.mxu2  ;;  %v4797_v17 = vpop.eup %4796  ;;  %v2260_v58 = vsub.f32 %v9464_v56, %v9463_v32 }
 0x320   :  { %9460 = vst [vmem:[#allocation129_spill] sm:$0xff] %v7172_v16  ;;  %3504 = vmatpush.xpose.msrb.mxu1 %v7172_v16  ;;  %3523 = vmatpush.xpose.msrb.mxu2 %v7115_v43  ;;  %v7193_v51 = vpop.f32.mrf.mxu1  ;;  %v7197_v56 = vpop.eup %4798  ;;  %v7205_v32 = vadd.f32 %v4797_v17, %v4795_v41 }
 0x321   :  { %9461 = vst [vmem:[#allocation33_spill] sm:$0xff] %v7174_v52  ;;  %3552 = vmatpush.xpose.msrb.mxu3 %v7124_v24  ;;  %v7202_v9 = vpop.eup %4800  ;;  %3476 = vmatpush.xpose.msrb.mxu0 %v7197_v56  ;;  %v2580_v27 = vmul.f32 1.442695, %v2260_v58  ;;  %v9474_v58 = vld [vmem:[#allocation117_spill] sm:$0xff] }
 0x322   :  { %9462 = vst [vmem:[#allocation34_spill] sm:$0xff] %v7176_v20  ;;  %v2586_v20 = vmul.f32 1.442695, %v2263_v29  ;;  %v2582_v29 = vmul.f32 1.442695, %v2261_v28  ;;  %v7208_v43 = vpop.eup %4802 }
 0x323   :  { %v7188_v34 = vpop.f32.mrf.mxu0  ;;  %9467 = vst [vmem:[#allocation28_spill] sm:$0xff] %v7193_v51  ;;  %v7210_v24 = vpop.eup %4804 }
 0x324   :  { %9465 = vst [vmem:[#allocation167_spill] sm:$0xff] %v7188_v34  ;;  %v2082_v57 = vmax.f32 %v7188_v34, %v7193_v51  ;;  %3505 = vmatpush.xpose.msrb.mxu1 %v7202_v9  ;;  %4808 = vpow2.f32 %v2586_v20  ;;  %3524 = vmatpush.xpose.msrb.mxu2 %v4795_v41  ;;  %v2036_v45 = vpop.xlane.xlu2 %2035  ;;  %v9528_v34 = vld [vmem:[#allocation112_spill] sm:$0xff] }
 0x325   :  { %9468 = vst [vmem:[#allocation29_spill] sm:$0xff] %v7195_v25  ;;  %3553 = vmatpush.xpose.msrb.mxu3 %v4797_v17  ;;  %3477 = vmatpush.xpose.msrb.mxu0 %v7208_v43  ;;  %v2030_v16 = vpop.xlane.xlu1 %2029  ;;  %4810 = vpow2.f32 %v2580_v27  ;;  %v2344_v44 = vsub.f32 %v9474_v58, %v2036_v45  ;;  %v9478_v17 = vld [vmem:[#allocation36_spill] sm:$0xff] }
 0x326   :  { %9469 = vst [vmem:[#allocation195_spill] sm:$0xff] %v7197_v56  ;;  %2083 = vmax.xlane.f32.xlu1 %v2082_v57  ;;  %v9476_v57 = vld [vmem:[#allocation55_spill] sm:$0xff]  ;;  %v2024_v20 = vpop.xlane.xlu0 %2023  ;;  %4812 = vpow2.f32 %v2582_v29  ;;  %v2341_v56 = vsub.f32 %v9478_v17, %v2030_v16  ;;  %v9489_v17 = vld [vmem:[#allocation52_spill] sm:$0xff] }
 0x327   :  { %9470 = vst [vmem:[#allocation196_spill] sm:$0xff] %v7202_v9  ;;  %v2340_v28 = vsub.f32 %v9476_v57, %v2030_v16  ;;  %v2337_v27 = vsub.f32 %v9480_v59, %v2024_v20  ;;  %v2748_v58 = vmul.f32 1.442695, %v2344_v44  ;;  %v7230_v57 = vpop.f32.mrf.mxu2  ;;  %v7235_v59 = vpop.f32.mrf.mxu3  ;;  %v236_v44 = vld [vmem:[#allocation7 + $0x8] sm:$0xff] }
 0x328   :  { %9471 = vst [vmem:[#allocation197_spill] sm:$0xff] %v7205_v32  ;;  %3506 = vmatpush.xpose.msrb.mxu1 %v7210_v24  ;;  %v9475_v32 = vld [vmem:[#allocation21_spill] sm:$0xff]  ;;  %3525 = vmatpush.xpose.msrb.mxu2 %v7103_v38  ;;  %v7223_v18 = vpop.f32.mrf.mxu1  ;;  %v2742_v38 = vmul.f32 1.442695, %v2341_v56 }
 0x329   :  { %9472 = vst [vmem:[#allocation198_spill] sm:$0xff] %v7208_v43  ;;  %v2345_v9 = vsub.f32 %v9475_v32, %v2036_v45  ;;  %v9479_v43 = vld [vmem:[#allocation159_spill] sm:$0xff]  ;;  %v2740_v45 = vmul.f32 1.442695, %v2340_v28  ;;  %3554 = vmatpush.xpose.msrb.mxu3 %v7108_v36  ;;  %4814 = vpow2.f32 %v2748_v58  ;;  %v235_v36 = vld [vmem:[#allocation7] sm:$0xff]  ;;  %3393 = vmatmul.f32.vlgmr.msra.gmra.mxu1 %v236_v44 }
 0x32a   :  { %9473 = vst [vmem:[#allocation199_spill] sm:$0xff] %v7210_v24  ;;  %v2336_v6 = vsub.f32 %v9479_v43, %v2024_v20  ;;  %v7225_v24 = vpop.eup %4806  ;;  %3364 = vmatmul.f32.vlgmr.msra.gmra.mxu0 %v235_v36  ;;  %v9488_v20 = vld [vmem:[#allocation161_spill] sm:$0xff]  ;;  %3422 = vmatmul.f32.vlgmr.msra.gmra.mxu2 %v235_v36 }
 0x32b   :  { %v7217_v41 = vpop.f32.mrf.mxu0  ;;  %9481 = vst [vmem:[#allocation21_spill] sm:$0xff] %v7223_v18  ;;  %v2750_v32 = vmul.f32 1.442695, %v2345_v9  ;;  %v7232_v16 = vpop.eup %4808  ;;  %3478 = vmatpush.xpose.msrb.mxu0 %v7225_v24  ;;  %v2734_v9 = vmul.f32 1.442695, %v2337_v27  ;;  %v2103_v58 = vmax.f32 %v9489_v17, %v9488_v20  ;;  %v9496_v17 = vld [vmem:[#allocation24_spill] sm:$0xff]  ;;  %3451 = vmatmul.f32.vlgmr.msra.gmra.mxu3 %v236_v44 }
 0x32c   :  { %9477 = vst [vmem:[#allocation117_spill] sm:$0xff] %v7217_v41  ;;  %v2085_v29 = vmax.f32 %v7217_v41, %v7223_v18  ;;  %3507 = vmatpush.xpose.msrb.mxu1 %v7232_v16  ;;  %v2732_v43 = vmul.f32 1.442695, %v2336_v6  ;;  %3526 = vmatpush.xpose.msrb.mxu2 %v7064_v42  ;;  %v7239_v28 = vpop.eup %4810  ;;  %v9490_v6 = vld [vmem:[#allocation124_spill] sm:$0xff]  ;;  %v2045_v42 = vpop.xlane.xlu2 %2044  ;;  %v9526_v18 = vld [vmem:[#allocation163_spill] sm:$0xff]  ;;  %v9527_v41 = vld [vmem:[#allocation162_spill] sm:$0xff] }
 0x32d   :  { %9482 = vst [vmem:[#allocation55_spill] sm:$0xff] %v7225_v24  ;;  %4816 = vpow2.f32 %v2750_v32  ;;  %3555 = vmatpush.xpose.msrb.mxu3 %v7072_v8  ;;  %v7242_v56 = vpop.eup %4812  ;;  %v2039_v27 = vpop.xlane.xlu1 %2038  ;;  %v9491_v32 = vld [vmem:[#allocation136_spill] sm:$0xff]  ;;  %v9493_v24 = vld [vmem:[#allocation114_spill] sm:$0xff]  ;;  %v2115_v51 = vmax.f32 %v9527_v41, %v9526_v18  ;;  %v9539_v18 = vld [vmem:[#allocation123_spill] sm:$0xff] }
 0x32e   :  { %9483 = vst [vmem:[#allocation36_spill] sm:$0xff] %v7230_v57  ;;  %2086 = vmax.xlane.f32.xlu0 %v2085_v29  ;;  %4818 = vpow2.f32 %v2740_v45  ;;  %v2302_v29 = vsub.f32 %v9490_v6, %v6905_v37  ;;  %v2350_v8 = vsub.f32 %v9491_v32, %v2045_v42  ;;  %v9492_v45 = vld [vmem:[#allocation137_spill] sm:$0xff]  ;;  %v2346_v3 = vsub.f32 %v9493_v24, %v2039_v27  ;;  %v2033_v4 = vpop.xlane.xlu0 %2032  ;;  %v9540_v41 = vld [vmem:[#allocation102_spill] sm:$0xff] }
 0x32f   :  { %9484 = vst [vmem:[#allocation159_spill] sm:$0xff] %v7232_v16  ;;  %4820 = vpow2.f32 %v2742_v38  ;;  %3479 = vmatpush.xpose.msrb.mxu0 %v7239_v28  ;;  %v2351_v16 = vsub.f32 %v9492_v45, %v2045_v42  ;;  %v9495_v38 = vld [vmem:[#allocation130_spill] sm:$0xff]  ;;  %v7261_v32 = vpop.eup %4814 }
 0x330   :  { %9485 = vst [vmem:[#allocation160_spill] sm:$0xff] %v7235_v59  ;;  %4822 = vpow2.f32 %v2732_v43  ;;  %3508 = vmatpush.xpose.msrb.mxu1 %v7242_v56  ;;  %v2347_v6 = vsub.f32 %v9495_v38, %v2039_v27  ;;  %3527 = vmatpush.xpose.msrb.mxu2 %v7138_v47  ;;  %v9497_v43 = vld [vmem:[#allocation26_spill] sm:$0xff]  ;;  %v2760_v42 = vmul.f32 1.442695, %v2350_v8  ;;  %v2752_v45 = vmul.f32 1.442695, %v2346_v3  ;;  %v7272_v8 = vpop.f32.mrf.mxu2 }
 0x331   :  { %9486 = vst [vmem:[#allocation200_spill] sm:$0xff] %v7239_v28  ;;  %4824 = vpow2.f32 %v2734_v9  ;;  %v2342_v28 = vsub.f32 %v9496_v17, %v2033_v4  ;;  %v2343_v22 = vsub.f32 %v9497_v43, %v2033_v4  ;;  %v2762_v24 = vmul.f32 1.442695, %v2351_v16  ;;  %3556 = vmatpush.xpose.msrb.mxu3 %v7145_v19  ;;  %v9499_v47 = vld [vmem:[#allocation125_spill] sm:$0xff] }
 0x332   :  { %9487 = vst [vmem:[#allocation201_spill] sm:$0xff] %v7242_v56  ;;  %v7259_v56 = vpop.f32.mrf.mxu1  ;;  %v2303_v17 = vsub.f32 %v9499_v47, %v6905_v37  ;;  %v2754_v27 = vmul.f32 1.442695, %v2347_v6  ;;  %4826 = vpow2.f32 %v2760_v42  ;;  %v7281_v37 = vpop.f32.mrf.mxu3  ;;  %v2664_v6 = vmul.f32 1.442695, %v2302_v29  ;;  %v9508_v29 = vld [vmem:[#allocation42_spill] sm:$0xff] }
 0x333   :  { %v7253_v20 = vpop.f32.mrf.mxu0  ;;  %9498 = vst [vmem:[#allocation136_spill] sm:$0xff] %v7259_v56  ;;  %v7266_v36 = vpop.eup %4816  ;;  %v2744_v44 = vmul.f32 1.442695, %v2342_v28  ;;  %4828 = vpow2.f32 %v2762_v24  ;;  %v2746_v16 = vmul.f32 1.442695, %v2343_v22  ;;  %v9504_v22 = vld [vmem:[#allocation171_spill] sm:$0xff] }
 0x334   :  { %9494 = vst [vmem:[#allocation124_spill] sm:$0xff] %v7253_v20  ;;  %v2088_v9 = vmax.f32 %v7253_v20, %v7259_v56  ;;  %v7270_v4 = vpop.eup %4818  ;;  %v7276_v3 = vadd.f32 %v7266_v36, %v7261_v32  ;;  %3528 = vmatpush.xpose.msrb.mxu2 %v7052_v55  ;;  %4830 = vpow2.f32 %v2752_v45  ;;  %v2666_v43 = vmul.f32 1.442695, %v2303_v17  ;;  %v9505_v24 = vld [vmem:[#allocation139_spill] sm:$0xff]  ;;  %v9509_v45 = vld [vmem:[#allocation41_spill] sm:$0xff] }
 0x335   :  { %9500 = vst [vmem:[#allocation137_spill] sm:$0xff] %v7272_v8  ;;  %v7278_v19 = vpop.eup %4820  ;;  %3557 = vmatpush.xpose.msrb.mxu3 %v7056_v15  ;;  %4832 = vpow2.f32 %v2754_v27  ;;  %v2048_v42 = vpop.xlane.xlu1 %2047  ;;  %v9510_v17 = vld [vmem:[#allocation133_spill] sm:$0xff] }
 0x336   :  { %2089 = vmax.xlane.f32.xlu2 %v2088_v9  ;;  %2104 = vmax.xlane.f32.xlu0 %v2103_v58  ;;  %9501 = vst [vmem:[#allocation114_spill] sm:$0xff] %v7276_v3  ;;  %v7283_v38 = vpop.eup %4822  ;;  %v7288_v28 = vadd.f32 %v7278_v19, %v7270_v4  ;;  %4834 = vpow2.f32 %v2744_v44  ;;  %v2352_v55 = vsub.f32 %v9504_v22, %v2048_v42  ;;  %v2042_v47 = vpop.xlane.xlu0 %2041  ;;  %v9511_v44 = vld [vmem:[#allocation134_spill] sm:$0xff] }
 0x337   :  { %9502 = vst [vmem:[#allocation130_spill] sm:$0xff] %v7281_v37  ;;  %v7290_v58 = vpop.eup %4824  ;;  %v2353_v9 = vsub.f32 %v9505_v24, %v2048_v42  ;;  %4836 = vpow2.f32 %v2746_v16  ;;  %v2348_v27 = vsub.f32 %v9510_v17, %v2042_v47  ;;  %v2349_v56 = vsub.f32 %v9511_v44, %v2042_v47  ;;  %v9513_v47 = vld [vmem:[#allocation118_spill] sm:$0xff] }
 0x338   :  { %9503 = vst [vmem:[#allocation24_spill] sm:$0xff] %v7288_v28  ;;  %v7298_v15 = vadd.f32 %v7290_v58, %v7283_v38  ;;  %v2106_v28 = vmax.f32 %v9509_v45, %v9508_v29  ;;  %3529 = vmatpush.xpose.msrb.mxu2 %v7012_v33  ;;  %v7307_v42 = vpop.eup %4826  ;;  %4838 = vpow2.f32 %v2664_v6  ;;  %v2764_v24 = vmul.f32 1.442695, %v2352_v55 }
 0x339   :  { %v2766_v20 = vmul.f32 1.442695, %v2353_v9  ;;  %3558 = vmatpush.xpose.msrb.mxu3 %v7020_v10  ;;  %v7312_v29 = vpop.eup %4828  ;;  %4840 = vpow2.f32 %v2666_v43  ;;  %v2756_v33 = vmul.f32 1.442695, %v2348_v27  ;;  %v2758_v16 = vmul.f32 1.442695, %v2349_v56  ;;  %v7328_v56 = vpop.f32.mrf.mxu2 }
 0x33a   :  { %9507 = vst [vmem:[#allocation125_spill] sm:$0xff] %v7298_v15  ;;  %v7305_v22 = vpop.f32.mrf.mxu1  ;;  %v7314_v17 = vpop.eup %4830  ;;  %v2298_v44 = vsub.f32 %v9513_v47, %v6903_v61  ;;  %4842 = vpow2.f32 %v2764_v24  ;;  %v7320_v6 = vadd.f32 %v7312_v29, %v7307_v42  ;;  %v9517_v9 = vld [vmem:[#allocation119_spill] sm:$0xff] }
 0x33b   :  { %v7294_v3 = vpop.f32.mrf.mxu0  ;;  %9512 = vst [vmem:[#allocation171_spill] sm:$0xff] %v7305_v22  ;;  %v7322_v10 = vpop.eup %4832  ;;  %4844 = vpow2.f32 %v2766_v20 }
 0x33c   :  { %9506 = vst [vmem:[#allocation26_spill] sm:$0xff] %v7294_v3  ;;  %v2091_v15 = vmax.f32 %v7294_v3, %v7305_v22  ;;  %3530 = vmatpush.xpose.msrb.mxu2 %v7076_v1  ;;  %v7325_v43 = vpop.eup %4834  ;;  %4846 = vpow2.f32 %v2756_v33  ;;  %v7332_v55 = vadd.f32 %v7322_v10, %v7314_v17  ;;  %v7338_v20 = vpop.f32.mrf.mxu3  ;;  %v2656_v27 = vmul.f32 1.442695, %v2298_v44  ;;  %v9524_v22 = vld [vmem:[#allocation49_spill] sm:$0xff]  ;;  %v9525_v44 = vld [vmem:[#allocation20_spill] sm:$0xff] }
 0x33d   :  { %9514 = vst [vmem:[#allocation139_spill] sm:$0xff] %v7320_v6  ;;  %3559 = vmatpush.xpose.msrb.mxu3 %v7086_v7  ;;  %4848 = vpow2.f32 %v2758_v16  ;;  %v9522_v6 = vld [vmem:[#allocation173_spill] sm:$0xff]  ;;  %v2100_v3 = vmax.f32 %v9525_v44, %v9524_v22  ;;  %v9531_v44 = vld [vmem:[#allocation106_spill] sm:$0xff] }
 0x33e   :  { %2092 = vmax.xlane.f32.xlu1 %v2091_v15  ;;  %2107 = vmax.xlane.f32.xlu2 %v2106_v28  ;;  %9515 = vst [vmem:[#allocation133_spill] sm:$0xff] %v7328_v56  ;;  %v7334_v28 = vpop.eup %4836  ;;  %v2299_v15 = vsub.f32 %v9517_v9, %v6903_v61  ;;  %v2051_v24 = vpop.xlane.xlu0 %2050  ;;  %v9523_v61 = vld [vmem:[#allocation174_spill] sm:$0xff]  ;;  %4850 = vpow2.f32 %v2656_v27 }
 0x33f   :  { %9516 = vst [vmem:[#allocation134_spill] sm:$0xff] %v7332_v55  ;;  %v7340_v1 = vpop.eup %4838  ;;  %v7346_v7 = vadd.f32 %v7334_v28, %v7325_v43  ;;  %v2354_v55 = vsub.f32 %v9522_v6, %v2051_v24  ;;  %v2355_v16 = vsub.f32 %v9523_v61, %v2051_v24  ;;  %v9529_v24 = vld [vmem:[#allocation113_spill] sm:$0xff] }
 0x340   :  { %9518 = vst [vmem:[#allocation118_spill] sm:$0xff] %v7338_v20  ;;  %v7348_v47 = vpop.eup %4840  ;;  %3531 = vmatpush.xpose.msrb.mxu2 %v7002_v31  ;;  %v2297_v61 = vsub.f32 %v9529_v24, %v6849_v0  ;;  %v2658_v56 = vmul.f32 1.442695, %v2299_v15  ;;  %v9533_v15 = vld [vmem:[#allocation107_spill] sm:$0xff] }
 0x341   :  { %9519 = vst [vmem:[#allocation119_spill] sm:$0xff] %v7340_v1  ;;  %v4843_v45 = vpop.eup %4842  ;;  %3560 = vmatpush.xpose.msrb.mxu3 %v7006_v54  ;;  %v2768_v20 = vmul.f32 1.442695, %v2354_v55  ;;  %v2770_v8 = vmul.f32 1.442695, %v2355_v16  ;;  %v2295_v27 = vsub.f32 %v9533_v15, %v6914_v46  ;;  %v7384_v16 = vpop.f32.mrf.mxu2 }
 0x342   :  { %9520 = vst [vmem:[#allocation202_spill] sm:$0xff] %v7346_v7  ;;  %v7353_v9 = vpop.f32.mrf.mxu1  ;;  %v2296_v7 = vsub.f32 %v9528_v34, %v6849_v0  ;;  %v4845_v6 = vpop.eup %4844  ;;  %v2294_v0 = vsub.f32 %v9531_v44, %v6914_v46  ;;  %v9535_v44 = vld [vmem:[#allocation31_spill] sm:$0xff] }
 0x343   :  { %v7342_v33 = vpop.f32.mrf.mxu0  ;;  %9521 = vst [vmem:[#allocation203_spill] sm:$0xff] %v7348_v47  ;;  %v7366_v37 = vpop.eup %4846  ;;  %v7368_v22 = vadd.f32 %v4845_v6, %v4843_v45  ;;  %4852 = vpow2.f32 %v2768_v20 }
 0x344   :  { %v2094_v31 = vmax.f32 %v7342_v33, %v7353_v9  ;;  %v7370_v34 = vpop.eup %4848  ;;  %3532 = vmatpush.xpose.msrb.mxu2 %v7340_v1  ;;  %v2652_v54 = vmul.f32 1.442695, %v2296_v7  ;;  %4854 = vpow2.f32 %v2770_v8  ;;  %v7389_v8 = vpop.f32.mrf.mxu3  ;;  %v2648_v46 = vmul.f32 1.442695, %v2294_v0 }
 0x345   :  { %9530 = vst [vmem:[#allocation173_spill] sm:$0xff] %v7368_v22  ;;  %3561 = vmatpush.xpose.msrb.mxu3 %v7348_v47  ;;  %v7378_v55 = vadd.f32 %v7370_v34, %v7366_v37  ;;  %4856 = vpow2.f32 %v2658_v56  ;;  %v7391_v7 = vpop.eup %4850  ;;  %v9537_v56 = vld [vmem:[#allocation100_spill] sm:$0xff]  ;;  %v9538_v22 = vld [vmem:[#allocation101_spill] sm:$0xff] }
 0x346   :  { %2101 = vmax.xlane.f32.xlu1 %v2100_v3  ;;  %2095 = vmax.xlane.f32.xlu0 %v2094_v31  ;;  %v2654_v3 = vmul.f32 1.442695, %v2297_v61  ;;  %9534 = vst [vmem:[#allocation112_spill] sm:$0xff] %v7391_v7  ;;  %v9536_v31 = vld [vmem:[#allocation37_spill] sm:$0xff]  ;;  %v2292_v61 = vsub.f32 %v9537_v56, %v6847_v21  ;;  %4858 = vpow2.f32 %v2652_v54 }
 0x347   :  { %2116 = vmax.xlane.f32.xlu2 %v2115_v51  ;;  %9532 = vst [vmem:[#allocation174_spill] sm:$0xff] %v7378_v55  ;;  %v2109_v24 = vmax.f32 %v9536_v31, %v9535_v44  ;;  %v2650_v55 = vmul.f32 1.442695, %v2295_v27  ;;  %v2112_v44 = vmax.f32 %v9540_v41, %v9539_v18  ;;  %v9546_v27 = vld [vmem:[#allocation19_spill] sm:$0xff]  ;;  %v9567_v41 = vld [vmem:[#allocation94_spill] sm:$0xff] }
 0x348   :  { %3533 = vmatpush.xpose.msrb.mxu2 %v7022_v26  ;;  %v2293_v26 = vsub.f32 %v9538_v22, %v6847_v21  ;;  %4860 = vpow2.f32 %v2654_v3  ;;  %v2644_v54 = vmul.f32 1.442695, %v2292_v61  ;;  %v9545_v3 = vld [vmem:[#allocation74_spill] sm:$0xff] }
 0x349   :  { %3562 = vmatpush.xpose.msrb.mxu3 %v7032_v23  ;;  %v4853_v15 = vpop.eup %4852  ;;  %4862 = vpow2.f32 %v2648_v46  ;;  %v9551_v46 = vld [vmem:[#allocation170_spill] sm:$0xff] }
 0x34a   :  { %v7387_v51 = vpop.f32.mrf.mxu1  ;;  %v4855_v1 = vpop.eup %4854  ;;  %3580 = vmatpush.xpose.msra.mxu0 %v4853_v15  ;;  %v2646_v21 = vmul.f32 1.442695, %v2293_v26  ;;  %4864 = vpow2.f32 %v2650_v55  ;;  %v9548_v55 = vld [vmem:[#allocation166_spill] sm:$0xff] }
 0x34b   :  { %v7382_v20 = vpop.f32.mrf.mxu0  ;;  %v7404_v56 = vpop.eup %4856  ;;  %3609 = vmatpush.xpose.msra.mxu1 %v4855_v1  ;;  %v7407_v23 = vadd.f32 %v4855_v1, %v4853_v15  ;;  %v2118_v1 = vmax.f32 %v9546_v27, %v9545_v3  ;;  %4866 = vpow2.f32 %v2644_v54  ;;  %v9552_v15 = vld [vmem:[#allocation169_spill] sm:$0xff] }
 0x34c   :  { %v2097_v47 = vmax.f32 %v7382_v20, %v7387_v51  ;;  %9541 = vst [vmem:[#allocation113_spill] sm:$0xff] %v7404_v56  ;;  %3534 = vmatpush.xpose.msrb.mxu2 %v7391_v7  ;;  %v7410_v22 = vpop.eup %4858  ;;  %4868 = vpow2.f32 %v2646_v21  ;;  %v2124_v26 = vmax.f32 %v9552_v15, %v9551_v46 }
 0x34d   :  { %9542 = vst [vmem:[#allocation106_spill] sm:$0xff] %v7407_v23  ;;  %3563 = vmatpush.xpose.msrb.mxu3 %v7404_v56  ;;  %v9558_v56 = vld [vmem:[#allocation109_spill] sm:$0xff] }
 0x34e   :  { %2110 = vmax.xlane.f32.xlu1 %v2109_v24  ;;  %2113 = vmax.xlane.f32.xlu0 %v2112_v44  ;;  %9543 = vst [vmem:[#allocation107_spill] sm:$0xff] %v7410_v22  ;;  %v7412_v0 = vpop.eup %4860  ;;  %v7418_v24 = vpop.f32.mrf.mxu2 }
 0x34f   :  { %2098 = vmax.xlane.f32.xlu2 %v2097_v47  ;;  %3581 = vmatpush.xpose.msra.mxu0 %v4843_v45  ;;  %9544 = vst [vmem:[#allocation100_spill] sm:$0xff] %v7412_v0  ;;  %v7420_v44 = vpop.f32.mrf.mxu3  ;;  %v7422_v47 = vpop.eup %4862  ;;  %v9549_v45 = vld [vmem:[#allocation165_spill] sm:$0xff] }
 0x350   :  { %3535 = vmatpush.xpose.msrb.mxu2 %v7410_v22  ;;  %3610 = vmatpush.xpose.msra.mxu1 %v4845_v6  ;;  %9547 = vst [vmem:[#allocation101_spill] sm:$0xff] %v7422_v47  ;;  %v2121_v61 = vmax.f32 %v9549_v45, %v9548_v55  ;;  %v7427_v6 = vpop.eup %4864  ;;  %v9562_v22 = vld [vmem:[#allocation90_spill] sm:$0xff] }
 0x351   :  { %3564 = vmatpush.xpose.msrb.mxu3 %v7412_v0  ;;  %9550 = vst [vmem:[#allocation74_spill] sm:$0xff] %v7427_v6  ;;  %v7434_v54 = vpop.eup %4866 }
 0x352   :  { %9553 = vst [vmem:[#allocation19_spill] sm:$0xff] %v7434_v54  ;;  %v7437_v21 = vpop.eup %4868 }
 0x353   :  { %3582 = vmatpush.xpose.msra.mxu0 %v7307_v42  ;;  %9554 = vst [vmem:[#allocation166_spill] sm:$0xff] %v7437_v21  ;;  %v9555_v42 = vld [vmem:[#allocation97_spill] sm:$0xff] }
 0x354   :  { %3536 = vmatpush.xpose.msrb.mxu2 %v7422_v47  ;;  %3611 = vmatpush.xpose.msra.mxu1 %v7312_v29  ;;  %v9557_v29 = vld [vmem:[#allocation103_spill] sm:$0xff]  ;;  %v9564_v47 = vld [vmem:[#allocation46_spill] sm:$0xff] }
 0x355   :  { %3565 = vmatpush.xpose.msrb.mxu3 %v7427_v6  ;;  %v2130_v7 = vmax.f32 %v9558_v56, %v9557_v29  ;;  %v2338_v6 = vsub.f32 %v9562_v22, %v7179_v35  ;;  %v9568_v22 = vld [vmem:[#allocation110_spill] sm:$0xff] }
 0x356   :  { %2119 = vmax.xlane.f32.xlu1 %v2118_v1  ;;  %2122 = vmax.xlane.f32.xlu0 %v2121_v61  ;;  %v9556_v1 = vld [vmem:[#allocation140_spill] sm:$0xff]  ;;  %v7447_v61 = vpop.f32.mrf.mxu2 }
 0x357   :  { %2125 = vmax.xlane.f32.xlu2 %v2124_v26  ;;  %3583 = vmatpush.xpose.msra.mxu0 %v7366_v37  ;;  %v2127_v23 = vmax.f32 %v9556_v1, %v9555_v42  ;;  %9559 = vst [vmem:[#allocation165_spill] sm:$0xff] %v7447_v61  ;;  %v9560_v37 = vld [vmem:[#allocation57_spill] sm:$0xff]  ;;  %v9561_v26 = vld [vmem:[#allocation56_spill] sm:$0xff] }
 0x358   :  { %3537 = vmatpush.xpose.msrb.mxu2 %v7434_v54  ;;  %3612 = vmatpush.xpose.msra.mxu1 %v7370_v34  ;;  %v2133_v0 = vmax.f32 %v9561_v26, %v9560_v37  ;;  %v7454_v34 = vpop.f32.mrf.mxu3  ;;  %v9566_v54 = vld [vmem:[#allocation77_spill] sm:$0xff]  ;;  %v2139_v37 = vmax.f32 %v9568_v22, %v9567_v41  ;;  %v9570_v26 = vld [vmem:[#allocation98_spill] sm:$0xff] }
 0x359   :  { %3566 = vmatpush.xpose.msrb.mxu3 %v7437_v21  ;;  %9563 = vst [vmem:[#allocation170_spill] sm:$0xff] %v7454_v34  ;;  %v2339_v21 = vsub.f32 %v9564_v47, %v7179_v35 }
 0x35b   :  { %3584 = vmatpush.xpose.msra.mxu0 %v7314_v17  ;;  %v2736_v17 = vmul.f32 1.442695, %v2338_v6  ;;  %v2738_v18 = vmul.f32 1.442695, %v2339_v21 }
 0x35c   :  { %3613 = vmatpush.xpose.msra.mxu1 %v7322_v10  ;;  %v9569_v10 = vld [vmem:[#allocation30_spill] sm:$0xff] }
 0x35d   :  { %v2142_v35 = vmax.f32 %v9570_v26, %v9569_v10  ;;  %4870 = vpow2.f32 %v2736_v17 }
 0x35e   :  { %2128 = vmax.xlane.f32.xlu1 %v2127_v23  ;;  %2131 = vmax.xlane.f32.xlu0 %v2130_v7  ;;  %v9565_v23 = vld [vmem:[#allocation78_spill] sm:$0xff]  ;;  %v9571_v7 = vld [vmem:[#allocation40_spill] sm:$0xff]  ;;  %4872 = vpow2.f32 %v2738_v18  ;;  %v7472_v47 = vpop.f32.mrf.mxu2  ;;  %v2145_v18 = vmax.f32 %v6940_v40, %v6942_v13 }
 0x35f   :  { %2134 = vmax.xlane.f32.xlu2 %v2133_v0  ;;  %3585 = vmatpush.xpose.msra.mxu0 %v7261_v32  ;;  %v2136_v31 = vmax.f32 %v9566_v54, %v9565_v23  ;;  %v2334_v32 = vsub.f32 %v9571_v7, %v7181_v5  ;;  %9573 = vst [vmem:[#allocation169_spill] sm:$0xff] %v7472_v47 }
 0x360   :  { %3614 = vmatpush.xpose.msra.mxu1 %v7266_v36  ;;  %v9572_v36 = vld [vmem:[#allocation79_spill] sm:$0xff]  ;;  %v7474_v6 = vpop.f32.mrf.mxu3 }
 0x361   :  { %v2335_v0 = vsub.f32 %v9572_v36, %v7181_v5  ;;  %9574 = vst [vmem:[#allocation97_spill] sm:$0xff] %v7474_v6  ;;  %v2728_v21 = vmul.f32 1.442695, %v2334_v32  ;;  %v2151_v36 = vmax.f32 %v7024_v39, %v7026_v2  ;;  %v9612_v2 = vld [vmem:[#allocation168_spill] sm:$0xff] }
 0x363   :  { %3586 = vmatpush.xpose.msra.mxu0 %v7325_v43  ;;  %v9575_v43 = vld [vmem:[#allocation156_spill] sm:$0xff]  ;;  %v7484_v17 = vpop.eup %4870  ;;  %4874 = vpow2.f32 %v2728_v21 }
 0x364   :  { %3615 = vmatpush.xpose.msra.mxu1 %v7334_v28  ;;  %v9576_v28 = vld [vmem:[#allocation157_spill] sm:$0xff]  ;;  %9577 = vst [vmem:[#allocation140_spill] sm:$0xff] %v7484_v17 }
 0x365   :  { %v2333_v5 = vsub.f32 %v9576_v28, %v7141_v63 }
 0x366   :  { %2137 = vmax.xlane.f32.xlu1 %v2136_v31  ;;  %2140 = vmax.xlane.f32.xlu0 %v2139_v37  ;;  %v2332_v31 = vsub.f32 %v9575_v43, %v7141_v63  ;;  %v2730_v37 = vmul.f32 1.442695, %v2335_v0  ;;  %v9580_v0 = vld [vmem:[#allocation154_spill] sm:$0xff] }
 0x367   :  { %2143 = vmax.xlane.f32.xlu2 %v2142_v35  ;;  %3587 = vmatpush.xpose.msra.mxu0 %v7270_v4  ;;  %v7486_v35 = vpop.eup %4872  ;;  %v2148_v4 = vmax.f32 %v6980_v30, %v6982_v53  ;;  %v2726_v63 = vmul.f32 1.442695, %v2333_v5  ;;  %v2331_v43 = vsub.f32 %v9580_v0, %v7186_v14  ;;  %v9584_v5 = vld [vmem:[#allocation151_spill] sm:$0xff]  ;;  %v9588_v0 = vld [vmem:[#allocation148_spill] sm:$0xff]  ;;  %v9611_v30 = vld [vmem:[#allocation126_spill] sm:$0xff] }
 0x368   :  { %3616 = vmatpush.xpose.msra.mxu1 %v7278_v19  ;;  %9578 = vst [vmem:[#allocation103_spill] sm:$0xff] %v7486_v35  ;;  %v2724_v7 = vmul.f32 1.442695, %v2332_v31  ;;  %v9579_v19 = vld [vmem:[#allocation153_spill] sm:$0xff]  ;;  %4876 = vpow2.f32 %v2730_v37  ;;  %v9582_v31 = vld [vmem:[#allocation150_spill] sm:$0xff]  ;;  %v2329_v37 = vsub.f32 %v9584_v5, %v7143_v50  ;;  %v2964_v39 = vadd.f32 %v9612_v2, %v9611_v30 }
 0x369   :  { %v2330_v32 = vsub.f32 %v9579_v19, %v7186_v14  ;;  %v2328_v21 = vsub.f32 %v9582_v31, %v7143_v50  ;;  %v7504_v19 = vpop.f32.mrf.mxu3  ;;  %v2722_v14 = vmul.f32 1.442695, %v2331_v43  ;;  %v2160_v50 = vmax.f32 %v7174_v52, %v7195_v25  ;;  %v9618_v2 = vld [vmem:[#allocation45_spill] sm:$0xff] }
 0x36a   :  { %4878 = vpow2.f32 %v2724_v7  ;;  %9583 = vst [vmem:[#allocation90_spill] sm:$0xff] %v7504_v19  ;;  %v2157_v7 = vmax.f32 %v7130_v12, %v7132_v60  ;;  %v2327_v43 = vsub.f32 %v9588_v0, %v7089_v48  ;;  %v2718_v31 = vmul.f32 1.442695, %v2329_v37  ;;  %v9614_v12 = vld [vmem:[#allocation28_spill] sm:$0xff] }
 0x36b   :  { %3588 = vmatpush.xpose.msra.mxu0 %v7484_v17  ;;  %v2720_v28 = vmul.f32 1.442695, %v2330_v32  ;;  %4880 = vpow2.f32 %v2726_v63  ;;  %v2716_v63 = vmul.f32 1.442695, %v2328_v21 }
 0x36c   :  { %3617 = vmatpush.xpose.msra.mxu1 %v7486_v35  ;;  %v2714_v35 = vmul.f32 1.442695, %v2327_v43 }
 0x36d   :  { %4882 = vpow2.f32 %v2720_v28  ;;  %v9591_v28 = vld [vmem:[#allocation144_spill] sm:$0xff] }
 0x36e   :  { %2146 = vmax.xlane.f32.xlu1 %v2145_v18  ;;  %2149 = vmax.xlane.f32.xlu0 %v2148_v4  ;;  %v7499_v18 = vpop.f32.mrf.mxu2  ;;  %v2154_v4 = vmax.f32 %v7078_v49, %v7080_v62  ;;  %4884 = vpow2.f32 %v2722_v14  ;;  %v2163_v14 = vmax.f32 %v7230_v57, %v7235_v59  ;;  %v9615_v57 = vld [vmem:[#allocation120_spill] sm:$0xff] }
 0x36f   :  { %2152 = vmax.xlane.f32.xlu2 %v2151_v36  ;;  %3589 = vmatpush.xpose.msra.mxu0 %v7283_v38  ;;  %9581 = vst [vmem:[#allocation109_spill] sm:$0xff] %v7499_v18  ;;  %v7510_v38 = vpop.eup %4874  ;;  %4886 = vpow2.f32 %v2716_v63  ;;  %v9597_v63 = vld [vmem:[#allocation130_spill] sm:$0xff] }
 0x370   :  { %3618 = vmatpush.xpose.msra.mxu1 %v7290_v58  ;;  %9585 = vst [vmem:[#allocation46_spill] sm:$0xff] %v7510_v38  ;;  %v7512_v36 = vpop.eup %4876  ;;  %v9587_v58 = vld [vmem:[#allocation147_spill] sm:$0xff]  ;;  %4888 = vpow2.f32 %v2718_v31  ;;  %v9600_v31 = vld [vmem:[#allocation133_spill] sm:$0xff] }
 0x371   :  { %9586 = vst [vmem:[#allocation78_spill] sm:$0xff] %v7512_v36  ;;  %v2326_v32 = vsub.f32 %v9587_v58, %v7089_v48  ;;  %v7524_v5 = vpop.eup %4878  ;;  %v2324_v58 = vsub.f32 %v9591_v28, %v7150_v11  ;;  %v9592_v48 = vld [vmem:[#allocation145_spill] sm:$0xff]  ;;  %v7540_v0 = vpop.f32.mrf.mxu3 }
 0x372   :  { %9589 = vst [vmem:[#allocation77_spill] sm:$0xff] %v7524_v5  ;;  %v2325_v37 = vsub.f32 %v9592_v48, %v7150_v11  ;;  %v9598_v28 = vld [vmem:[#allocation137_spill] sm:$0xff]  ;;  %v9599_v11 = vld [vmem:[#allocation118_spill] sm:$0xff] }
 0x373   :  { %3590 = vmatpush.xpose.msra.mxu0 %v7510_v38  ;;  %v2712_v21 = vmul.f32 1.442695, %v2326_v32  ;;  %9595 = vst [vmem:[#allocation98_spill] sm:$0xff] %v7540_v0  ;;  %v2166_v17 = vmax.f32 %v9598_v28, %v9597_v63  ;;  %v2708_v43 = vmul.f32 1.442695, %v2324_v58  ;;  %v2169_v48 = vmax.f32 %v9600_v31, %v9599_v11 }
 0x374   :  { %3619 = vmatpush.xpose.msra.mxu1 %v7512_v36  ;;  %v2710_v36 = vmul.f32 1.442695, %v2325_v37 }
 0x375   :  { %4890 = vpow2.f32 %v2712_v21  ;;  %v2172_v21 = vmax.f32 %v7384_v16, %v7389_v8 }
 0x376   :  { %2155 = vmax.xlane.f32.xlu1 %v2154_v4  ;;  %2158 = vmax.xlane.f32.xlu0 %v2157_v7  ;;  %v7526_v4 = vpop.eup %4880  ;;  %v7536_v7 = vpop.f32.mrf.mxu2  ;;  %4892 = vpow2.f32 %v2714_v35 }
 0x377   :  { %2161 = vmax.xlane.f32.xlu2 %v2160_v50  ;;  %9590 = vst [vmem:[#allocation94_spill] sm:$0xff] %v7526_v4  ;;  %3591 = vmatpush.xpose.msra.mxu0 %v7524_v5  ;;  %v7538_v50 = vpop.eup %4882  ;;  %4894 = vpow2.f32 %v2708_v43 }
 0x378   :  { %3620 = vmatpush.xpose.msra.mxu1 %v7526_v4  ;;  %9593 = vst [vmem:[#allocation110_spill] sm:$0xff] %v7536_v7  ;;  %v7542_v32 = vpop.eup %4884  ;;  %v7552_v4 = vpop.xlane.xlu1 %2056  ;;  %4896 = vpow2.f32 %v2710_v36  ;;  %v2178_v36 = vmax.f32 %v7447_v61, %v7454_v34  ;;  %v9658_v34 = vld [vmem:[#allocation182_spill] sm:$0xff] }
 0x379   :  { %9594 = vst [vmem:[#allocation30_spill] sm:$0xff] %v7538_v50  ;;  %v7550_v38 = vpop.eup %4886  ;;  %v7574_v43 = vpop.f32.mrf.mxu3 }
 0x37a   :  { %9596 = vst [vmem:[#allocation40_spill] sm:$0xff] %v7542_v32  ;;  %v7554_v5 = vpop.eup %4888 }
 0x37b   :  { %3592 = vmatpush.xpose.msra.mxu0 %v7538_v50  ;;  %9601 = vst [vmem:[#allocation79_spill] sm:$0xff] %v7550_v38  ;;  %v7560_v58 = vpop.eup %4890 }
 0x37c   :  { %3621 = vmatpush.xpose.msra.mxu1 %v7542_v32  ;;  %9602 = vst [vmem:[#allocation156_spill] sm:$0xff] %v7554_v5  ;;  %v7562_v35 = vpop.eup %4892 }
 0x37d   :  { %9603 = vst [vmem:[#allocation157_spill] sm:$0xff] %v7560_v58  ;;  %v7578_v32 = vpop.eup %4894 }
 0x37e   :  { %2164 = vmax.xlane.f32.xlu1 %v2163_v14  ;;  %2167 = vmax.xlane.f32.xlu0 %v2166_v17  ;;  %9604 = vst [vmem:[#allocation153_spill] sm:$0xff] %v7562_v35  ;;  %v2175_v17 = vmax.f32 %v7418_v24, %v7420_v44  ;;  %v7567_v37 = vpop.f32.mrf.mxu2  ;;  %v7569_v14 = vpop.xlane.xlu2 %2053 }
 0x37f   :  { %2170 = vmax.xlane.f32.xlu2 %v2169_v48  ;;  %3593 = vmatpush.xpose.msra.mxu0 %v7550_v38  ;;  %9605 = vst [vmem:[#allocation154_spill] sm:$0xff] %v7567_v37  ;;  %v7576_v48 = vpop.xlane.xlu0 %2059  ;;  %v2184_v38 = vmax.f32 %v7499_v18, %v7504_v19  ;;  %v2190_v53 = vmax.f32 %v7567_v37, %v7574_v43 }
 0x380   :  { %3622 = vmatpush.xpose.msra.mxu1 %v7554_v5  ;;  %9606 = vst [vmem:[#allocation150_spill] sm:$0xff] %v7574_v43  ;;  %v7580_v50 = vpop.xlane.xlu1 %2065  ;;  %v2181_v5 = vmax.f32 %v7472_v47, %v7474_v6 }
 0x381   :  { %9607 = vst [vmem:[#allocation151_spill] sm:$0xff] %v7578_v32 }
 0x383   :  { %3594 = vmatpush.xpose.msra.mxu0 %v7560_v58 }
 0x384   :  { %3623 = vmatpush.xpose.msra.mxu1 %v7562_v35 }
 0x386   :  { %2173 = vmax.xlane.f32.xlu1 %v2172_v21  ;;  %2176 = vmax.xlane.f32.xlu0 %v2175_v17  ;;  %v7582_v21 = vpop.eup %4896  ;;  %v7590_v35 = vpop.xlane.xlu2 %2062  ;;  %v2187_v17 = vmax.f32 %v7536_v7, %v7540_v0 }
 0x387   :  { %2179 = vmax.xlane.f32.xlu2 %v2178_v36  ;;  %9608 = vst [vmem:[#allocation147_spill] sm:$0xff] %v7582_v21  ;;  %3595 = vmatpush.xpose.msra.mxu0 %v7578_v32  ;;  %v7594_v58 = vpop.xlane.xlu0 %2068  ;;  %v7596_v36 = vpop.f32.mrf.mxu2 }
 0x388   :  { %3624 = vmatpush.xpose.msra.mxu1 %v7582_v21  ;;  %9609 = vst [vmem:[#allocation148_spill] sm:$0xff] %v7596_v36  ;;  %v7598_v32 = vpop.xlane.xlu1 %2074  ;;  %v7600_v21 = vpop.f32.mrf.mxu3 }
 0x389   :  { %9610 = vst [vmem:[#allocation144_spill] sm:$0xff] %v7600_v21 }
 0x38e   :  { %2182 = vmax.xlane.f32.xlu1 %v2181_v5  ;;  %2185 = vmax.xlane.f32.xlu0 %v2184_v38  ;;  %v2193_v5 = vmax.f32 %v7596_v36, %v7600_v21  ;;  %v7608_v62 = vpop.xlane.xlu2 %2071  ;;  %v9617_v21 = vld [vmem:[#allocation164_spill] sm:$0xff]  ;;  %v9619_v36 = vld [vmem:[#allocation117_spill] sm:$0xff] }
 0x38f   :  { %2188 = vmax.xlane.f32.xlu2 %v2187_v17  ;;  %v7610_v38 = vpop.xlane.xlu0 %2077  ;;  %v9613_v17 = vld [vmem:[#allocation167_spill] sm:$0xff] }
 0x396   :  { %2191 = vmax.xlane.f32.xlu1 %v2190_v53  ;;  %2194 = vmax.xlane.f32.xlu0 %v2193_v5  ;;  %v9616_v53 = vld [vmem:[#allocation111_spill] sm:$0xff]  ;;  %v7618_v5 = vpop.xlane.xlu2 %2080 }
 0x397   :  { %2965 = vadd.xlane.f32.xlu2 %v2964_v39  ;;  %v2973_v30 = vadd.f32 %v9617_v21, %v9616_v53  ;;  %v9623_v21 = vld [vmem:[#allocation128_spill] sm:$0xff]  ;;  %v9624_v53 = vld [vmem:[#allocation69_spill] sm:$0xff] }
 0x399   :  { %v2084_v49 = vpop.xlane.xlu1 %2083 }
 0x39a   :  { %v2376_v60 = vsub.f32 %v9613_v17, %v2084_v49  ;;  %v2377_v25 = vsub.f32 %v9614_v12, %v2084_v49  ;;  %v9620_v17 = vld [vmem:[#allocation21_spill] sm:$0xff] }
 0x39c   :  { %v2812_v52 = vmul.f32 1.442695, %v2376_v60  ;;  %v2814_v59 = vmul.f32 1.442695, %v2377_v25  ;;  %v9621_v60 = vld [vmem:[#allocation108_spill] sm:$0xff] }
 0x39e   :  { %4898 = vpow2.f32 %v2812_v52  ;;  %2968 = vadd.xlane.f32.xlu1 %v9615_v57  ;;  %2971 = vadd.xlane.f32.xlu0 %v9618_v2  ;;  %v9622_v52 = vld [vmem:[#allocation127_spill] sm:$0xff]  ;;  %v2979_v2 = vadd.f32 %v9624_v53, %v9623_v21  ;;  %v9631_v53 = vld [vmem:[#allocation121_spill] sm:$0xff] }
 0x39f   :  { %4900 = vpow2.f32 %v2814_v59  ;;  %2974 = vadd.xlane.f32.xlu2 %v2973_v30  ;;  %v2976_v57 = vadd.f32 %v9622_v52, %v9621_v60  ;;  %v9629_v52 = vld [vmem:[#allocation136_spill] sm:$0xff] }
 0x3a1   :  { %v2087_v39 = vpop.xlane.xlu0 %2086 }
 0x3a2   :  { %v2378_v43 = vsub.f32 %v9619_v36, %v2087_v39  ;;  %v2379_v37 = vsub.f32 %v9620_v17, %v2087_v39  ;;  %v9626_v36 = vld [vmem:[#allocation65_spill] sm:$0xff]  ;;  %v9627_v39 = vld [vmem:[#allocation22_spill] sm:$0xff] }
 0x3a3   :  { %v2982_v17 = vadd.f32 %v9627_v39, %v9626_v36  ;;  %v9635_v39 = vld [vmem:[#allocation96_spill] sm:$0xff] }
 0x3a4   :  { %v7622_v49 = vpop.eup %4898  ;;  %v2816_v25 = vmul.f32 1.442695, %v2378_v43  ;;  %v2818_v12 = vmul.f32 1.442695, %v2379_v37  ;;  %v9628_v43 = vld [vmem:[#allocation124_spill] sm:$0xff] }
 0x3a5   :  { %v7626_v59 = vpop.eup %4900 }
 0x3a6   :  { %4902 = vpow2.f32 %v2816_v25  ;;  %2977 = vadd.xlane.f32.xlu1 %v2976_v57  ;;  %v7632_v30 = vadd.f32 %v7626_v59, %v7622_v49  ;;  %2980 = vadd.xlane.f32.xlu0 %v2979_v2  ;;  %v9630_v57 = vld [vmem:[#allocation27_spill] sm:$0xff] }
 0x3a7   :  { %4904 = vpow2.f32 %v2818_v12  ;;  %2983 = vadd.xlane.f32.xlu2 %v2982_v17  ;;  %v2985_v19 = vadd.f32 %v9631_v53, %v9630_v57  ;;  %v9632_v12 = vld [vmem:[#allocation59_spill] sm:$0xff]  ;;  %v9636_v17 = vld [vmem:[#allocation32_spill] sm:$0xff] }
 0x3a8   :  { %9625 = vst [vmem:[#allocation145_spill] sm:$0xff] %v7632_v30  ;;  %v9633_v30 = vld [vmem:[#allocation23_spill] sm:$0xff] }
 0x3a9   :  { %v2090_v37 = vpop.xlane.xlu2 %2089  ;;  %v2988_v36 = vadd.f32 %v9633_v30, %v9632_v12  ;;  %v9640_v57 = vld [vmem:[#allocation171_spill] sm:$0xff] }
 0x3aa   :  { %v2380_v60 = vsub.f32 %v9628_v43, %v2090_v37  ;;  %v2381_v0 = vsub.f32 %v9629_v52, %v2090_v37  ;;  %v2991_v37 = vadd.f32 %v9636_v17, %v9635_v39  ;;  %v7652_v43 = vpop.xlane.xlu0 %2104  ;;  %v9643_v39 = vld [vmem:[#allocation149_spill] sm:$0xff]  ;;  %v9644_v17 = vld [vmem:[#allocation152_spill] sm:$0xff] }
 0x3ab   :  { %9637 = vst [vmem:[#allocation137_spill] sm:$0xff] %v7652_v43  ;;  %v9649_v43 = vld [vmem:[#allocation66_spill] sm:$0xff] }
 0x3ac   :  { %v7638_v25 = vpop.eup %4902  ;;  %v2820_v7 = vmul.f32 1.442695, %v2380_v60  ;;  %v2822_v21 = vmul.f32 1.442695, %v2381_v0 }
 0x3ad   :  { %v7642_v18 = vpop.eup %4904 }
 0x3ae   :  { %4906 = vpow2.f32 %v2820_v7  ;;  %2986 = vadd.xlane.f32.xlu1 %v2985_v19  ;;  %v7648_v2 = vadd.f32 %v7642_v18, %v7638_v25  ;;  %2989 = vadd.xlane.f32.xlu0 %v2988_v36  ;;  %v9639_v7 = vld [vmem:[#allocation26_spill] sm:$0xff] }
 0x3af   :  { %4908 = vpow2.f32 %v2822_v21  ;;  %2992 = vadd.xlane.f32.xlu2 %v2991_v37  ;;  %v9641_v21 = vld [vmem:[#allocation146_spill] sm:$0xff] }
 0x3b0   :  { %9634 = vst [vmem:[#allocation130_spill] sm:$0xff] %v7648_v2 }
 0x3b1   :  { %v2093_v0 = vpop.xlane.xlu1 %2092  ;;  %v7654_v60 = vpop.xlane.xlu2 %2107 }
 0x3b2   :  { %9638 = vst [vmem:[#allocation118_spill] sm:$0xff] %v7654_v60  ;;  %v2382_v52 = vsub.f32 %v9639_v7, %v2093_v0  ;;  %v2383_v30 = vsub.f32 %v9640_v57, %v2093_v0  ;;  %v237_v7 = vld [vmem:[#allocation7 + $0x10] sm:$0xff]  ;;  %v9654_v60 = vld [vmem:[#allocation186_spill] sm:$0xff] }
 0x3b3   :  { %3367 = vmatmul.f32.gmra.mxu0 %v237_v7  ;;  %3425 = vmatmul.f32.gmra.mxu2 %v237_v7  ;;  %v240_v7 = vld [vmem:[#allocation7 + $0x28] sm:$0xff] }
 0x3b4   :  { %v7658_v19 = vpop.eup %4906  ;;  %v2824_v53 = vmul.f32 1.442695, %v2382_v52  ;;  %v2826_v12 = vmul.f32 1.442695, %v2383_v30  ;;  %v238_v52 = vld [vmem:[#allocation7 + $0x18] sm:$0xff] }
 0x3b5   :  { %v7660_v2 = vpop.eup %4908  ;;  %3396 = vmatmul.f32.gmra.mxu1 %v238_v52  ;;  %3454 = vmatmul.f32.gmra.mxu3 %v238_v52 }
 0x3b6   :  { %4910 = vpow2.f32 %v2824_v53  ;;  %2995 = vadd.xlane.f32.xlu1 %v9641_v21  ;;  %v7665_v36 = vadd.f32 %v7660_v2, %v7658_v19  ;;  %2998 = vadd.xlane.f32.xlu0 %v9643_v39 }
 0x3b7   :  { %4912 = vpow2.f32 %v2826_v12  ;;  %3001 = vadd.xlane.f32.xlu2 %v9644_v17  ;;  %v9647_v17 = vld [vmem:[#allocation35_spill] sm:$0xff] }
 0x3b8   :  { %9642 = vst [vmem:[#allocation133_spill] sm:$0xff] %v7665_v36 }
 0x3b9   :  { %v7669_v37 = vpop.xlane.xlu1 %2101  ;;  %v2096_v0 = vpop.xlane.xlu0 %2095 }
 0x3ba   :  { %9645 = vst [vmem:[#allocation126_spill] sm:$0xff] %v7669_v37  ;;  %v7671_v57 = vpop.xlane.xlu2 %2116  ;;  %v2384_v30 = vsub.f32 %v7342_v33, %v2096_v0  ;;  %v2385_v53 = vsub.f32 %v7353_v9, %v2096_v0  ;;  %v9650_v33 = vld [vmem:[#allocation85_spill] sm:$0xff]  ;;  %v239_v0 = vld [vmem:[#allocation7 + $0x20] sm:$0xff] }
 0x3bb   :  { %9646 = vst [vmem:[#allocation168_spill] sm:$0xff] %v7671_v57  ;;  %3370 = vmatmul.f32.gmra.mxu0 %v239_v0  ;;  %3428 = vmatmul.f32.gmra.mxu2 %v239_v0 }
 0x3bc   :  { %v7675_v21 = vpop.eup %4910  ;;  %v2828_v39 = vmul.f32 1.442695, %v2384_v30  ;;  %v2830_v37 = vmul.f32 1.442695, %v2385_v53 }
 0x3bd   :  { %v7677_v12 = vpop.eup %4912  ;;  %3399 = vmatmul.f32.gmra.mxu1 %v240_v7  ;;  %3457 = vmatmul.f32.gmra.mxu3 %v240_v7  ;;  %v241_v7 = vld [vmem:[#allocation7 + $0x30] sm:$0xff] }
 0x3be   :  { %3004 = vadd.xlane.f32.xlu1 %v9647_v17  ;;  %v7682_v36 = vadd.f32 %v7677_v12, %v7675_v21  ;;  %3007 = vadd.xlane.f32.xlu0 %v9649_v43  ;;  %4914 = vpow2.f32 %v2828_v39  ;;  %v9653_v17 = vld [vmem:[#allocation76_spill] sm:$0xff] }
 0x3bf   :  { %3010 = vadd.xlane.f32.xlu2 %v9650_v33  ;;  %4916 = vpow2.f32 %v2830_v37  ;;  %v9655_v33 = vld [vmem:[#allocation80_spill] sm:$0xff] }
 0x3c0   :  { %9648 = vst [vmem:[#allocation167_spill] sm:$0xff] %v7682_v36  ;;  %v3012_v36 = vadd.f32 %v9654_v60, %v9653_v17  ;;  %v9657_v37 = vld [vmem:[#allocation176_spill] sm:$0xff] }
 0x3c1   :  { %v7686_v9 = vpop.xlane.xlu1 %2110  ;;  %v7688_v52 = vpop.xlane.xlu0 %2113  ;;  %v9661_v17 = vld [vmem:[#allocation180_spill] sm:$0xff] }
 0x3c2   :  { %9651 = vst [vmem:[#allocation28_spill] sm:$0xff] %v7686_v9  ;;  %v2099_v30 = vpop.xlane.xlu2 %2098  ;;  %v9656_v9 = vld [vmem:[#allocation175_spill] sm:$0xff] }
 0x3c3   :  { %9652 = vst [vmem:[#allocation120_spill] sm:$0xff] %v7688_v52  ;;  %v2386_v43 = vsub.f32 %v7382_v20, %v2099_v30  ;;  %v2387_v53 = vsub.f32 %v7387_v51, %v2099_v30  ;;  %v3015_v6 = vadd.f32 %v9656_v9, %v9655_v33  ;;  %v3018_v52 = vadd.f32 %v9658_v34, %v9657_v37  ;;  %v242_v20 = vld [vmem:[#allocation7 + $0x38] sm:$0xff] }
 0x3c4   :  { %v4915_v61 = vpop.eup %4914  ;;  %3373 = vmatmul.f32.gmra.mxu0 %v241_v7  ;;  %v9660_v34 = vld [vmem:[#allocation177_spill] sm:$0xff]  ;;  %3431 = vmatmul.f32.gmra.mxu2 %v241_v7 }
 0x3c5   :  { %v2832_v39 = vmul.f32 1.442695, %v2386_v43  ;;  %v2834_v47 = vmul.f32 1.442695, %v2387_v53  ;;  %v7698_v0 = vpop.eup %4916  ;;  %3402 = vmatmul.f32.gmra.mxu1 %v242_v20  ;;  %3460 = vmatmul.f32.gmra.mxu3 %v242_v20 }
 0x3c6   :  { %3013 = vadd.xlane.f32.xlu1 %v3012_v36  ;;  %3016 = vadd.xlane.f32.xlu0 %v3015_v6  ;;  %v7703_v36 = vadd.f32 %v7698_v0, %v4915_v61  ;;  %v3021_v6 = vadd.f32 %v9661_v17, %v9660_v34  ;;  %v9663_v34 = vld [vmem:[#allocation92_spill] sm:$0xff]  ;;  %v9664_v17 = vld [vmem:[#allocation93_spill] sm:$0xff] }
 0x3c7   :  { %4918 = vpow2.f32 %v2832_v39  ;;  %3019 = vadd.xlane.f32.xlu2 %v3018_v52  ;;  %v3027_v7 = vadd.f32 %v9664_v17, %v9663_v34 }
 0x3c8   :  { %4920 = vpow2.f32 %v2834_v47  ;;  %9659 = vst [vmem:[#allocation111_spill] sm:$0xff] %v7703_v36 }
 0x3c9   :  { %v2120_v60 = vpop.xlane.xlu1 %2119  ;;  %v2123_v30 = vpop.xlane.xlu0 %2122 }
 0x3ca   :  { %v2400_v51 = vsub.f32 %v9546_v27, %v2120_v60  ;;  %v2401_v9 = vsub.f32 %v9545_v3, %v2120_v60  ;;  %v2126_v53 = vpop.xlane.xlu2 %2125  ;;  %v2402_v33 = vsub.f32 %v9549_v45, %v2123_v30  ;;  %v2403_v47 = vsub.f32 %v9548_v55, %v2123_v30  ;;  %v9662_v3 = vld [vmem:[#allocation172_spill] sm:$0xff] }
 0x3cb   :  { %v2374_v27 = vsub.f32 %v9662_v3, %v7618_v5  ;;  %v2404_v39 = vsub.f32 %v9552_v15, %v2126_v53  ;;  %v2405_v37 = vsub.f32 %v9551_v46, %v2126_v53  ;;  %v244_v53 = vld [vmem:[#allocation7 + $0x48] sm:$0xff] }
 0x3cc   :  { %v2860_v43 = vmul.f32 1.442695, %v2400_v51  ;;  %v2862_v52 = vmul.f32 1.442695, %v2401_v9  ;;  %v2864_v60 = vmul.f32 1.442695, %v2402_v33 }
 0x3cd   :  { %v9665_v51 = vld [vmem:[#allocation87_spill] sm:$0xff]  ;;  %v9666_v9 = vld [vmem:[#allocation81_spill] sm:$0xff]  ;;  %v4919_v45 = vpop.eup %4918  ;;  %v2868_v55 = vmul.f32 1.442695, %v2404_v39  ;;  %v2870_v20 = vmul.f32 1.442695, %v2405_v37  ;;  %3509 = vmatmul.f32.vlgmr.msrb.gmra.mxu1 %v244_v53  ;;  %3567 = vmatmul.f32.vlgmr.msrb.gmra.mxu3 %v244_v53 }
 0x3ce   :  { %4922 = vpow2.f32 %v2860_v43  ;;  %v3024_v36 = vadd.f32 %v9666_v9, %v9665_v51  ;;  %3022 = vadd.xlane.f32.xlu1 %v3021_v6  ;;  %v2866_v30 = vmul.f32 1.442695, %v2403_v47  ;;  %v4921_v57 = vpop.eup %4920  ;;  %3638 = vmatpush.xpose.msra.mxu2 %v4919_v45  ;;  %v2808_v15 = vmul.f32 1.442695, %v2374_v27  ;;  %v243_v43 = vld [vmem:[#allocation7 + $0x40] sm:$0xff]  ;;  %v9668_v3 = vld [vmem:[#allocation51_spill] sm:$0xff] }
 0x3cf   :  { %4924 = vpow2.f32 %v2862_v52  ;;  %3667 = vmatpush.xpose.msra.mxu3 %v4921_v57  ;;  %3028 = vadd.xlane.f32.xlu2 %v3027_v7  ;;  %v7717_v33 = vadd.f32 %v4921_v57, %v4919_v45  ;;  %v9669_v39 = vld [vmem:[#allocation105_spill] sm:$0xff]  ;;  %v9670_v27 = vld [vmem:[#allocation158_spill] sm:$0xff] }
 0x3d0   :  { %4926 = vpow2.f32 %v2864_v60  ;;  %3025 = vadd.xlane.f32.xlu0 %v3024_v36  ;;  %3480 = vmatmul.f32.vlgmr.msrb.gmra.mxu0 %v243_v43  ;;  %v3033_v36 = vadd.f32 %v9669_v39, %v9668_v3  ;;  %v9671_v37 = vld [vmem:[#allocation70_spill] sm:$0xff] }
 0x3d1   :  { %4928 = vpow2.f32 %v2868_v55  ;;  %v2129_v46 = vpop.xlane.xlu1 %2128  ;;  %9667 = vst [vmem:[#allocation164_spill] sm:$0xff] %v7717_v33  ;;  %v2132_v47 = vpop.xlane.xlu0 %2131  ;;  %v3030_v60 = vadd.f32 %v9671_v37, %v9670_v27  ;;  %3538 = vmatmul.f32.vlgmr.msrb.gmra.mxu2 %v243_v43  ;;  %v9672_v9 = vld [vmem:[#allocation38_spill] sm:$0xff]  ;;  %v9673_v55 = vld [vmem:[#allocation56_spill] sm:$0xff]  ;;  %v9771_v33 = vld [vmem:[#allocation71_spill] sm:$0xff] }
 0x3d2   :  { %4930 = vpow2.f32 %v2870_v20  ;;  %v2406_v6 = vsub.f32 %v9556_v1, %v2129_v46  ;;  %v2407_v52 = vsub.f32 %v9555_v42, %v2129_v46  ;;  %v2135_v7 = vpop.xlane.xlu2 %2134  ;;  %3639 = vmatpush.xpose.msra.mxu2 %v4915_v61  ;;  %v2408_v1 = vsub.f32 %v9558_v56, %v2132_v47  ;;  %v9675_v56 = vld [vmem:[#allocation60_spill] sm:$0xff] }
 0x3d3   :  { %4932 = vpow2.f32 %v2866_v30  ;;  %v2409_v42 = vsub.f32 %v9557_v29, %v2132_v47  ;;  %v2375_v45 = vsub.f32 %v9672_v9, %v7618_v5  ;;  %v2410_v20 = vsub.f32 %v9673_v55, %v2135_v7  ;;  %v9674_v30 = vld [vmem:[#allocation57_spill] sm:$0xff]  ;;  %3668 = vmatpush.xpose.msra.mxu3 %v7698_v0 }
 0x3d4   :  { %v7725_v34 = vpop.eup %4922  ;;  %v2872_v57 = vmul.f32 1.442695, %v2406_v6  ;;  %v2874_v17 = vmul.f32 1.442695, %v2407_v52  ;;  %4934 = vpow2.f32 %v2808_v15  ;;  %v2411_v46 = vsub.f32 %v9674_v30, %v2135_v7  ;;  %v9676_v6 = vld [vmem:[#allocation84_spill] sm:$0xff] }
 0x3d5   :  { %v7729_v51 = vpop.eup %4924  ;;  %v2876_v61 = vmul.f32 1.442695, %v2408_v1  ;;  %v3036_v29 = vadd.f32 %v9676_v6, %v9675_v56  ;;  %v2880_v15 = vmul.f32 1.442695, %v2410_v20  ;;  %v2878_v47 = vmul.f32 1.442695, %v2409_v42 }
 0x3d6   :  { %v7736_v43 = vpop.eup %4926  ;;  %4936 = vpow2.f32 %v2872_v57  ;;  %3031 = vadd.xlane.f32.xlu1 %v3030_v60  ;;  %v7742_v53 = vadd.f32 %v7729_v51, %v7725_v34  ;;  %v2882_v52 = vmul.f32 1.442695, %v2411_v46  ;;  %3640 = vmatpush.xpose.msra.mxu2 %v7675_v21  ;;  %v2810_v39 = vmul.f32 1.442695, %v2375_v45  ;;  %v9681_v20 = vld [vmem:[#allocation190_spill] sm:$0xff] }
 0x3d7   :  { %v7744_v5 = vpop.eup %4928  ;;  %4938 = vpow2.f32 %v2874_v17  ;;  %3669 = vmatpush.xpose.msra.mxu3 %v7677_v12  ;;  %3037 = vadd.xlane.f32.xlu2 %v3036_v29  ;;  %v9680_v17 = vld [vmem:[#allocation48_spill] sm:$0xff]  ;;  %v2373_v30 = vsub.f32 %v9681_v20, %v7610_v38  ;;  %v9682_v6 = vld [vmem:[#allocation18_spill] sm:$0xff]  ;;  %v9691_v20 = vld [vmem:[#allocation63_spill] sm:$0xff] }
 0x3d8   :  { %9677 = vst [vmem:[#allocation45_spill] sm:$0xff] %v7742_v53  ;;  %v7746_v3 = vpop.eup %4930  ;;  %4940 = vpow2.f32 %v2876_v61  ;;  %3034 = vadd.xlane.f32.xlu0 %v3033_v36  ;;  %v2372_v12 = vsub.f32 %v9680_v17, %v7610_v38  ;;  %v9687_v17 = vld [vmem:[#allocation122_spill] sm:$0xff] }
 0x3d9   :  { %v7749_v0 = vpop.eup %4932  ;;  %4942 = vpow2.f32 %v2880_v15  ;;  %v2138_v27 = vpop.xlane.xlu1 %2137  ;;  %v7754_v37 = vadd.f32 %v7746_v3, %v7744_v5 }
 0x3da   :  { %4944 = vpow2.f32 %v2882_v52  ;;  %v2412_v60 = vsub.f32 %v9566_v54, %v2138_v27  ;;  %v2413_v57 = vsub.f32 %v9565_v23, %v2138_v27  ;;  %v7760_v21 = vadd.f32 %v7749_v0, %v7736_v43  ;;  %v7762_v36 = vpop.eup %4934  ;;  %v2141_v7 = vpop.xlane.xlu0 %2140  ;;  %3641 = vmatpush.xpose.msra.mxu2 %v7658_v19  ;;  %v9686_v27 = vld [vmem:[#allocation62_spill] sm:$0xff] }
 0x3db   :  { %9678 = vst [vmem:[#allocation117_spill] sm:$0xff] %v7754_v37  ;;  %4946 = vpow2.f32 %v2878_v47  ;;  %v2144_v45 = vpop.xlane.xlu2 %2143  ;;  %v2414_v54 = vsub.f32 %v9568_v22, %v2141_v7  ;;  %v2415_v23 = vsub.f32 %v9567_v41, %v2141_v7  ;;  %3670 = vmatpush.xpose.msra.mxu3 %v7660_v2  ;;  %v2804_v52 = vmul.f32 1.442695, %v2372_v12  ;;  %v9685_v47 = vld [vmem:[#allocation131_spill] sm:$0xff] }
 0x3dc   :  { %9679 = vst [vmem:[#allocation21_spill] sm:$0xff] %v7760_v21  ;;  %v7766_v1 = vpop.eup %4936  ;;  %v2884_v42 = vmul.f32 1.442695, %v2412_v60  ;;  %v2886_v9 = vmul.f32 1.442695, %v2413_v57  ;;  %4948 = vpow2.f32 %v2810_v39  ;;  %v2416_v46 = vsub.f32 %v9570_v26, %v2144_v45  ;;  %v9713_v37 = vld [vmem:[#allocation55_spill] sm:$0xff] }
 0x3dd   :  { %v7771_v55 = vpop.eup %4938  ;;  %v2417_v61 = vsub.f32 %v9569_v10, %v2144_v45  ;;  %v2888_v19 = vmul.f32 1.442695, %v2414_v54  ;;  %v2890_v26 = vmul.f32 1.442695, %v2415_v23  ;;  %v9684_v10 = vld [vmem:[#allocation54_spill] sm:$0xff]  ;;  %v2371_v60 = vsub.f32 %v9686_v27, %v7598_v32  ;;  %v9714_v21 = vld [vmem:[#allocation159_spill] sm:$0xff] }
 0x3de   :  { %v7778_v56 = vpop.eup %4940  ;;  %4950 = vpow2.f32 %v2884_v42  ;;  %3040 = vadd.xlane.f32.xlu1 %v9682_v6  ;;  %v7783_v41 = vadd.f32 %v7771_v55, %v7766_v1  ;;  %v2892_v38 = vmul.f32 1.442695, %v2416_v46  ;;  %v2370_v2 = vsub.f32 %v9684_v10, %v7598_v32  ;;  %3642 = vmatpush.xpose.msra.mxu2 %v7638_v25 }
 0x3df   :  { %v7785_v22 = vpop.eup %4942  ;;  %4952 = vpow2.f32 %v2886_v9  ;;  %v2894_v29 = vmul.f32 1.442695, %v2417_v61  ;;  %v2806_v57 = vmul.f32 1.442695, %v2373_v30  ;;  %3671 = vmatpush.xpose.msra.mxu3 %v7642_v18  ;;  %3046 = vadd.xlane.f32.xlu2 %v9687_v17  ;;  %v9690_v18 = vld [vmem:[#allocation138_spill] sm:$0xff]  ;;  %v2357_v30 = vsub.f32 %v9691_v20, %v7569_v14 }
 0x3e0   :  { %9683 = vst [vmem:[#allocation108_spill] sm:$0xff] %v7783_v41  ;;  %v7787_v15 = vpop.eup %4944  ;;  %4954 = vpow2.f32 %v2888_v19  ;;  %3043 = vadd.xlane.f32.xlu0 %v9685_v47  ;;  %v2356_v45 = vsub.f32 %v9690_v18, %v7569_v14  ;;  %v9692_v19 = vld [vmem:[#allocation181_spill] sm:$0xff]  ;;  %v9693_v14 = vld [vmem:[#allocation132_spill] sm:$0xff]  ;;  %v2802_v10 = vmul.f32 1.442695, %v2371_v60  ;;  %v9698_v60 = vld [vmem:[#allocation91_spill] sm:$0xff] }
 0x3e1   :  { %v7793_v39 = vpop.eup %4946  ;;  %4956 = vpow2.f32 %v2892_v38  ;;  %v2147_v7 = vpop.xlane.xlu1 %2146  ;;  %v7801_v12 = vadd.f32 %v7787_v15, %v7785_v22  ;;  %v2368_v6 = vsub.f32 %v9692_v19, %v7608_v62  ;;  %v2800_v38 = vmul.f32 1.442695, %v2370_v2  ;;  %v9696_v2 = vld [vmem:[#allocation50_spill] sm:$0xff] }
 0x3e2   :  { %4958 = vpow2.f32 %v2894_v29  ;;  %v2418_v25 = vsub.f32 %v6940_v40, %v2147_v7  ;;  %v2419_v42 = vsub.f32 %v6942_v13, %v2147_v7  ;;  %v7807_v9 = vadd.f32 %v7793_v39, %v7778_v56  ;;  %v7809_v32 = vpop.eup %4948  ;;  %v7813_v54 = vpop.xlane.xlu0 %2149  ;;  %3643 = vmatpush.xpose.msra.mxu2 %v7622_v49  ;;  %v9697_v7 = vld [vmem:[#allocation115_spill] sm:$0xff] }
 0x3e3   :  { %9688 = vst [vmem:[#allocation127_spill] sm:$0xff] %v7801_v12  ;;  %4960 = vpow2.f32 %v2890_v26  ;;  %v7819_v46 = vpop.xlane.xlu2 %2152  ;;  %3672 = vmatpush.xpose.msra.mxu3 %v7626_v59  ;;  %v2369_v26 = vsub.f32 %v9693_v14, %v7608_v62  ;;  %v2772_v27 = vmul.f32 1.442695, %v2356_v45  ;;  %v2774_v17 = vmul.f32 1.442695, %v2357_v30  ;;  %v9700_v45 = vld [vmem:[#allocation135_spill] sm:$0xff] }
 0x3e4   :  { %9689 = vst [vmem:[#allocation128_spill] sm:$0xff] %v7807_v9  ;;  %v7815_v23 = vpop.eup %4950  ;;  %4962 = vpow2.f32 %v2804_v52  ;;  %v2896_v40 = vmul.f32 1.442695, %v2418_v25  ;;  %v2898_v13 = vmul.f32 1.442695, %v2419_v42  ;;  %v9694_v52 = vld [vmem:[#allocation82_spill] sm:$0xff]  ;;  %v2359_v62 = vsub.f32 %v9697_v7, %v7552_v4 }
 0x3e5   :  { %v7822_v61 = vpop.eup %4952  ;;  %4964 = vpow2.f32 %v2806_v57  ;;  %v2358_v57 = vsub.f32 %v9696_v2, %v7552_v4  ;;  %v9699_v42 = vld [vmem:[#allocation155_spill] sm:$0xff]  ;;  %v2796_v20 = vmul.f32 1.442695, %v2368_v6  ;;  %v2798_v14 = vmul.f32 1.442695, %v2369_v26  ;;  %v9704_v2 = vld [vmem:[#allocation68_spill] sm:$0xff] }
 0x3e6   :  { %v7827_v29 = vpop.eup %4954  ;;  %4966 = vpow2.f32 %v2896_v40  ;;  %3049 = vadd.xlane.f32.xlu1 %v9694_v52  ;;  %v7834_v49 = vadd.f32 %v7822_v61, %v7815_v23  ;;  %3644 = vmatpush.xpose.msra.mxu2 %v7762_v36  ;;  %v2366_v18 = vsub.f32 %v9699_v42, %v7594_v58  ;;  %v2360_v7 = vsub.f32 %v9704_v2, %v7576_v48  ;;  %v9707_v2 = vld [vmem:[#allocation200_spill] sm:$0xff] }
 0x3e7   :  { %v7836_v47 = vpop.eup %4956  ;;  %4968 = vpow2.f32 %v2898_v13  ;;  %3673 = vmatpush.xpose.msra.mxu3 %v7809_v32  ;;  %3055 = vadd.xlane.f32.xlu2 %v9700_v45  ;;  %v9702_v13 = vld [vmem:[#allocation86_spill] sm:$0xff]  ;;  %v2776_v52 = vmul.f32 1.442695, %v2358_v57  ;;  %v2778_v45 = vmul.f32 1.442695, %v2359_v62  ;;  %v9709_v62 = vld [vmem:[#allocation89_spill] sm:$0xff] }
 0x3e8   :  { %9695 = vst [vmem:[#allocation69_spill] sm:$0xff] %v7834_v49  ;;  %v4959_v59 = vpop.eup %4958  ;;  %3052 = vadd.xlane.f32.xlu0 %v9698_v60  ;;  %4970 = vpow2.f32 %v2800_v38  ;;  %v2367_v19 = vsub.f32 %v9702_v13, %v7594_v58  ;;  %v9705_v58 = vld [vmem:[#allocation83_spill] sm:$0xff]  ;;  %v2792_v57 = vmul.f32 1.442695, %v2366_v18  ;;  %v2365_v49 = vsub.f32 %v9709_v62, %v7580_v50  ;;  %v9710_v12 = vld [vmem:[#allocation64_spill] sm:$0xff] }
 0x3e9   :  { %v7844_v25 = vpop.eup %4960  ;;  %v7850_v40 = vpop.xlane.xlu1 %2155  ;;  %v7853_v30 = vadd.f32 %v4959_v59, %v7836_v47  ;;  %4972 = vpow2.f32 %v2802_v10  ;;  %v2362_v26 = vsub.f32 %v9705_v58, %v7590_v35  ;;  %v2780_v18 = vmul.f32 1.442695, %v2360_v7 }
 0x3ea   :  { %v7855_v4 = vpop.eup %4962  ;;  %v7861_v6 = vadd.f32 %v7844_v25, %v7827_v29  ;;  %4974 = vpow2.f32 %v2772_v27  ;;  %v7867_v60 = vpop.xlane.xlu0 %2158  ;;  %v2794_v58 = vmul.f32 1.442695, %v2367_v19 }
 0x3eb   :  { %9701 = vst [vmem:[#allocation65_spill] sm:$0xff] %v7853_v30  ;;  %v7863_v38 = vpop.eup %4964  ;;  %4976 = vpow2.f32 %v2774_v17  ;;  %v7871_v10 = vpop.xlane.xlu2 %2161  ;;  %3645 = vmatpush.xpose.msra.mxu2 %v7855_v4  ;;  %v9706_v30 = vld [vmem:[#allocation88_spill] sm:$0xff] }
 0x3ec   :  { %9703 = vst [vmem:[#allocation22_spill] sm:$0xff] %v7861_v6  ;;  %v4967_v42 = vpop.eup %4966  ;;  %v2364_v27 = vsub.f32 %v9706_v30, %v7580_v50  ;;  %4978 = vpow2.f32 %v2796_v20  ;;  %3674 = vmatpush.xpose.msra.mxu3 %v7863_v38  ;;  %v9708_v6 = vld [vmem:[#allocation201_spill] sm:$0xff]  ;;  %v9712_v20 = vld [vmem:[#allocation72_spill] sm:$0xff]  ;;  %v2784_v50 = vmul.f32 1.442695, %v2362_v26 }
 0x3ed   :  { %v4969_v13 = vpop.eup %4968  ;;  %3696 = vmatpush.xpose.msrb.mxu0 %v4967_v42  ;;  %v3060_v17 = vadd.f32 %v9708_v6, %v9707_v2  ;;  %4980 = vpow2.f32 %v2798_v14  ;;  %v2363_v30 = vsub.f32 %v9712_v20, %v7590_v35  ;;  %v3063_v6 = vadd.f32 %v9714_v21, %v9713_v37  ;;  %v9719_v20 = vld [vmem:[#allocation129_spill] sm:$0xff] }
 0x3ee   :  { %3725 = vmatpush.xpose.msrb.mxu1 %v4969_v13  ;;  %3058 = vadd.xlane.f32.xlu1 %v9710_v12  ;;  %v7882_v9 = vadd.f32 %v4969_v13, %v4967_v42  ;;  %v7884_v41 = vpop.eup %4970  ;;  %4982 = vpow2.f32 %v2776_v52  ;;  %v2788_v19 = vmul.f32 1.442695, %v2364_v27  ;;  %v2790_v52 = vmul.f32 1.442695, %v2365_v49  ;;  %v9715_v49 = vld [vmem:[#allocation198_spill] sm:$0xff]  ;;  %v9716_v27 = vld [vmem:[#allocation199_spill] sm:$0xff] }
 0x3ef   :  { %v7890_v2 = vpop.eup %4972  ;;  %4984 = vpow2.f32 %v2778_v45  ;;  %3646 = vmatpush.xpose.msra.mxu2 %v7884_v41  ;;  %3064 = vadd.xlane.f32.xlu2 %v3063_v6  ;;  %v2786_v21 = vmul.f32 1.442695, %v2363_v30  ;;  %v9720_v6 = vld [vmem:[#allocation195_spill] sm:$0xff] }
 0x3f0   :  { %9711 = vst [vmem:[#allocation124_spill] sm:$0xff] %v7882_v9  ;;  %3061 = vadd.xlane.f32.xlu0 %v3060_v17  ;;  %v7893_v12 = vpop.eup %4974  ;;  %4986 = vpow2.f32 %v2792_v57  ;;  %3675 = vmatpush.xpose.msra.mxu3 %v7890_v2  ;;  %v3066_v57 = vadd.f32 %v9716_v27, %v9715_v49 }
 0x3f1   :  { %v7896_v14 = vpop.xlane.xlu1 %2164  ;;  %v7898_v35 = vpop.eup %4976  ;;  %4988 = vpow2.f32 %v2794_v58  ;;  %3697 = vmatpush.xpose.msrb.mxu0 %v7836_v47 }
 0x3f2   :  { %3726 = vmatpush.xpose.msrb.mxu1 %v4959_v59  ;;  %v7901_v37 = vpop.eup %4978  ;;  %4990 = vpow2.f32 %v2780_v18  ;;  %v2168_v7 = vpop.xlane.xlu0 %2167  ;;  %v9717_v59 = vld [vmem:[#allocation61_spill] sm:$0xff] }
 0x3f3   :  { %v7903_v42 = vpop.eup %4980  ;;  %4992 = vpow2.f32 %v2784_v50  ;;  %v2171_v45 = vpop.xlane.xlu2 %2170  ;;  %3647 = vmatpush.xpose.msra.mxu2 %v7901_v37  ;;  %v2432_v26 = vsub.f32 %v9598_v28, %v2168_v7  ;;  %v2433_v13 = vsub.f32 %v9597_v63, %v2168_v7  ;;  %v2361_v17 = vsub.f32 %v9717_v59, %v7576_v48  ;;  %v9718_v63 = vld [vmem:[#allocation39_spill] sm:$0xff]  ;;  %v9721_v48 = vld [vmem:[#allocation196_spill] sm:$0xff] }
 0x3f4   :  { %v7910_v47 = vpop.eup %4982  ;;  %4994 = vpow2.f32 %v2788_v19  ;;  %v2434_v62 = vsub.f32 %v9600_v31, %v2171_v45  ;;  %v2435_v58 = vsub.f32 %v9599_v11, %v2171_v45  ;;  %3676 = vmatpush.xpose.msra.mxu3 %v7903_v42  ;;  %v3072_v30 = vadd.f32 %v9719_v20, %v9718_v63  ;;  %v9724_v63 = vld [vmem:[#allocation165_spill] sm:$0xff] }
 0x3f5   :  { %v7917_v18 = vpop.eup %4984  ;;  %4996 = vpow2.f32 %v2790_v52  ;;  %v2924_v28 = vmul.f32 1.442695, %v2432_v26  ;;  %3698 = vmatpush.xpose.msrb.mxu0 %v7827_v29  ;;  %v3069_v50 = vadd.f32 %v9721_v48, %v9720_v6  ;;  %v2926_v7 = vmul.f32 1.442695, %v2433_v13 }
 0x3f6   :  { %3727 = vmatpush.xpose.msrb.mxu1 %v7844_v25  ;;  %v7925_v19 = vpop.eup %4986  ;;  %4998 = vpow2.f32 %v2786_v21  ;;  %v2928_v11 = vmul.f32 1.442695, %v2434_v62  ;;  %v2930_v31 = vmul.f32 1.442695, %v2435_v58  ;;  %3067 = vadd.xlane.f32.xlu1 %v3066_v57  ;;  %v2782_v25 = vmul.f32 1.442695, %v2361_v17 }
 0x3f7   :  { %v7927_v45 = vpop.eup %4988  ;;  %5000 = vpow2.f32 %v2924_v28  ;;  %3648 = vmatpush.xpose.msra.mxu2 %v7925_v19  ;;  %3073 = vadd.xlane.f32.xlu2 %v3072_v30  ;;  %v9725_v30 = vld [vmem:[#allocation170_spill] sm:$0xff] }
 0x3f8   :  { %3070 = vadd.xlane.f32.xlu0 %v3069_v50  ;;  %v7930_v29 = vpop.eup %4990  ;;  %5002 = vpow2.f32 %v2928_v11  ;;  %3677 = vmatpush.xpose.msra.mxu3 %v7927_v45 }
 0x3f9   :  { %v2174_v52 = vpop.xlane.xlu1 %2173  ;;  %v7933_v26 = vpop.eup %4992  ;;  %5004 = vpow2.f32 %v2930_v31  ;;  %3699 = vmatpush.xpose.msrb.mxu0 %v7815_v23  ;;  %v9722_v23 = vld [vmem:[#allocation168_spill] sm:$0xff] }
 0x3fa   :  { %v2436_v21 = vsub.f32 %v7384_v16, %v2174_v52  ;;  %v2437_v13 = vsub.f32 %v7389_v8, %v2174_v52  ;;  %3728 = vmatpush.xpose.msrb.mxu1 %v7822_v61  ;;  %v7939_v49 = vpop.eup %4994  ;;  %5006 = vpow2.f32 %v2926_v7  ;;  %v2177_v27 = vpop.xlane.xlu0 %2176  ;;  %v9723_v61 = vld [vmem:[#allocation162_spill] sm:$0xff] }
 0x3fb   :  { %v7941_v57 = vpop.eup %4996  ;;  %v2180_v62 = vpop.xlane.xlu2 %2179  ;;  %3649 = vmatpush.xpose.msra.mxu2 %v7939_v49  ;;  %v2438_v58 = vsub.f32 %v7418_v24, %v2177_v27  ;;  %v2439_v16 = vsub.f32 %v7420_v44, %v2177_v27  ;;  %5008 = vpow2.f32 %v2782_v25  ;;  %v2398_v28 = vsub.f32 %v9723_v61, %v9722_v23  ;;  %v9726_v24 = vld [vmem:[#allocation189_spill] sm:$0xff]  ;;  %v9727_v44 = vld [vmem:[#allocation44_spill] sm:$0xff]  ;;  %v9729_v27 = vld [vmem:[#allocation67_spill] sm:$0xff] }
 0x3fc   :  { %v2932_v59 = vmul.f32 1.442695, %v2436_v21  ;;  %v2934_v17 = vmul.f32 1.442695, %v2437_v13  ;;  %v7946_v8 = vpop.eup %4998  ;;  %v2440_v20 = vsub.f32 %v9724_v63, %v2180_v62  ;;  %v2441_v6 = vsub.f32 %v9725_v30, %v2180_v62  ;;  %3678 = vmatpush.xpose.msra.mxu3 %v7941_v57  ;;  %v9728_v21 = vld [vmem:[#allocation116_spill] sm:$0xff]  ;;  %v9731_v62 = vld [vmem:[#allocation169_spill] sm:$0xff] }
 0x3fd   :  { %v7953_v48 = vpop.eup %5000  ;;  %v2936_v50 = vmul.f32 1.442695, %v2438_v58  ;;  %3700 = vmatpush.xpose.msrb.mxu0 %v7785_v22  ;;  %v3078_v11 = vadd.f32 %v9727_v44, %v9726_v24  ;;  %v2938_v52 = vmul.f32 1.442695, %v2439_v16  ;;  %v9732_v16 = vld [vmem:[#allocation97_spill] sm:$0xff] }
 0x3fe   :  { %5010 = vpow2.f32 %v2932_v59  ;;  %3729 = vmatpush.xpose.msrb.mxu1 %v7787_v15  ;;  %v7959_v31 = vpop.eup %5002  ;;  %v2940_v7 = vmul.f32 1.442695, %v2440_v20  ;;  %v2942_v25 = vmul.f32 1.442695, %v2441_v6  ;;  %3076 = vadd.xlane.f32.xlu1 %v9728_v21  ;;  %v2856_v15 = vmul.f32 1.442695, %v2398_v28 }
 0x3ff   :  { %5012 = vpow2.f32 %v2934_v17  ;;  %v7962_v13 = vpop.eup %5004  ;;  %3650 = vmatpush.xpose.msra.mxu2 %v7933_v26  ;;  %3082 = vadd.xlane.f32.xlu2 %v9729_v27  ;;  %v9734_v44 = vld [vmem:[#allocation109_spill] sm:$0xff]  ;;  %v9737_v27 = vld [vmem:[#allocation110_spill] sm:$0xff] }
 0x400   :  { %5014 = vpow2.f32 %v2936_v50  ;;  %3079 = vadd.xlane.f32.xlu0 %v3078_v11  ;;  %v7965_v22 = vpop.eup %5006  ;;  %3679 = vmatpush.xpose.msra.mxu3 %v7946_v8  ;;  %v7971_v17 = vadd.f32 %v7962_v13, %v7959_v31 }
 0x401   :  { %5016 = vpow2.f32 %v2940_v7  ;;  %v2183_v59 = vpop.xlane.xlu1 %2182  ;;  %3701 = vmatpush.xpose.msrb.mxu0 %v7778_v56  ;;  %v7979_v28 = vadd.f32 %v7965_v22, %v7953_v48  ;;  %v7981_v63 = vpop.eup %5008  ;;  %v9735_v56 = vld [vmem:[#allocation90_spill] sm:$0xff] }
 0x402   :  { %9730 = vst [vmem:[#allocation136_spill] sm:$0xff] %v7971_v17  ;;  %5018 = vpow2.f32 %v2942_v25  ;;  %v2442_v58 = vsub.f32 %v9731_v62, %v2183_v59  ;;  %v2443_v61 = vsub.f32 %v9732_v16, %v2183_v59  ;;  %3730 = vmatpush.xpose.msrb.mxu1 %v7793_v39  ;;  %v2186_v20 = vpop.xlane.xlu0 %2185  ;;  %v9736_v25 = vld [vmem:[#allocation163_spill] sm:$0xff]  ;;  %v9738_v59 = vld [vmem:[#allocation98_spill] sm:$0xff]  ;;  %v9753_v17 = vld [vmem:[#allocation37_spill] sm:$0xff] }
 0x403   :  { %9733 = vst [vmem:[#allocation27_spill] sm:$0xff] %v7979_v28  ;;  %5020 = vpow2.f32 %v2938_v52  ;;  %v2189_v24 = vpop.xlane.xlu2 %2188  ;;  %3651 = vmatpush.xpose.msra.mxu2 %v7930_v29  ;;  %v2444_v11 = vsub.f32 %v9734_v44, %v2186_v20  ;;  %v2445_v7 = vsub.f32 %v9735_v56, %v2186_v20  ;;  %v2399_v21 = vsub.f32 %v9736_v25, %v9722_v23  ;;  %v9740_v44 = vld [vmem:[#allocation73_spill] sm:$0xff]  ;;  %v9743_v25 = vld [vmem:[#allocation102_spill] sm:$0xff] }
 0x404   :  { %v7983_v30 = vpop.eup %5010  ;;  %v2944_v6 = vmul.f32 1.442695, %v2442_v58  ;;  %v2946_v50 = vmul.f32 1.442695, %v2443_v61  ;;  %5022 = vpow2.f32 %v2856_v15  ;;  %v2446_v52 = vsub.f32 %v9737_v27, %v2189_v24  ;;  %3680 = vmatpush.xpose.msra.mxu3 %v7981_v63 }
 0x405   :  { %v7988_v39 = vpop.eup %5012  ;;  %v2447_v62 = vsub.f32 %v9738_v59, %v2189_v24  ;;  %v2948_v16 = vmul.f32 1.442695, %v2444_v11  ;;  %3702 = vmatpush.xpose.msrb.mxu0 %v7766_v1  ;;  %v2950_v24 = vmul.f32 1.442695, %v2445_v7  ;;  %v9741_v1 = vld [vmem:[#allocation143_spill] sm:$0xff]  ;;  %v9742_v11 = vld [vmem:[#allocation120_spill] sm:$0xff] }
 0x406   :  { %v7995_v58 = vpop.eup %5014  ;;  %5024 = vpow2.f32 %v2944_v6  ;;  %3731 = vmatpush.xpose.msrb.mxu1 %v7771_v55  ;;  %v8001_v61 = vadd.f32 %v7988_v39, %v7983_v30  ;;  %v2952_v15 = vmul.f32 1.442695, %v2446_v52  ;;  %3085 = vadd.xlane.f32.xlu1 %v9740_v44  ;;  %v2858_v6 = vmul.f32 1.442695, %v2399_v21  ;;  %v9746_v59 = vld [vmem:[#allocation154_spill] sm:$0xff] }
 0x407   :  { %v8003_v23 = vpop.eup %5016  ;;  %5026 = vpow2.f32 %v2946_v50  ;;  %v2954_v20 = vmul.f32 1.442695, %v2447_v62  ;;  %3652 = vmatpush.xpose.msra.mxu2 %v7910_v47  ;;  %v2396_v27 = vsub.f32 %v9743_v25, %v9742_v11  ;;  %v9744_v50 = vld [vmem:[#allocation95_spill] sm:$0xff] }
 0x408   :  { %9739 = vst [vmem:[#allocation121_spill] sm:$0xff] %v8001_v61  ;;  %v8006_v56 = vpop.eup %5018  ;;  %5028 = vpow2.f32 %v2948_v16  ;;  %3088 = vadd.xlane.f32.xlu0 %v9741_v1  ;;  %3681 = vmatpush.xpose.msra.mxu3 %v7917_v18  ;;  %v9747_v16 = vld [vmem:[#allocation150_spill] sm:$0xff]  ;;  %v9749_v1 = vld [vmem:[#allocation123_spill] sm:$0xff] }
 0x409   :  { %v8010_v55 = vpop.eup %5020  ;;  %5030 = vpow2.f32 %v2952_v15  ;;  %3091 = vadd.xlane.f32.xlu2 %v9744_v50  ;;  %v2192_v7 = vpop.xlane.xlu1 %2191  ;;  %v8018_v52 = vadd.f32 %v8006_v56, %v8003_v23  ;;  %3703 = vmatpush.xpose.msrb.mxu0 %v7744_v5  ;;  %v2397_v25 = vsub.f32 %v9749_v1, %v9742_v11  ;;  %v9750_v5 = vld [vmem:[#allocation148_spill] sm:$0xff]  ;;  %v2852_v9 = vmul.f32 1.442695, %v2396_v27 }
 0x40a   :  { %5032 = vpow2.f32 %v2954_v20  ;;  %v2448_v62 = vsub.f32 %v9746_v59, %v2192_v7  ;;  %v2449_v44 = vsub.f32 %v9747_v16, %v2192_v7  ;;  %3732 = vmatpush.xpose.msrb.mxu1 %v7746_v3  ;;  %v8026_v21 = vadd.f32 %v8010_v55, %v7995_v58  ;;  %v8028_v15 = vpop.eup %5022  ;;  %v2195_v50 = vpop.xlane.xlu0 %2194  ;;  %v9751_v3 = vld [vmem:[#allocation144_spill] sm:$0xff] }
 0x40b   :  { %9745 = vst [vmem:[#allocation59_spill] sm:$0xff] %v8018_v52  ;;  %5034 = vpow2.f32 %v2950_v24  ;;  %3653 = vmatpush.xpose.msra.mxu2 %v7893_v12  ;;  %v2450_v7 = vsub.f32 %v9750_v5, %v2195_v50  ;;  %v2451_v16 = vsub.f32 %v9751_v3, %v2195_v50  ;;  %v2854_v1 = vmul.f32 1.442695, %v2397_v25  ;;  %v9756_v50 = vld [vmem:[#allocation75_spill] sm:$0xff]  ;;  %v9757_v5 = vld [vmem:[#allocation25_spill] sm:$0xff]  ;;  %v9760_v3 = vld [vmem:[#allocation118_spill] sm:$0xff] }
 0x40c   :  { %9748 = vst [vmem:[#allocation23_spill] sm:$0xff] %v8026_v21  ;;  %v8032_v20 = vpop.eup %5024  ;;  %v2956_v59 = vmul.f32 1.442695, %v2448_v62  ;;  %v2958_v52 = vmul.f32 1.442695, %v2449_v44  ;;  %5036 = vpow2.f32 %v2858_v6  ;;  %v9752_v21 = vld [vmem:[#allocation28_spill] sm:$0xff]  ;;  %3682 = vmatpush.xpose.msra.mxu3 %v7898_v35 }
 0x40d   :  { %v8037_v61 = vpop.eup %5026  ;;  %v2394_v28 = vsub.f32 %v9753_v17, %v9752_v21  ;;  %v2960_v11 = vmul.f32 1.442695, %v2450_v7  ;;  %v2962_v62 = vmul.f32 1.442695, %v2451_v16  ;;  %3704 = vmatpush.xpose.msrb.mxu0 %v7736_v43  ;;  %v9755_v17 = vld [vmem:[#allocation31_spill] sm:$0xff]  ;;  %v9761_v16 = vld [vmem:[#allocation41_spill] sm:$0xff] }
 0x40e   :  { %v8042_v24 = vpop.eup %5028  ;;  %5038 = vpow2.f32 %v2956_v59  ;;  %3733 = vmatpush.xpose.msrb.mxu1 %v7749_v0  ;;  %v8048_v44 = vadd.f32 %v8037_v61, %v8032_v20  ;;  %v2395_v27 = vsub.f32 %v9755_v17, %v9752_v21  ;;  %3094 = vadd.xlane.f32.xlu1 %v9756_v50  ;;  %v9758_v0 = vld [vmem:[#allocation99_spill] sm:$0xff] }
 0x40f   :  { %v8050_v6 = vpop.eup %5030  ;;  %5040 = vpow2.f32 %v2958_v52  ;;  %v2848_v21 = vmul.f32 1.442695, %v2394_v28  ;;  %v9765_v28 = vld [vmem:[#allocation137_spill] sm:$0xff] }
 0x410   :  { %9754 = vst [vmem:[#allocation96_spill] sm:$0xff] %v8048_v44  ;;  %v5033_v59 = vpop.eup %5032  ;;  %5042 = vpow2.f32 %v2960_v11  ;;  %3097 = vadd.xlane.f32.xlu0 %v9757_v5  ;;  %v2392_v44 = vsub.f32 %v9761_v16, %v9760_v3  ;;  %v9764_v11 = vld [vmem:[#allocation42_spill] sm:$0xff]  ;;  %v2850_v17 = vmul.f32 1.442695, %v2395_v27 }
 0x411   :  { %v8056_v43 = vpop.eup %5034  ;;  %5044 = vpow2.f32 %v2962_v62  ;;  %3100 = vadd.xlane.f32.xlu2 %v9758_v0  ;;  %v8060_v7 = vadd.f32 %v5033_v59, %v8050_v6  ;;  %3705 = vmatpush.xpose.msrb.mxu0 %v7725_v34  ;;  %v2393_v62 = vsub.f32 %v9764_v11, %v9760_v3  ;;  %v9770_v11 = vld [vmem:[#allocation166_spill] sm:$0xff] }
 0x412   :  { %5046 = vpow2.f32 %v2852_v9  ;;  %3734 = vmatpush.xpose.msrb.mxu1 %v7729_v51  ;;  %v8068_v52 = vadd.f32 %v8056_v43, %v8042_v24  ;;  %v8070_v25 = vpop.eup %5036  ;;  %v9766_v9 = vld [vmem:[#allocation52_spill] sm:$0xff]  ;;  %v2844_v34 = vmul.f32 1.442695, %v2392_v44 }
 0x413   :  { %9759 = vst [vmem:[#allocation32_spill] sm:$0xff] %v8060_v7  ;;  %5048 = vpow2.f32 %v2854_v1  ;;  %v2390_v16 = vsub.f32 %v9766_v9, %v9765_v28  ;;  %v2846_v27 = vmul.f32 1.442695, %v2393_v62  ;;  %v9769_v1 = vld [vmem:[#allocation19_spill] sm:$0xff]  ;;  %v9774_v62 = vld [vmem:[#allocation20_spill] sm:$0xff] }
 0x414   :  { %9762 = vst [vmem:[#allocation26_spill] sm:$0xff] %v8068_v52  ;;  %v5039_v50 = vpop.eup %5038  ;;  %5050 = vpow2.f32 %v2848_v21  ;;  %v9768_v52 = vld [vmem:[#allocation161_spill] sm:$0xff]  ;;  %v3108_v53 = vadd.f32 %v9770_v11, %v9769_v1  ;;  %v9772_v21 = vld [vmem:[#allocation104_spill] sm:$0xff] }
 0x415   :  { %9763 = vst [vmem:[#allocation171_spill] sm:$0xff] %v8070_v25  ;;  %v5041_v5 = vpop.eup %5040  ;;  %3706 = vmatpush.xpose.msrb.mxu0 %v8028_v15  ;;  %v2391_v3 = vsub.f32 %v9768_v52, %v9765_v28  ;;  %5052 = vpow2.f32 %v2850_v17  ;;  %v9773_v52 = vld [vmem:[#allocation126_spill] sm:$0xff]  ;;  %v9775_v28 = vld [vmem:[#allocation49_spill] sm:$0xff] }
 0x416   :  { %v5043_v0 = vpop.eup %5042  ;;  %3735 = vmatpush.xpose.msrb.mxu1 %v8070_v25  ;;  %v8078_v51 = vadd.f32 %v5041_v5, %v5039_v50  ;;  %3103 = vadd.xlane.f32.xlu1 %v9771_v33  ;;  %v2840_v25 = vmul.f32 1.442695, %v2390_v16  ;;  %5054 = vpow2.f32 %v2844_v34  ;;  %v2388_v17 = vsub.f32 %v9774_v62, %v9773_v52  ;;  %v9777_v16 = vld [vmem:[#allocation74_spill] sm:$0xff] }
 0x417   :  { %v5045_v7 = vpop.eup %5044  ;;  %3754 = vmatpush.xpose.msrb.mxu2 %v5043_v0  ;;  %v2842_v33 = vmul.f32 1.442695, %v2391_v3  ;;  %5056 = vpow2.f32 %v2846_v27  ;;  %v2389_v1 = vsub.f32 %v9775_v28, %v9773_v52  ;;  %v9778_v3 = vld [vmem:[#allocation107_spill] sm:$0xff]  ;;  %v9779_v27 = vld [vmem:[#allocation100_spill] sm:$0xff] }
 0x418   :  { %9767 = vst [vmem:[#allocation146_spill] sm:$0xff] %v8078_v51  ;;  %v8085_v44 = vpop.eup %5046  ;;  %3783 = vmatpush.xpose.msrb.mxu3 %v5045_v7  ;;  %3106 = vadd.xlane.f32.xlu0 %v9772_v21  ;;  %v8088_v9 = vadd.f32 %v5045_v7, %v5043_v0  ;;  %5058 = vpow2.f32 %v2840_v25  ;;  %v2836_v11 = vmul.f32 1.442695, %v2388_v17  ;;  %v3114_v21 = vadd.f32 %v9779_v27, %v9778_v3  ;;  %v9789_v3 = vld [vmem:[#allocation160_spill] sm:$0xff] }
 0x419   :  { %v8090_v51 = vpop.eup %5048  ;;  %3109 = vadd.xlane.f32.xlu2 %v3108_v53  ;;  %3707 = vmatpush.xpose.msrb.mxu0 %v8085_v44  ;;  %v9776_v53 = vld [vmem:[#allocation101_spill] sm:$0xff]  ;;  %5060 = vpow2.f32 %v2842_v33  ;;  %v2838_v52 = vmul.f32 1.442695, %v2389_v1  ;;  %v9783_v33 = vld [vmem:[#allocation203_spill] sm:$0xff]  ;;  %v2431_v27 = vsub.f32 %v9789_v3, %v7896_v14 }
 0x41a   :  { %3736 = vmatpush.xpose.msrb.mxu1 %v8090_v51  ;;  %v8098_v7 = vpop.eup %5050  ;;  %v3111_v34 = vadd.f32 %v9777_v16, %v9776_v53  ;;  %5062 = vpow2.f32 %v2836_v11  ;;  %v9784_v53 = vld [vmem:[#allocation141_spill] sm:$0xff] }
 0x41b   :  { %3755 = vmatpush.xpose.msrb.mxu2 %v5039_v50  ;;  %v8100_v0 = vpop.eup %5052  ;;  %v9780_v50 = vld [vmem:[#allocation112_spill] sm:$0xff]  ;;  %5064 = vpow2.f32 %v2838_v52  ;;  %v9788_v11 = vld [vmem:[#allocation185_spill] sm:$0xff] }
 0x41c   :  { %3784 = vmatpush.xpose.msrb.mxu3 %v5041_v5  ;;  %v9781_v5 = vld [vmem:[#allocation113_spill] sm:$0xff]  ;;  %v8111_v28 = vpop.eup %5054 }
 0x41d   :  { %3708 = vmatpush.xpose.msrb.mxu0 %v8098_v7  ;;  %v3117_v62 = vadd.f32 %v9781_v5, %v9780_v50  ;;  %v8113_v25 = vpop.eup %5056  ;;  %v9792_v52 = vld [vmem:[#allocation29_spill] sm:$0xff]  ;;  %v2922_v5 = vmul.f32 1.442695, %v2431_v27 }
 0x41e   :  { %3737 = vmatpush.xpose.msrb.mxu1 %v8100_v0  ;;  %3112 = vadd.xlane.f32.xlu1 %v3111_v34  ;;  %v9787_v34 = vld [vmem:[#allocation36_spill] sm:$0xff]  ;;  %v2429_v50 = vsub.f32 %v9792_v52, %v7871_v10 }
 0x41f   :  { %3756 = vmatpush.xpose.msrb.mxu2 %v8050_v6  ;;  %v8118_v6 = vpop.eup %5058 }
 0x420   :  { %3785 = vmatpush.xpose.msrb.mxu3 %v5033_v59  ;;  %3115 = vadd.xlane.f32.xlu0 %v3114_v21  ;;  %v8121_v17 = vpop.eup %5060  ;;  %v9782_v59 = vld [vmem:[#allocation119_spill] sm:$0xff]  ;;  %v9790_v21 = vld [vmem:[#allocation142_spill] sm:$0xff] }
 0x421   :  { %3118 = vadd.xlane.f32.xlu2 %v3117_v62  ;;  %3709 = vmatpush.xpose.msrb.mxu0 %v8111_v28  ;;  %v3123_v1 = vadd.f32 %v9783_v33, %v9782_v59  ;;  %v8129_v16 = vpop.eup %5062  ;;  %v2918_v33 = vmul.f32 1.442695, %v2429_v50 }
 0x422   :  { %3738 = vmatpush.xpose.msrb.mxu1 %v8113_v25 }
 0x423   :  { %3757 = vmatpush.xpose.msrb.mxu2 %v8042_v24  ;;  %v8132_v24 = vpop.eup %5064 }
 0x424   :  { %3786 = vmatpush.xpose.msrb.mxu3 %v8056_v43  ;;  %v9785_v43 = vld [vmem:[#allocation53_spill] sm:$0xff] }
 0x425   :  { %3710 = vmatpush.xpose.msrb.mxu0 %v8118_v6 }
 0x426   :  { %3739 = vmatpush.xpose.msrb.mxu1 %v8121_v17  ;;  %3121 = vadd.xlane.f32.xlu1 %v9784_v53 }
 0x427   :  { %3758 = vmatpush.xpose.msrb.mxu2 %v8032_v20  ;;  %v9786_v20 = vld [vmem:[#allocation58_spill] sm:$0xff] }
 0x428   :  { %3787 = vmatpush.xpose.msrb.mxu3 %v8037_v61  ;;  %3124 = vadd.xlane.f32.xlu0 %v3123_v1  ;;  %v2430_v61 = vsub.f32 %v9787_v34, %v7896_v14  ;;  %v9794_v14 = vld [vmem:[#allocation191_spill] sm:$0xff] }
 0x429   :  { %3127 = vadd.xlane.f32.xlu2 %v9785_v43  ;;  %3711 = vmatpush.xpose.msrb.mxu0 %v8129_v16  ;;  %v2426_v59 = vsub.f32 %v9794_v14, %v7867_v60 }
 0x42a   :  { %3740 = vmatpush.xpose.msrb.mxu1 %v8132_v24 }
 0x42b   :  { %3759 = vmatpush.xpose.msrb.mxu2 %v8003_v23  ;;  %v9791_v23 = vld [vmem:[#allocation33_spill] sm:$0xff]  ;;  %v2912_v43 = vmul.f32 1.442695, %v2426_v59  ;;  %v9807_v59 = vld [vmem:[#allocation151_spill] sm:$0xff] }
 0x42c   :  { %3788 = vmatpush.xpose.msrb.mxu3 %v8006_v56  ;;  %v2428_v56 = vsub.f32 %v9791_v23, %v7871_v10  ;;  %v9797_v10 = vld [vmem:[#allocation43_spill] sm:$0xff] }
 0x42e   :  { %3130 = vadd.xlane.f32.xlu1 %v9786_v20  ;;  %v2916_v62 = vmul.f32 1.442695, %v2428_v56  ;;  %v9804_v56 = vld [vmem:[#allocation34_spill] sm:$0xff] }
 0x42f   :  { %3760 = vmatpush.xpose.msrb.mxu2 %v7995_v58  ;;  %v2920_v58 = vmul.f32 1.442695, %v2430_v61 }
 0x430   :  { %3789 = vmatpush.xpose.msrb.mxu3 %v8010_v55  ;;  %3133 = vadd.xlane.f32.xlu0 %v9788_v11  ;;  %v9793_v55 = vld [vmem:[#allocation194_spill] sm:$0xff]  ;;  %v9800_v11 = vld [vmem:[#allocation197_spill] sm:$0xff] }
 0x431   :  { %3136 = vadd.xlane.f32.xlu2 %v9790_v21  ;;  %5066 = vpow2.f32 %v2920_v58 }
 0x432   :  { %5068 = vpow2.f32 %v2922_v5  ;;  %v9805_v5 = vld [vmem:[#allocation178_spill] sm:$0xff] }
 0x433   :  { %3761 = vmatpush.xpose.msrb.mxu2 %v7983_v30  ;;  %v9795_v30 = vld [vmem:[#allocation188_spill] sm:$0xff]  ;;  %5070 = vpow2.f32 %v2916_v62 }
 0x434   :  { %3790 = vmatpush.xpose.msrb.mxu3 %v7988_v39  ;;  %v9796_v39 = vld [vmem:[#allocation192_spill] sm:$0xff]  ;;  %5072 = vpow2.f32 %v2918_v33 }
 0x435   :  { %v2427_v1 = vsub.f32 %v9796_v39, %v7867_v60  ;;  %5074 = vpow2.f32 %v2912_v43  ;;  %v9811_v43 = vld [vmem:[#allocation79_spill] sm:$0xff] }
 0x436   :  { %3139 = vadd.xlane.f32.xlu1 %v9793_v55  ;;  %v2420_v55 = vsub.f32 %v9805_v5, %v7813_v54  ;;  %v9817_v5 = vld [vmem:[#allocation46_spill] sm:$0xff] }
 0x437   :  { %3762 = vmatpush.xpose.msrb.mxu2 %v7959_v31  ;;  %v9798_v31 = vld [vmem:[#allocation47_spill] sm:$0xff]  ;;  %v2914_v34 = vmul.f32 1.442695, %v2427_v1  ;;  %v8169_v61 = vpop.eup %5066  ;;  %v9809_v1 = vld [vmem:[#allocation157_spill] sm:$0xff] }
 0x438   :  { %3791 = vmatpush.xpose.msrb.mxu3 %v7962_v13  ;;  %3142 = vadd.xlane.f32.xlu0 %v9795_v30  ;;  %v2424_v53 = vsub.f32 %v9798_v31, %v7850_v40  ;;  %v9799_v13 = vld [vmem:[#allocation187_spill] sm:$0xff]  ;;  %v8171_v60 = vpop.eup %5068 }
 0x439   :  { %3145 = vadd.xlane.f32.xlu2 %v9797_v10  ;;  %v2425_v20 = vsub.f32 %v9799_v13, %v7850_v40  ;;  %v9803_v40 = vld [vmem:[#allocation184_spill] sm:$0xff]  ;;  %5076 = vpow2.f32 %v2914_v34  ;;  %v8182_v58 = vpop.eup %5070  ;;  %v9808_v30 = vld [vmem:[#allocation147_spill] sm:$0xff]  ;;  %v9810_v10 = vld [vmem:[#allocation153_spill] sm:$0xff]  ;;  %v2900_v34 = vmul.f32 1.442695, %v2420_v55 }
 0x43a   :  { %v2908_v27 = vmul.f32 1.442695, %v2424_v53  ;;  %v2423_v21 = vsub.f32 %v9803_v40, %v7819_v46  ;;  %v8184_v52 = vpop.eup %5072  ;;  %v3156_v33 = vadd.f32 %v9808_v30, %v9807_v59  ;;  %v3159_v31 = vadd.f32 %v9810_v10, %v9809_v1  ;;  %v9812_v13 = vld [vmem:[#allocation156_spill] sm:$0xff]  ;;  %v9818_v55 = vld [vmem:[#allocation78_spill] sm:$0xff]  ;;  %v9821_v10 = vld [vmem:[#allocation125_spill] sm:$0xff] }
 0x43b   :  { %3763 = vmatpush.xpose.msrb.mxu2 %v7953_v48  ;;  %v9801_v48 = vld [vmem:[#allocation183_spill] sm:$0xff]  ;;  %v2910_v23 = vmul.f32 1.442695, %v2425_v20  ;;  %v8194_v39 = vpop.eup %5074  ;;  %v3162_v20 = vadd.f32 %v9812_v13, %v9811_v43  ;;  %v9819_v30 = vld [vmem:[#allocation140_spill] sm:$0xff]  ;;  %v9823_v13 = vld [vmem:[#allocation202_spill] sm:$0xff] }
 0x43c   :  { %3792 = vmatpush.xpose.msrb.mxu3 %v7965_v22  ;;  %v2422_v3 = vsub.f32 %v9801_v48, %v7819_v46  ;;  %v9802_v22 = vld [vmem:[#allocation193_spill] sm:$0xff]  ;;  %5078 = vpow2.f32 %v2908_v27  ;;  %v2906_v62 = vmul.f32 1.442695, %v2423_v21  ;;  %v9806_v46 = vld [vmem:[#allocation179_spill] sm:$0xff]  ;;  %v9814_v27 = vld [vmem:[#allocation40_spill] sm:$0xff] }
 0x43d   :  { %v2421_v14 = vsub.f32 %v9806_v46, %v7813_v54  ;;  %5080 = vpow2.f32 %v2910_v23  ;;  %v9815_v21 = vld [vmem:[#allocation77_spill] sm:$0xff]  ;;  %v9816_v23 = vld [vmem:[#allocation94_spill] sm:$0xff]  ;;  %v8221_v46 = vpop.xlane.xlu2 %2965 }
 0x43e   :  { %3148 = vadd.xlane.f32.xlu1 %v9800_v11  ;;  %v2904_v50 = vmul.f32 1.442695, %v2422_v3  ;;  %v9813_v3 = vld [vmem:[#allocation30_spill] sm:$0xff] }
 0x43f   :  { %3764 = vmatpush.xpose.msrb.mxu2 %v8169_v61  ;;  %v8198_v53 = vpop.eup %5076  ;;  %v2902_v54 = vmul.f32 1.442695, %v2421_v14 }
 0x440   :  { %3793 = vmatpush.xpose.msrb.mxu3 %v8171_v60  ;;  %3151 = vadd.xlane.f32.xlu0 %v9802_v22  ;;  %5082 = vpow2.f32 %v2904_v50  ;;  %v3165_v22 = vadd.f32 %v9814_v27, %v9813_v3  ;;  %v9826_v27 = vld [vmem:[#allocation174_spill] sm:$0xff] }
 0x441   :  { %3154 = vadd.xlane.f32.xlu2 %v9804_v56  ;;  %5084 = vpow2.f32 %v2906_v62  ;;  %v3168_v56 = vadd.f32 %v9816_v23, %v9815_v21  ;;  %v3171_v62 = vadd.f32 %v9818_v55, %v9817_v5  ;;  %v9828_v21 = vld [vmem:[#allocation173_spill] sm:$0xff]  ;;  %v3204_v5 = vadd.f32 %v7898_v35, %v7893_v12 }
 0x442   :  { %v8204_v11 = vpop.eup %5078  ;;  %5086 = vpow2.f32 %v2900_v34  ;;  %v9824_v34 = vld [vmem:[#allocation114_spill] sm:$0xff]  ;;  %v3207_v55 = vadd.f32 %v7917_v18, %v7910_v47  ;;  %v3219_v35 = vadd.f32 %v7927_v45, %v7925_v19  ;;  %v3222_v18 = vadd.f32 %v7903_v42, %v7901_v37  ;;  %v9830_v45 = vld [vmem:[#allocation145_spill] sm:$0xff] }
 0x443   :  { %3765 = vmatpush.xpose.msrb.mxu2 %v8182_v58  ;;  %v8206_v48 = vpop.eup %5080  ;;  %5088 = vpow2.f32 %v2902_v54  ;;  %v9825_v54 = vld [vmem:[#allocation134_spill] sm:$0xff]  ;;  %v9832_v42 = vld [vmem:[#allocation133_spill] sm:$0xff] }
 0x444   :  { %3794 = vmatpush.xpose.msrb.mxu3 %v8184_v52  ;;  %5090 = vrcp.f32 %v8221_v46 }
 0x445   :  { %v8234_v43 = vpop.xlane.xlu2 %2974 }
 0x446   :  { %3157 = vadd.xlane.f32.xlu1 %v3156_v33  ;;  %v8212_v40 = vpop.eup %5082  ;;  %v9820_v33 = vld [vmem:[#allocation103_spill] sm:$0xff] }
 0x447   :  { %3766 = vmatpush.xpose.msrb.mxu2 %v8194_v39  ;;  %v8216_v50 = vpop.eup %5084  ;;  %v3177_v1 = vadd.f32 %v9820_v33, %v9819_v30  ;;  %v3210_v33 = vadd.f32 %v7981_v63, %v7930_v29  ;;  %v3225_v29 = vadd.f32 %v7890_v2, %v7884_v41  ;;  %v8284_v41 = vpop.xlane.xlu1 %2968  ;;  %v9831_v2 = vld [vmem:[#allocation130_spill] sm:$0xff]  ;;  %v9835_v63 = vld [vmem:[#allocation164_spill] sm:$0xff] }
 0x448   :  { %3795 = vmatpush.xpose.msrb.mxu3 %v8198_v53  ;;  %3160 = vadd.xlane.f32.xlu0 %v3159_v31  ;;  %v8224_v14 = vpop.eup %5086  ;;  %v9822_v31 = vld [vmem:[#allocation24_spill] sm:$0xff] }
 0x449   :  { %3163 = vadd.xlane.f32.xlu2 %v3162_v20  ;;  %v8226_v59 = vpop.eup %5088  ;;  %v8237_v20 = vpop.xlane.xlu0 %2971 }
 0x44b   :  { %3767 = vmatpush.xpose.msrb.mxu2 %v8204_v11 }
 0x44c   :  { %3796 = vmatpush.xpose.msrb.mxu3 %v8206_v48 }
 0x44d   :  { %v8241_v3 = vpop.xlane.xlu2 %2983 }
 0x44e   :  { %3166 = vadd.xlane.f32.xlu1 %v3165_v22  ;;  %v9827_v22 = vld [vmem:[#allocation139_spill] sm:$0xff] }
 0x44f   :  { %3768 = vmatpush.xpose.msrb.mxu2 %v8212_v40 }
 0x450   :  { %3797 = vmatpush.xpose.msrb.mxu3 %v8216_v50  ;;  %3169 = vadd.xlane.f32.xlu0 %v3168_v56 }
 0x451   :  { %3172 = vadd.xlane.f32.xlu2 %v3171_v62  ;;  %v8246_v23 = vpop.xlane.xlu0 %2980  ;;  %v9829_v62 = vld [vmem:[#allocation106_spill] sm:$0xff] }
 0x453   :  { %3769 = vmatpush.xpose.msrb.mxu2 %v8224_v14 }
 0x454   :  { %3798 = vmatpush.xpose.msrb.mxu3 %v8226_v59 }
 0x455   :  { %v8248_v56 = vpop.xlane.xlu2 %2992 }
 0x456   :  { %3175 = vadd.xlane.f32.xlu1 %v9821_v10  ;;  %v3216_v10 = vadd.f32 %v7941_v57, %v7939_v49  ;;  %v3228_v49 = vadd.f32 %v7863_v38, %v7855_v4  ;;  %v3231_v57 = vadd.f32 %v7809_v32, %v7762_v36  ;;  %v3252_v36 = vadd.f32 %v8132_v24, %v8129_v16  ;;  %v9834_v32 = vld [vmem:[#allocation111_spill] sm:$0xff] }
 0x458   :  { %3178 = vadd.xlane.f32.xlu0 %v3177_v1  ;;  %v3213_v1 = vadd.f32 %v7946_v8, %v7933_v26  ;;  %v9833_v8 = vld [vmem:[#allocation167_spill] sm:$0xff] }
 0x459   :  { %3181 = vadd.xlane.f32.xlu2 %v9822_v31  ;;  %v8255_v30 = vpop.xlane.xlu0 %2989  ;;  %v8297_v31 = vpop.xlane.xlu1 %2977 }
 0x45d   :  { %v8263_v12 = vpop.xlane.xlu2 %3001 }
 0x45e   :  { %3184 = vadd.xlane.f32.xlu1 %v9823_v13 }
 0x460   :  { %3187 = vadd.xlane.f32.xlu0 %v9824_v34  ;;  %v3255_v34 = vadd.f32 %v8121_v17, %v8118_v6  ;;  %v9836_v6 = vld [vmem:[#allocation171_spill] sm:$0xff] }
 0x461   :  { %3190 = vadd.xlane.f32.xlu2 %v9825_v54  ;;  %v8267_v47 = vpop.xlane.xlu0 %2998  ;;  %v3258_v54 = vadd.f32 %v8113_v25, %v8111_v28  ;;  %v8309_v24 = vpop.xlane.xlu1 %2986  ;;  %v3267_v17 = vadd.f32 %v9836_v6, %v8028_v15  ;;  %v9837_v28 = vld [vmem:[#allocation45_spill] sm:$0xff]  ;;  %v9841_v15 = vld [vmem:[#allocation128_spill] sm:$0xff]  ;;  %v9853_v6 = vld [vmem:[#allocation26_spill] sm:$0xff] }
 0x462   :  { %v9838_v25 = vld [vmem:[#allocation21_spill] sm:$0xff] }
 0x465   :  { %v8273_v26 = vpop.xlane.xlu2 %3010 }
 0x466   :  { %3193 = vadd.xlane.f32.xlu1 %v9826_v27  ;;  %v3261_v27 = vadd.f32 %v8100_v0, %v8098_v7 }
 0x468   :  { %3196 = vadd.xlane.f32.xlu0 %v9827_v22  ;;  %v3264_v22 = vadd.f32 %v8090_v51, %v8085_v44  ;;  %v9840_v51 = vld [vmem:[#allocation108_spill] sm:$0xff] }
 0x469   :  { %3199 = vadd.xlane.f32.xlu2 %v9828_v21  ;;  %v8279_v19 = vpop.xlane.xlu0 %3007  ;;  %v8320_v0 = vpop.xlane.xlu1 %2995 }
 0x46d   :  { %v8282_v37 = vpop.xlane.xlu2 %3019 }
 0x46e   :  { %3202 = vadd.xlane.f32.xlu1 %v9829_v62 }
 0x470   :  { %3205 = vadd.xlane.f32.xlu0 %v3204_v5 }
 0x471   :  { %3208 = vadd.xlane.f32.xlu2 %v3207_v55  ;;  %v8289_v4 = vpop.xlane.xlu0 %3016  ;;  %v9839_v55 = vld [vmem:[#allocation117_spill] sm:$0xff]  ;;  %v8329_v62 = vpop.xlane.xlu1 %3004 }
 0x475   :  { %v8291_v38 = vpop.xlane.xlu2 %3028 }
 0x476   :  { %3211 = vadd.xlane.f32.xlu1 %v3210_v33  ;;  %v9842_v33 = vld [vmem:[#allocation127_spill] sm:$0xff] }
 0x478   :  { %3214 = vadd.xlane.f32.xlu0 %v3213_v1  ;;  %v9843_v1 = vld [vmem:[#allocation69_spill] sm:$0xff] }
 0x479   :  { %3217 = vadd.xlane.f32.xlu2 %v3216_v10  ;;  %v8299_v13 = vpop.xlane.xlu0 %3025 }
 0x47d   :  { %v8307_v16 = vpop.xlane.xlu2 %3037 }
 0x47e   :  { %3220 = vadd.xlane.f32.xlu1 %v3219_v35 }
 0x480   :  { %3223 = vadd.xlane.f32.xlu0 %v3222_v18  ;;  %v9844_v18 = vld [vmem:[#allocation22_spill] sm:$0xff] }
 0x481   :  { %3226 = vadd.xlane.f32.xlu2 %v3225_v29  ;;  %v8313_v21 = vpop.xlane.xlu0 %3034  ;;  %v9845_v29 = vld [vmem:[#allocation65_spill] sm:$0xff] }
 0x485   :  { %v8318_v7 = vpop.xlane.xlu2 %3046 }
 0x486   :  { %3229 = vadd.xlane.f32.xlu1 %v3228_v49  ;;  %v3014_v49 = vpop.xlane.xlu1 %3013 }
 0x487   :  { %5092 = vrcp.f32 %v3014_v49 }
 0x488   :  { %3232 = vadd.xlane.f32.xlu0 %v3231_v57  ;;  %v9846_v57 = vld [vmem:[#allocation124_spill] sm:$0xff]  ;;  %5094 = vrcp.f32 %v8284_v41 }
 0x489   :  { %3235 = vadd.xlane.f32.xlu2 %v9830_v45  ;;  %v8323_v5 = vpop.xlane.xlu0 %3043  ;;  %5096 = vrcp.f32 %v8289_v4 }
 0x48a   :  { %5098 = vrcp.f32 %v8237_v20 }
 0x48b   :  { %5100 = vrcp.f32 %v8282_v37 }
 0x48c   :  { %5102 = vrcp.f32 %v8234_v43 }
 0x48d   :  { %v8327_v44 = vpop.xlane.xlu2 %3055 }
 0x48e   :  { %3238 = vadd.xlane.f32.xlu1 %v9831_v2  ;;  %v3300_v2 = vadd.f32 %v8226_v59, %v8224_v14  ;;  %v3312_v14 = vadd.f32 %v8184_v52, %v8182_v58  ;;  %v9852_v52 = vld [vmem:[#allocation96_spill] sm:$0xff] }
 0x490   :  { %3241 = vadd.xlane.f32.xlu0 %v9832_v42  ;;  %v3303_v42 = vadd.f32 %v8216_v50, %v8212_v40  ;;  %v3315_v40 = vadd.f32 %v8171_v60, %v8169_v61  ;;  %v9847_v50 = vld [vmem:[#allocation27_spill] sm:$0xff] }
 0x491   :  { %3244 = vadd.xlane.f32.xlu2 %v9833_v8  ;;  %v8334_v10 = vpop.xlane.xlu0 %3052  ;;  %v3306_v8 = vadd.f32 %v8206_v48, %v8204_v11  ;;  %v9850_v61 = vld [vmem:[#allocation23_spill] sm:$0xff] }
 0x492   :  { %v9851_v60 = vld [vmem:[#allocation59_spill] sm:$0xff] }
 0x495   :  { %v8336_v35 = vpop.xlane.xlu2 %3064 }
 0x496   :  { %3247 = vadd.xlane.f32.xlu1 %v9834_v32  ;;  %v3023_v32 = vpop.xlane.xlu1 %3022 }
 0x498   :  { %3250 = vadd.xlane.f32.xlu0 %v9835_v63  ;;  %v3309_v63 = vadd.f32 %v8198_v53, %v8194_v39  ;;  %v9848_v39 = vld [vmem:[#allocation136_spill] sm:$0xff]  ;;  %v9849_v53 = vld [vmem:[#allocation121_spill] sm:$0xff] }
 0x499   :  { %3253 = vadd.xlane.f32.xlu2 %v3252_v36  ;;  %v8341_v45 = vpop.xlane.xlu0 %3061 }
 0x49a   :  { %5104 = vrcp.f32 %v8341_v45 }
 0x49b   :  { %5106 = vrcp.f32 %v3023_v32 }
 0x49c   :  { %5108 = vrcp.f32 %v8297_v31 }
 0x49d   :  { %v8349_v36 = vpop.xlane.xlu2 %3073  ;;  %5110 = vrcp.f32 %v8336_v35 }
 0x49e   :  { %3256 = vadd.xlane.f32.xlu1 %v3255_v34  ;;  %v8361_v48 = vpop.xlane.xlu1 %3031  ;;  %5112 = vrcp.f32 %v8299_v13 }
 0x49f   :  { %5114 = vrcp.f32 %v8246_v23 }
 0x4a0   :  { %3259 = vadd.xlane.f32.xlu0 %v3258_v54 }
 0x4a1   :  { %3262 = vadd.xlane.f32.xlu2 %v3261_v27  ;;  %v8353_v34 = vpop.xlane.xlu0 %3070 }
 0x4a5   :  { %v8359_v11 = vpop.xlane.xlu2 %3082 }
 0x4a6   :  { %3265 = vadd.xlane.f32.xlu1 %v3264_v22  ;;  %v8370_v58 = vpop.xlane.xlu1 %3040 }
 0x4a8   :  { %3268 = vadd.xlane.f32.xlu0 %v3267_v17  ;;  %v9854_v17 = vld [vmem:[#allocation32_spill] sm:$0xff] }
 0x4a9   :  { %3271 = vadd.xlane.f32.xlu2 %v9837_v28  ;;  %v8364_v59 = vpop.xlane.xlu0 %3079 }
 0x4ad   :  { %v8368_v54 = vpop.xlane.xlu2 %3091 }
 0x4ae   :  { %3274 = vadd.xlane.f32.xlu1 %v9838_v25  ;;  %v8381_v28 = vpop.xlane.xlu1 %3049  ;;  %v9855_v25 = vld [vmem:[#allocation146_spill] sm:$0xff] }
 0x4b0   :  { %3277 = vadd.xlane.f32.xlu0 %v9839_v55 }
 0x4b1   :  { %3280 = vadd.xlane.f32.xlu2 %v9840_v51  ;;  %v8375_v27 = vpop.xlane.xlu0 %3088 }
 0x4b5   :  { %v8377_v22 = vpop.xlane.xlu2 %3100 }
 0x4b6   :  { %3283 = vadd.xlane.f32.xlu1 %v9841_v15  ;;  %v8389_v15 = vpop.xlane.xlu1 %3058 }
 0x4b8   :  { %3286 = vadd.xlane.f32.xlu0 %v9842_v33 }
 0x4b9   :  { %3289 = vadd.xlane.f32.xlu2 %v9843_v1  ;;  %v8384_v55 = vpop.xlane.xlu0 %3097 }
 0x4bd   :  { %v8387_v51 = vpop.xlane.xlu2 %3109 }
 0x4be   :  { %3292 = vadd.xlane.f32.xlu1 %v9844_v18  ;;  %v3068_v18 = vpop.xlane.xlu1 %3067 }
 0x4bf   :  { %5116 = vrcp.f32 %v3068_v18 }
 0x4c0   :  { %3295 = vadd.xlane.f32.xlu0 %v9845_v29  ;;  %5118 = vrcp.f32 %v8291_v38 }
 0x4c1   :  { %3298 = vadd.xlane.f32.xlu2 %v9846_v57  ;;  %v8391_v33 = vpop.xlane.xlu0 %3106  ;;  %5120 = vrcp.f32 %v8241_v3 }
 0x4c5   :  { %v8393_v1 = vpop.xlane.xlu2 %3118 }
 0x4c6   :  { %3301 = vadd.xlane.f32.xlu1 %v3300_v2  ;;  %v8399_v2 = vpop.xlane.xlu1 %3076 }
 0x4c8   :  { %3304 = vadd.xlane.f32.xlu0 %v3303_v42 }
 0x4c9   :  { %3307 = vadd.xlane.f32.xlu2 %v3306_v8  ;;  %v8395_v29 = vpop.xlane.xlu0 %3115  ;;  %v5091_v8 = vpop.eup %5090  ;;  %5122 = vrcp.f32 %v8353_v34 }
 0x4cd   :  { %v8397_v57 = vpop.xlane.xlu2 %3127 }
 0x4ce   :  { %3310 = vadd.xlane.f32.xlu1 %v3309_v63  ;;  %v5093_v63 = vpop.eup %5092  ;;  %5124 = vrcp.f32 %v8361_v48 }
 0x4d0   :  { %3313 = vadd.xlane.f32.xlu0 %v3312_v14  ;;  %v8406_v14 = vpop.xlane.xlu1 %3085 }
 0x4d1   :  { %3316 = vadd.xlane.f32.xlu2 %v3315_v40  ;;  %v8402_v42 = vpop.xlane.xlu0 %3124 }
 0x4d6   :  { %3319 = vadd.xlane.f32.xlu1 %v9847_v50  ;;  %v5095_v50 = vpop.eup %5094  ;;  %5126 = vrcp.f32 %v8309_v24 }
 0x4d7   :  { %v5097_v46 = vpop.eup %5096  ;;  %5128 = vrcp.f32 %v8349_v36 }
 0x4d8   :  { %3322 = vadd.xlane.f32.xlu0 %v9848_v39  ;;  %v8416_v49 = vpop.xlane.xlu1 %3094  ;;  %v5099_v41 = vpop.eup %5098  ;;  %5130 = vrcp.f32 %v8313_v21 }
 0x4d9   :  { %3325 = vadd.xlane.f32.xlu2 %v9849_v53  ;;  %v8410_v40 = vpop.xlane.xlu0 %3133 }
 0x4de   :  { %3328 = vadd.xlane.f32.xlu1 %v9850_v61  ;;  %v5101_v61 = vpop.eup %5100  ;;  %5132 = vrcp.f32 %v8255_v30 }
 0x4df   :  { %v5103_v20 = vpop.eup %5102  ;;  %5134 = vrcp.f32 %v8399_v2 }
 0x4e0   :  { %3331 = vadd.xlane.f32.xlu0 %v9851_v60  ;;  %v8424_v60 = vpop.xlane.xlu1 %3103 }
 0x4e1   :  { %3334 = vadd.xlane.f32.xlu2 %v9852_v52  ;;  %v8418_v53 = vpop.xlane.xlu0 %3142  ;;  %v5105_v52 = vpop.eup %5104  ;;  %5136 = vrcp.f32 %v8307_v16 }
 0x4e6   :  { %3337 = vadd.xlane.f32.xlu1 %v9853_v6  ;;  %v5107_v6 = vpop.eup %5106  ;;  %5138 = vrcp.f32 %v8248_v56 }
 0x4e7   :  { %v5109_v45 = vpop.eup %5108  ;;  %5140 = vrcp.f32 %v8364_v59 }
 0x4e8   :  { %3340 = vadd.xlane.f32.xlu0 %v9854_v17  ;;  %v8433_v32 = vpop.xlane.xlu1 %3112  ;;  %v5111_v17 = vpop.eup %5110  ;;  %5142 = vrcp.f32 %v8370_v58 }
 0x4e9   :  { %3343 = vadd.xlane.f32.xlu2 %v9855_v25  ;;  %v8426_v37 = vpop.xlane.xlu0 %3151  ;;  %v5113_v25 = vpop.eup %5112  ;;  %5144 = vrcp.f32 %v8320_v0 }
 0x4ea   :  { %v5115_v13 = vpop.eup %5114  ;;  %5146 = vrcp.f32 %v8359_v11 }
 0x4ee   :  { %3346 = vadd.xlane.f32.xlu1 %v8088_v9  ;;  %v8404_v9 = vpop.xlane.xlu2 %3136 }
 0x4f1   :  { %v8436_v31 = vpop.xlane.xlu0 %3160 }
 0x4f6   :  { %v8412_v39 = vpop.xlane.xlu2 %3145 }
 0x4f9   :  { %v8446_v23 = vpop.xlane.xlu0 %3169 }
 0x4fe   :  { %v8422_v4 = vpop.xlane.xlu2 %3154 }
 0x501   :  { %v8455_v34 = vpop.xlane.xlu0 %3178 }
 0x506   :  { %v8431_v43 = vpop.xlane.xlu2 %3163 }
 0x50e   :  { %v8439_v35 = vpop.xlane.xlu2 %3172 }
 0x511   :  { %3940 = vxpose.xlu0.b32.start [1/16] (narrow) %v5091_v8, 8  ;;  %v5117_v8 = vpop.eup %5116  ;;  %5148 = vrcp.f32 %v8323_v5 }
 0x512   :  { %3972 = vxpose.xlu2.b32.start [1/16] (narrow) %v5093_v63, 8  ;;  %v5119_v63 = vpop.eup %5118  ;;  %5150 = vrcp.f32 %v8267_v47 }
 0x513   :  { %v5121_v18 = vpop.eup %5120  ;;  %5152 = vrcp.f32 %v8406_v14 }
 0x514   :  { %v5123_v38 = vpop.eup %5122  ;;  %5154 = vrcp.f32 %v8318_v7 }
 0x519   :  { %3941 = vxpose.xlu0.b32.cont [2/16] (narrow) %v5095_v50, 8  ;;  %v8442_v50 = vpop.xlane.xlu1 %3121 }
 0x51a   :  { %3973 = vxpose.xlu2.b32.cont [2/16] (narrow) %v5097_v46, 8  ;;  %v8448_v46 = vpop.xlane.xlu2 %3181 }
 0x521   :  { %3942 = vxpose.xlu0.b32.cont [3/16] (narrow) %v5099_v41, 8  ;;  %v5125_v41 = vpop.eup %5124  ;;  %v8453_v3 = vpop.xlane.xlu1 %3130  ;;  %5156 = vrcp.f32 %v8263_v12 }
 0x522   :  { %3974 = vxpose.xlu2.b32.cont [3/16] (narrow) %v5101_v61, 8  ;;  %v5127_v48 = vpop.eup %5126  ;;  %v8459_v24 = vpop.xlane.xlu2 %3190  ;;  %5158 = vrcp.f32 %v8375_v27 }
 0x523   :  { %v5129_v61 = vpop.eup %5128  ;;  %5160 = vrcp.f32 %v8381_v28 }
 0x528   :  { %4004 = vxpose.xlu1.b32.start [1/16] (narrow) %v5105_v52, 8 }
 0x529   :  { %3943 = vxpose.xlu0.b32.cont [4/16] (narrow) %v5103_v20, 8  ;;  %v5131_v20 = vpop.eup %5130  ;;  %v8462_v36 = vpop.xlane.xlu1 %3139  ;;  %5162 = vrcp.f32 %v8329_v62 }
 0x52a   :  { %3975 = vxpose.xlu2.b32.cont [4/16] (narrow) %v5107_v6, 8  ;;  %v5133_v21 = vpop.eup %5132  ;;  %v8464_v6 = vpop.xlane.xlu0 %3187  ;;  %5164 = vrcp.f32 %v8368_v54 }
 0x52b   :  { %v5135_v52 = vpop.eup %5134  ;;  %v8469_v30 = vpop.xlane.xlu2 %3199  ;;  %5166 = vrcp.f32 %v8334_v10 }
 0x530   :  { %4005 = vxpose.xlu1.b32.cont [2/16] (narrow) %v5111_v17, 8 }
 0x531   :  { %3944 = vxpose.xlu0.b32.cont [5/16] (narrow) %v5109_v45, 8  ;;  %v5137_v45 = vpop.eup %5136  ;;  %v8471_v16 = vpop.xlane.xlu1 %3148  ;;  %5168 = vrcp.f32 %v8279_v19 }
 0x532   :  { %3976 = vxpose.xlu2.b32.cont [5/16] (narrow) %v5113_v25, 8  ;;  %v5139_v2 = vpop.eup %5138  ;;  %v8475_v56 = vpop.xlane.xlu0 %3196  ;;  %5170 = vrcp.f32 %v8416_v49 }
 0x533   :  { %v5141_v17 = vpop.eup %5140  ;;  %v8478_v59 = vpop.xlane.xlu2 %3208  ;;  %5172 = vrcp.f32 %v8327_v44 }
 0x534   :  { %v5143_v25 = vpop.eup %5142  ;;  %5174 = vrcp.f32 %v8273_v26 }
 0x535   :  { %v5145_v58 = vpop.eup %5144  ;;  %5176 = vrcp.f32 %v8384_v55 }
 0x538   :  { %4006 = vxpose.xlu1.b32.cont [3/16] (narrow) %v5117_v8, 8 }
 0x539   :  { %3945 = vxpose.xlu0.b32.cont [6/16] (narrow) %v5115_v13, 8  ;;  %v5147_v13 = vpop.eup %5146  ;;  %5178 = vrcp.f32 %v8389_v15 }
 0x53a   :  { %3977 = vxpose.xlu2.b32.cont [6/16] (narrow) %v5119_v63, 8  ;;  %v5149_v8 = vpop.eup %5148  ;;  %v3158_v63 = vpop.xlane.xlu1 %3157  ;;  %5180 = vrcp.f32 %v8377_v22 }
 0x53b   :  { %v8483_v0 = vpop.xlane.xlu0 %3205  ;;  %v5151_v11 = vpop.eup %5150  ;;  %5182 = vrcp.f32 %v8387_v51 }
 0x53c   :  { %v8485_v5 = vpop.xlane.xlu2 %3217 }
 0x540   :  { %4007 = vxpose.xlu1.b32.cont [4/16] (narrow) %v5123_v38, 8 }
 0x541   :  { %3946 = vxpose.xlu0.b32.cont [7/16] (narrow) %v5121_v18, 8  ;;  %v5153_v18 = vpop.eup %5152  ;;  %5184 = vrcp.f32 %v3158_v63 }
 0x542   :  { %3978 = vxpose.xlu2.b32.cont [7/16] (narrow) %v5125_v41, 8  ;;  %v5155_v38 = vpop.eup %5154  ;;  %v8490_v47 = vpop.xlane.xlu1 %3166  ;;  %5186 = vrcp.f32 %v8424_v60 }
 0x543   :  { %v8492_v14 = vpop.xlane.xlu0 %3214  ;;  %v5157_v7 = vpop.eup %5156  ;;  %5188 = vrcp.f32 %v8433_v32 }
 0x544   :  { %v5159_v41 = vpop.eup %5158  ;;  %v8496_v12 = vpop.xlane.xlu2 %3226  ;;  %5190 = vrcp.f32 %v8436_v31 }
 0x548   :  { %4008 = vxpose.xlu1.b32.cont [5/16] (narrow) %v5129_v61, 8 }
 0x549   :  { %3947 = vxpose.xlu0.b32.cont [8/16] (narrow) %v5127_v48, 8  ;;  %v5161_v48 = vpop.eup %5160  ;;  %5192 = vrcp.f32 %v8391_v33 }
 0x54a   :  { %3979 = vxpose.xlu2.b32.cont [8/16] (narrow) %v5131_v20, 8  ;;  %v8499_v27 = vpop.xlane.xlu1 %3175  ;;  %v5163_v28 = vpop.eup %5162  ;;  %5194 = vrcp.f32 %v8395_v29 }
 0x54b   :  { %v5165_v61 = vpop.eup %5164  ;;  %v8501_v20 = vpop.xlane.xlu0 %3223  ;;  %5196 = vrcp.f32 %v8431_v43 }
 0x54c   :  { %v8506_v62 = vpop.xlane.xlu2 %3235 }
 0x550   :  { %4009 = vxpose.xlu1.b32.cont [6/16] (narrow) %v5135_v52, 8 }
 0x551   :  { %3948 = vxpose.xlu0.b32.cont [9/16] (narrow) %v5133_v21, 8  ;;  %v5167_v21 = vpop.eup %5166  ;;  %5198 = vrcp.f32 %v8393_v1 }
 0x552   :  { %3980 = vxpose.xlu2.b32.cont [9/16] (narrow) %v5137_v45, 8  ;;  %v5169_v54 = vpop.eup %5168  ;;  %v8508_v10 = vpop.xlane.xlu1 %3184  ;;  %5200 = vrcp.f32 %v8483_v0 }
 0x553   :  { %v5171_v52 = vpop.eup %5170  ;;  %v8512_v19 = vpop.xlane.xlu0 %3232  ;;  %5202 = vrcp.f32 %v8490_v47 }
 0x554   :  { %v5173_v45 = vpop.eup %5172  ;;  %v8515_v49 = vpop.xlane.xlu2 %3244  ;;  %5204 = vrcp.f32 %v8442_v50 }
 0x555   :  { %v5175_v44 = vpop.eup %5174  ;;  %5206 = vrcp.f32 %v8478_v59 }
 0x558   :  { %4010 = vxpose.xlu1.b32.cont [7/16] (narrow) %v5141_v17, 8 }
 0x559   :  { %3949 = vxpose.xlu0.b32.cont [10/16] (narrow) %v5139_v2, 8  ;;  %v5177_v2 = vpop.eup %5176  ;;  %5208 = vrcp.f32 %v8446_v23 }
 0x55a   :  { %3981 = vxpose.xlu2.b32.cont [10/16] (narrow) %v5143_v25, 8  ;;  %v5179_v17 = vpop.eup %5178  ;;  %v8518_v25 = vpop.xlane.xlu1 %3193  ;;  %5210 = vrcp.f32 %v8402_v42 }
 0x55b   :  { %v8521_v26 = vpop.xlane.xlu0 %3241  ;;  %v5181_v55 = vpop.eup %5180 }
 0x55c   :  { %v8523_v15 = vpop.xlane.xlu2 %3253 }
 0x560   :  { %4011 = vxpose.xlu1.b32.cont [8/16] (narrow) %v5147_v13, 8 }
 0x561   :  { %3950 = vxpose.xlu0.b32.cont [11/16] (narrow) %v5145_v58, 8  ;;  %v5183_v58 = vpop.eup %5182 }
 0x562   :  { %3982 = vxpose.xlu2.b32.cont [11/16] (narrow) %v5149_v8, 8  ;;  %v5185_v13 = vpop.eup %5184  ;;  %v8528_v22 = vpop.xlane.xlu1 %3202 }
 0x563   :  { %v8530_v51 = vpop.xlane.xlu0 %3250  ;;  %v5187_v8 = vpop.eup %5186 }
 0x564   :  { %v5189_v63 = vpop.eup %5188  ;;  %v8534_v60 = vpop.xlane.xlu2 %3262 }
 0x568   :  { %4012 = vxpose.xlu1.b32.cont [9/16] (narrow) %v5153_v18, 8 }
 0x569   :  { %3951 = vxpose.xlu0.b32.cont [12/16] (narrow) %v5151_v11, 8  ;;  %v5191_v11 = vpop.eup %5190 }
 0x56a   :  { %3983 = vxpose.xlu2.b32.cont [12/16] (narrow) %v5155_v38, 8  ;;  %v3212_v32 = vpop.xlane.xlu1 %3211  ;;  %v5193_v31 = vpop.eup %5192 }
 0x56b   :  { %v5195_v18 = vpop.eup %5194  ;;  %v8537_v38 = vpop.xlane.xlu0 %3259  ;;  %5212 = vrcp.f32 %v3212_v32 }
 0x56c   :  { %v8542_v33 = vpop.xlane.xlu2 %3271  ;;  %5214 = vrcp.f32 %v8439_v35 }
 0x56d   :  { %5216 = vrcp.f32 %v8397_v57 }
 0x56e   :  { %5218 = vrcp.f32 %v8492_v14  ;;  %v245_v14 = vld [vmem:[#allocation7 + $0x50] sm:$0xff] }
 0x56f   :  { %5220 = vrcp.f32 %v8499_v27  ;;  %3541 = vmatmul.f32.gmra.mxu2 %v245_v14  ;;  %3483 = vmatmul.f32.gmra.mxu0 %v245_v14 }
 0x570   :  { %4013 = vxpose.xlu1.b32.cont [10/16] (narrow) %v5159_v41, 8  ;;  %5222 = vrcp.f32 %v8453_v3 }
 0x571   :  { %3952 = vxpose.xlu0.b32.cont [13/16] (narrow) %v5157_v7, 8  ;;  %v5197_v7 = vpop.eup %5196  ;;  %5224 = vrcp.f32 %v8485_v5  ;;  %v247_v5 = vld [vmem:[#allocation7 + $0x60] sm:$0xff] }
 0x572   :  { %3984 = vxpose.xlu2.b32.cont [13/16] (narrow) %v5161_v48, 8  ;;  %v5199_v29 = vpop.eup %5198  ;;  %v3221_v41 = vpop.xlane.xlu1 %3220  ;;  %5226 = vrcp.f32 %v8455_v34 }
 0x573   :  { %v5201_v43 = vpop.eup %5200  ;;  %v8546_v1 = vpop.xlane.xlu0 %3268  ;;  %5228 = vrcp.f32 %v8410_v40 }
 0x574   :  { %v5203_v48 = vpop.eup %5202  ;;  %v8549_v0 = vpop.xlane.xlu2 %3280  ;;  %5230 = vrcp.f32 %v3221_v41 }
 0x575   :  { %v5205_v47 = vpop.eup %5204  ;;  %5232 = vrcp.f32 %v8448_v46  ;;  %v249_v46 = vld [vmem:[#allocation7 + $0x70] sm:$0xff] }
 0x576   :  { %5234 = vrcp.f32 %v8404_v9 }
 0x577   :  { %3544 = vmatmul.f32.gmra.mxu2 %v247_v5  ;;  %3486 = vmatmul.f32.gmra.mxu0 %v247_v5  ;;  %5236 = vrcp.f32 %v8501_v20  ;;  %v251_v20 = vld [vmem:[#allocation7 + $0x80] sm:$0xff] }
 0x578   :  { %4014 = vxpose.xlu1.b32.cont [11/16] (narrow) %v5165_v61, 8 }
 0x579   :  { %3953 = vxpose.xlu0.b32.cont [14/16] (narrow) %v5163_v28, 8  ;;  %v5207_v28 = vpop.eup %5206  ;;  %5238 = vrcp.f32 %v8508_v10  ;;  %v252_v10 = vld [vmem:[#allocation7 + $0x88] sm:$0xff] }
 0x57a   :  { %3985 = vxpose.xlu2.b32.cont [14/16] (narrow) %v5167_v21, 8  ;;  %v5209_v61 = vpop.eup %5208  ;;  %v8552_v21 = vpop.xlane.xlu1 %3229  ;;  %5240 = vrcp.f32 %v8462_v36 }
 0x57b   :  { %v8555_v50 = vpop.xlane.xlu0 %3277  ;;  %v5211_v59 = vpop.eup %5210  ;;  %5242 = vrcp.f32 %v8496_v12  ;;  %v253_v12 = vld [vmem:[#allocation7 + $0x90] sm:$0xff] }
 0x57c   :  { %v8557_v23 = vpop.xlane.xlu2 %3289 }
 0x57f   :  { %3547 = vmatmul.f32.gmra.mxu2 %v249_v46  ;;  %3489 = vmatmul.f32.gmra.mxu0 %v249_v46 }
 0x580   :  { %4015 = vxpose.xlu1.b32.cont [12/16] (narrow) %v5171_v52, 8 }
 0x581   :  { %3954 = vxpose.xlu0.b32.cont [15/16] (narrow) %v5169_v54, 8  ;;  %v5213_v54 = vpop.eup %5212  ;;  %5244 = vrcp.f32 %v8464_v6  ;;  %v254_v6 = vld [vmem:[#allocation7 + $0x98] sm:$0xff] }
 0x582   :  { %3986 = vxpose.xlu2.b32.cont [15/16] (narrow) %v5173_v45, 8  ;;  %v5215_v52 = vpop.eup %5214  ;;  %v8562_v42 = vpop.xlane.xlu1 %3238  ;;  %5246 = vrcp.f32 %v8418_v53 }
 0x583   :  { %v8564_v45 = vpop.xlane.xlu0 %3286  ;;  %v5217_v35 = vpop.eup %5216  ;;  %5248 = vrcp.f32 %v8552_v21 }
 0x584   :  { %v8568_v57 = vpop.xlane.xlu2 %3298 }
 0x587   :  { %3654 = vmatmul.f32.vlgmr.msra.gmra.mxu2 %v251_v20  ;;  %3596 = vmatmul.f32.vlgmr.msra.gmra.mxu0 %v251_v20 }
 0x588   :  { %4016 = vxpose.xlu1.b32.cont [13/16] (narrow) %v5177_v2, 8 }
 0x589   :  { %3955 = vxpose.xlu0.b32.end [16/16] (narrow) %v5175_v44, 8  ;;  %v5219_v44 = vpop.eup %5218  ;;  %5250 = vrcp.f32 %v8459_v24  ;;  %v255_v24 = vld [vmem:[#allocation7 + $0xa0] sm:$0xff] }
 0x58a   :  { %3987 = vxpose.xlu2.b32.end [16/16] (narrow) %v5179_v17, 8  ;;  %v5221_v2 = vpop.eup %5220  ;;  %v246_v17 = vld [vmem:[#allocation7 + $0x58] sm:$0xff]  ;;  %v8571_v27 = vpop.xlane.xlu1 %3247  ;;  %5252 = vrcp.f32 %v8412_v39 }
 0x58b   :  { %3570 = vmatmul.f32.gmra.mxu3 %v246_v17  ;;  %3512 = vmatmul.f32.gmra.mxu1 %v246_v17  ;;  %v8573_v3 = vpop.xlane.xlu0 %3295 }
 0x58c   :  { %v8577_v34 = vpop.xlane.xlu2 %3307 }
 0x58f   :  { %3657 = vmatmul.f32.gmra.mxu2 %v253_v12  ;;  %3599 = vmatmul.f32.gmra.mxu0 %v253_v12  ;;  %v262_v12 = vld [vmem:[#allocation7 + $0xd8] sm:$0xff] }
 0x590   :  { %4017 = vxpose.xlu1.b32.cont [14/16] (narrow) %v5181_v55, 8  ;;  %v5223_v55 = vpop.eup %5222  ;;  %5254 = vrcp.f32 %v8512_v19  ;;  %v257_v19 = vld [vmem:[#allocation7 + $0xb0] sm:$0xff] }
 0x591   :  { %4036 = vxpose.xlu0.b32.start [1/16] (narrow) %v5183_v58, 8  ;;  %v5225_v58 = vpop.eup %5224  ;;  %5256 = vrcp.f32 %v8518_v25  ;;  %v258_v25 = vld [vmem:[#allocation7 + $0xb8] sm:$0xff] }
 0x592   :  { %4068 = vxpose.xlu2.b32.start [1/16] (narrow) %v5185_v13, 8  ;;  %v5227_v13 = vpop.eup %5226  ;;  %5258 = vrcp.f32 %v8471_v16 }
 0x593   :  { %v8583_v40 = vpop.xlane.xlu0 %3304 }
 0x597   :  { %3660 = vmatmul.f32.gmra.mxu2 %v255_v24  ;;  %3602 = vmatmul.f32.gmra.mxu0 %v255_v24 }
 0x598   :  { %4018 = vxpose.xlu1.b32.cont [15/16] (narrow) %v5187_v8, 8  ;;  %v248_v8 = vld [vmem:[#allocation7 + $0x68] sm:$0xff] }
 0x599   :  { %4037 = vxpose.xlu0.b32.cont [2/16] (narrow) %v5189_v63, 8  ;;  %3573 = vmatmul.f32.gmra.mxu3 %v248_v8  ;;  %v5229_v63 = vpop.eup %5228  ;;  %5260 = vrcp.f32 %v8506_v62 }
 0x59a   :  { %4069 = vxpose.xlu2.b32.cont [2/16] (narrow) %v5191_v11, 8  ;;  %3515 = vmatmul.f32.gmra.mxu1 %v248_v8  ;;  %v8579_v11 = vpop.xlane.xlu1 %3256  ;;  %v5231_v32 = vpop.eup %5230  ;;  %5262 = vrcp.f32 %v8475_v56  ;;  %v259_v56 = vld [vmem:[#allocation7 + $0xc0] sm:$0xff] }
 0x59f   :  { %3663 = vmatmul.f32.gmra.mxu2 %v257_v19  ;;  %3605 = vmatmul.f32.gmra.mxu0 %v257_v19 }
 0x5a0   :  { %4019 = vxpose.xlu1.b32.end [16/16] (narrow) %v5193_v31, 8  ;;  %v5233_v31 = vpop.eup %5232  ;;  %5264 = vrcp.f32 %v8426_v37 }
 0x5a1   :  { %4038 = vxpose.xlu0.b32.cont [3/16] (narrow) %v5195_v18, 8  ;;  %v250_v18 = vld [vmem:[#allocation7 + $0x78] sm:$0xff] }
 0x5a2   :  { %4070 = vxpose.xlu2.b32.cont [3/16] (narrow) %v5197_v7, 8  ;;  %3576 = vmatmul.f32.gmra.mxu3 %v250_v18  ;;  %v8586_v7 = vpop.xlane.xlu2 %3316 }
 0x5a3   :  { %3518 = vmatmul.f32.gmra.mxu1 %v250_v18 }
 0x5a7   :  { %3770 = vmatmul.f32.vlgmr.msrb.gmra.mxu2 %v259_v56  ;;  %3712 = vmatmul.f32.vlgmr.msrb.gmra.mxu0 %v259_v56 }
 0x5a8   :  { %4100 = vxpose.xlu1.b32.start [1/16] (narrow) %v5201_v43, 8  ;;  %v8589_v43 = vpop.xlane.xlu1 %3265 }
 0x5a9   :  { %4039 = vxpose.xlu0.b32.cont [4/16] (narrow) %v5199_v29, 8  ;;  %v5235_v29 = vpop.eup %5234  ;;  %5266 = vrcp.f32 %v8562_v42 }
 0x5aa   :  { %4071 = vxpose.xlu2.b32.cont [4/16] (narrow) %v5203_v48, 8  ;;  %v5237_v41 = vpop.eup %5236  ;;  %3683 = vmatmul.f32.vlgmr.msra.gmra.mxu3 %v252_v10  ;;  %v8593_v48 = vpop.xlane.xlu0 %3313  ;;  %5268 = vrcp.f32 %v8469_v30 }
 0x5ab   :  { %v5239_v9 = vpop.eup %5238  ;;  %3625 = vmatmul.f32.vlgmr.msra.gmra.mxu1 %v252_v10  ;;  %v8595_v36 = vpop.xlane.xlu2 %3325  ;;  %5270 = vrcp.f32 %v8422_v4 }
 0x5b0   :  { %4101 = vxpose.xlu1.b32.cont [2/16] (narrow) %v5207_v28, 8 }
 0x5b1   :  { %4040 = vxpose.xlu0.b32.cont [5/16] (narrow) %v5205_v47, 8  ;;  %v5241_v47 = vpop.eup %5240  ;;  %5272 = vrcp.f32 %v8521_v26  ;;  %v263_v26 = vld [vmem:[#allocation7 + $0xe0] sm:$0xff] }
 0x5b2   :  { %4072 = vxpose.xlu2.b32.cont [5/16] (narrow) %v5209_v61, 8  ;;  %v5243_v28 = vpop.eup %5242  ;;  %3686 = vmatmul.f32.gmra.mxu3 %v254_v6  ;;  %5274 = vrcp.f32 %v8528_v22  ;;  %v264_v22 = vld [vmem:[#allocation7 + $0xe8] sm:$0xff] }
 0x5b3   :  { %v5245_v61 = vpop.eup %5244  ;;  %3628 = vmatmul.f32.gmra.mxu1 %v254_v6  ;;  %v8606_v21 = vpop.xlane.xlu2 %3334  ;;  %5276 = vrcp.f32 %v8515_v49  ;;  %v265_v49 = vld [vmem:[#allocation7 + $0xf0] sm:$0xff] }
 0x5b8   :  { %4102 = vxpose.xlu1.b32.cont [3/16] (narrow) %v5213_v54, 8  ;;  %v8602_v54 = vpop.xlane.xlu0 %3322 }
 0x5b9   :  { %4041 = vxpose.xlu0.b32.cont [6/16] (narrow) %v5211_v59, 8  ;;  %v8600_v59 = vpop.xlane.xlu1 %3274 }
 0x5ba   :  { %4073 = vxpose.xlu2.b32.cont [6/16] (narrow) %v5215_v52, 8  ;;  %v5247_v52 = vpop.eup %5246  ;;  %5278 = vrcp.f32 %v8523_v15  ;;  %v266_v15 = vld [vmem:[#allocation7 + $0xf8] sm:$0xff] }
 0x5c0   :  { %4103 = vxpose.xlu1.b32.cont [4/16] (narrow) %v5219_v44, 8  ;;  %v256_v44 = vld [vmem:[#allocation7 + $0xa8] sm:$0xff]  ;;  %v8611_v39 = vpop.xlane.xlu0 %3331 }
 0x5c1   :  { %4042 = vxpose.xlu0.b32.cont [7/16] (narrow) %v5217_v35, 8  ;;  %v5249_v35 = vpop.eup %5248  ;;  %3689 = vmatmul.f32.gmra.mxu3 %v256_v44 }
 0x5c2   :  { %4074 = vxpose.xlu2.b32.cont [7/16] (narrow) %v5221_v2, 8  ;;  %v5251_v53 = vpop.eup %5250  ;;  %3631 = vmatmul.f32.gmra.mxu1 %v256_v44  ;;  %v8609_v2 = vpop.xlane.xlu1 %3283 }
 0x5c3   :  { %v5253_v14 = vpop.eup %5252 }
 0x5c4   :  { %v5255_v17 = vpop.eup %5254 }
 0x5c8   :  { %4104 = vxpose.xlu1.b32.cont [5/16] (narrow) %v5225_v58, 8  ;;  %v8616_v58 = vpop.xlane.xlu2 %3343  ;;  %v8622_v62 = vpop.xlane.xlu0 %3340 }
 0x5c9   :  { %4043 = vxpose.xlu0.b32.cont [8/16] (narrow) %v5223_v55, 8  ;;  %v5257_v55 = vpop.eup %5256  ;;  %3692 = vmatmul.f32.gmra.mxu3 %v258_v25 }
 0x5ca   :  { %4075 = vxpose.xlu2.b32.cont [8/16] (narrow) %v5227_v13, 8  ;;  %3634 = vmatmul.f32.gmra.mxu1 %v258_v25  ;;  %v5259_v13 = vpop.eup %5258  ;;  %v8618_v5 = vpop.xlane.xlu1 %3292 }
 0x5cb   :  { %v5261_v8 = vpop.eup %5260 }
 0x5cc   :  { %v5263_v16 = vpop.eup %5262 }
 0x5cd   :  { %v5265_v42 = vpop.eup %5264 }
 0x5ce   :  { %v5267_v20 = vpop.eup %5266 }
 0x5cf   :  { %v5269_v10 = vpop.eup %5268 }
 0x5d0   :  { %4105 = vxpose.xlu1.b32.cont [6/16] (narrow) %v5231_v32, 8  ;;  %v3423_v32 = vpop.f32.mrf.mxu2  ;;  %v3988_v18 = vpop.trf.xlu2 }
 0x5d1   :  { %4044 = vxpose.xlu0.b32.cont [9/16] (narrow) %v5229_v63, 8  ;;  %v260_v63 = vld [vmem:[#allocation7 + $0xc8] sm:$0xff]  ;;  %v8625_v37 = vperm.slane %v3988_v18, 0 }
 0x5d2   :  { %4076 = vxpose.xlu2.b32.cont [9/16] (narrow) %v5233_v31, 8  ;;  %3799 = vmatmul.f32.vlgmr.msrb.gmra.mxu3 %v260_v63  ;;  %v3452_v31 = vpop.f32.mrf.mxu3  ;;  %v3302_v30 = vpop.xlane.xlu1 %3301 }
 0x5d3   :  { %3741 = vmatmul.f32.vlgmr.msrb.gmra.mxu1 %v260_v63  ;;  %v3453_v46 = vadd.f32 %v3452_v31, %v3423_v32  ;;  %5280 = vrcp.f32 %v3302_v30 }
 0x5d4   :  { %5282 = vrcp.f32 %v8571_v27 }
 0x5d5   :  { %5284 = vrcp.f32 %v8579_v11 }
 0x5d6   :  { %5286 = vrcp.f32 %v8583_v40 }
 0x5d7   :  { %5288 = vrcp.f32 %v8530_v51 }
 0x5d8   :  { %4106 = vxpose.xlu1.b32.cont [7/16] (narrow) %v5237_v41, 8  ;;  %v3394_v41 = vpop.f32.mrf.mxu1  ;;  %5290 = vrcp.f32 %v8537_v38  ;;  %v3426_v63 = vpop.f32.mrf.mxu2 }
 0x5d9   :  { %4045 = vxpose.xlu0.b32.cont [10/16] (narrow) %v5235_v29, 8  ;;  %v3365_v29 = vpop.f32.mrf.mxu0  ;;  %5292 = vrcp.f32 %v8577_v34 }
 0x5da   :  { %4077 = vxpose.xlu2.b32.cont [10/16] (narrow) %v5239_v9, 8  ;;  %v4205_v9 = vmul.f32 %v8625_v37, %v3453_v46  ;;  %3802 = vmatmul.f32.gmra.mxu3 %v262_v12  ;;  %v3311_v24 = vpop.xlane.xlu1 %3310  ;;  %5294 = vrcp.f32 %v8534_v60  ;;  %v3455_v32 = vpop.f32.mrf.mxu3 }
 0x5db   :  { %3744 = vmatmul.f32.gmra.mxu1 %v262_v12  ;;  %5296 = vrcp.f32 %v3311_v24  ;;  %v3456_v38 = vadd.f32 %v3455_v32, %v3426_v63 }
 0x5dc   :  { %4237 = vst [vmem:[#allocation8 + $0x8] sm:$0xff] %v4205_v9  ;;  %5298 = vrcp.f32 %v8589_v43 }
 0x5dd   :  { %v4207_v34 = vmul.f32 %v8625_v37, %v3456_v38  ;;  %5300 = vrcp.f32 %v8593_v48 }
 0x5df   :  { %4239 = vst [vmem:[#allocation8 + $0x18] sm:$0xff] %v4207_v34 }
 0x5e0   :  { %4107 = vxpose.xlu1.b32.cont [8/16] (narrow) %v5243_v28, 8  ;;  %v3956_v28 = vpop.trf.xlu0  ;;  %v3397_v56 = vpop.f32.mrf.mxu1 }
 0x5e1   :  { %4046 = vxpose.xlu0.b32.cont [11/16] (narrow) %v5241_v47, 8  ;;  %v3395_v47 = vadd.f32 %v3394_v41, %v3365_v29  ;;  %v8631_v6 = vperm.slane %v3956_v28, 0  ;;  %v3429_v9 = vpop.f32.mrf.mxu2 }
 0x5e2   :  { %4078 = vxpose.xlu2.b32.cont [11/16] (narrow) %v5245_v61, 8  ;;  %v261_v61 = vld [vmem:[#allocation7 + $0xd0] sm:$0xff]  ;;  %3805 = vmatmul.f32.gmra.mxu3 %v264_v22 }
 0x5e3   :  { %3773 = vmatmul.f32.gmra.mxu2 %v261_v61  ;;  %3715 = vmatmul.f32.gmra.mxu0 %v261_v61  ;;  %v4204_v4 = vmul.f32 %v8631_v6, %v3395_v47 }
 0x5e4   :  { %3747 = vmatmul.f32.gmra.mxu1 %v264_v22 }
 0x5e5   :  { %4236 = vst [vmem:[#allocation8] sm:$0xff] %v4204_v4 }
 0x5e8   :  { %4108 = vxpose.xlu1.b32.cont [9/16] (narrow) %v5249_v35, 8  ;;  %v3400_v41 = vpop.f32.mrf.mxu1 }
 0x5e9   :  { %4047 = vxpose.xlu0.b32.cont [12/16] (narrow) %v5247_v52, 8  ;;  %v5271_v52 = vpop.eup %5270  ;;  %5302 = vrcp.f32 %v8546_v1  ;;  %v3432_v4 = vpop.f32.mrf.mxu2 }
 0x5ea   :  { %4079 = vxpose.xlu2.b32.cont [12/16] (narrow) %v5251_v53, 8  ;;  %v5273_v35 = vpop.eup %5272  ;;  %3808 = vmatmul.f32.gmra.mxu3 %v266_v15  ;;  %5304 = vrcp.f32 %v8586_v7 }
 0x5eb   :  { %v5275_v53 = vpop.eup %5274  ;;  %3776 = vmatmul.f32.gmra.mxu2 %v263_v26  ;;  %3718 = vmatmul.f32.gmra.mxu0 %v263_v26  ;;  %5306 = vrcp.f32 %v8542_v33 }
 0x5ec   :  { %v5277_v44 = vpop.eup %5276  ;;  %3750 = vmatmul.f32.gmra.mxu1 %v266_v15 }
 0x5f0   :  { %4109 = vxpose.xlu1.b32.cont [10/16] (narrow) %v5255_v17, 8  ;;  %v3403_v12 = vpop.f32.mrf.mxu1 }
 0x5f1   :  { %4048 = vxpose.xlu0.b32.cont [13/16] (narrow) %v5253_v14, 8  ;;  %v5279_v14 = vpop.eup %5278 }
 0x5f2   :  { %4080 = vxpose.xlu2.b32.cont [13/16] (narrow) %v5257_v55, 8  ;;  %v5281_v17 = vpop.eup %5280  ;;  %v8639_v55 = vpop.xlane.xlu1 %3319 }
 0x5f3   :  { %3779 = vmatmul.f32.gmra.mxu2 %v265_v49  ;;  %3721 = vmatmul.f32.gmra.mxu0 %v265_v49  ;;  %v5283_v19 = vpop.eup %5282  ;;  %5308 = vrcp.f32 %v8639_v55 }
 0x5f4   :  { %v5285_v25 = vpop.eup %5284  ;;  %5310 = vrcp.f32 %v8600_v59 }
 0x5f5   :  { %5312 = vrcp.f32 %v8602_v54 }
 0x5f6   :  { %5314 = vrcp.f32 %v8555_v50 }
 0x5f7   :  { %5316 = vrcp.f32 %v8595_v36 }
 0x5f8   :  { %4110 = vxpose.xlu1.b32.cont [11/16] (narrow) %v5261_v8, 8  ;;  %v3510_v7 = vpop.f32.mrf.mxu1 }
 0x5f9   :  { %4049 = vxpose.xlu0.b32.cont [14/16] (narrow) %v5259_v13, 8  ;;  %v5287_v13 = vpop.eup %5286  ;;  %5318 = vrcp.f32 %v8549_v0 }
 0x5fa   :  { %4081 = vxpose.xlu2.b32.cont [14/16] (narrow) %v5263_v16, 8  ;;  %v5289_v27 = vpop.eup %5288  ;;  %v8644_v11 = vpop.xlane.xlu1 %3328 }
 0x5fb   :  { %v5291_v40 = vpop.eup %5290  ;;  %v3368_v16 = vpop.f32.mrf.mxu0  ;;  %5320 = vrcp.f32 %v8644_v11 }
 0x5fc   :  { %v5293_v8 = vpop.eup %5292  ;;  %v3398_v51 = vadd.f32 %v3397_v56, %v3368_v16  ;;  %5322 = vrcp.f32 %v8609_v2 }
 0x5fd   :  { %v5295_v46 = vpop.eup %5294  ;;  %5324 = vrcp.f32 %v8611_v39 }
 0x5fe   :  { %v4206_v31 = vmul.f32 %v8631_v6, %v3398_v51  ;;  %v5297_v18 = vpop.eup %5296  ;;  %5326 = vrcp.f32 %v8564_v45 }
 0x5ff   :  { %v5299_v28 = vpop.eup %5298  ;;  %5328 = vrcp.f32 %v8606_v21 }
 0x600   :  { %4111 = vxpose.xlu1.b32.cont [12/16] (narrow) %v5267_v20, 8  ;;  %4238 = vst [vmem:[#allocation8 + $0x10] sm:$0xff] %v4206_v31  ;;  %v3458_v20 = vpop.f32.mrf.mxu3  ;;  %v5301_v61 = vpop.eup %5300  ;;  %5330 = vrcp.f32 %v8557_v23 }
 0x601   :  { %4050 = vxpose.xlu0.b32.cont [15/16] (narrow) %v5265_v42, 8  ;;  %v5303_v24 = vpop.eup %5302 }
 0x602   :  { %4082 = vxpose.xlu2.b32.cont [15/16] (narrow) %v5269_v10, 8  ;;  %v8649_v29 = vpop.xlane.xlu1 %3337  ;;  %v3459_v10 = vadd.f32 %v3458_v20, %v3429_v9 }
 0x603   :  { %v3371_v60 = vpop.f32.mrf.mxu0  ;;  %5332 = vrcp.f32 %v8649_v29 }
 0x604   :  { %v3401_v42 = vadd.f32 %v3400_v41, %v3371_v60  ;;  %v4209_v47 = vmul.f32 %v8625_v37, %v3459_v10  ;;  %5334 = vrcp.f32 %v8618_v5 }
 0x606   :  { %v4208_v30 = vmul.f32 %v8631_v6, %v3401_v42  ;;  %4241 = vst [vmem:[#allocation8 + $0x28] sm:$0xff] %v4209_v47 }
 0x608   :  { %4112 = vxpose.xlu1.b32.cont [13/16] (narrow) %v5273_v35, 8  ;;  %4240 = vst [vmem:[#allocation8 + $0x20] sm:$0xff] %v4208_v30  ;;  %v3513_v55 = vpop.f32.mrf.mxu1 }
 0x609   :  { %4051 = vxpose.xlu0.b32.end [16/16] (narrow) %v5271_v52, 8  ;;  %v3461_v52 = vpop.f32.mrf.mxu3 }
 0x60a   :  { %4083 = vxpose.xlu2.b32.end [16/16] (narrow) %v5275_v53, 8  ;;  %v8657_v35 = vpop.xlane.xlu1 %3346  ;;  %v3462_v53 = vadd.f32 %v3461_v52, %v3432_v4 }
 0x60b   :  { %v3374_v43 = vpop.f32.mrf.mxu0 }
 0x60c   :  { %v3404_v48 = vadd.f32 %v3403_v12, %v3374_v43  ;;  %v4211_v22 = vmul.f32 %v8625_v37, %v3462_v53 }
 0x60e   :  { %v4210_v26 = vmul.f32 %v8631_v6, %v3404_v48  ;;  %4243 = vst [vmem:[#allocation8 + $0x38] sm:$0xff] %v4211_v22 }
 0x610   :  { %4113 = vxpose.xlu1.b32.cont [14/16] (narrow) %v5277_v44, 8  ;;  %4242 = vst [vmem:[#allocation8 + $0x30] sm:$0xff] %v4210_v26  ;;  %v5305_v44 = vpop.eup %5304  ;;  %5336 = vrcp.f32 %v8622_v62 }
 0x611   :  { %4132 = vxpose.xlu0.b32.start [1/16] (narrow) %v5279_v14, 8  ;;  %v3568_v49 = vpop.f32.mrf.mxu3 }
 0x612   :  { %4164 = vxpose.xlu2.b32.start [1/16] (narrow) %v5281_v17, 8  ;;  %v3539_v17 = vpop.f32.mrf.mxu2 }
 0x613   :  { %v3481_v1 = vpop.f32.mrf.mxu0  ;;  %v3569_v15 = vadd.f32 %v3568_v49, %v3539_v17 }
 0x614   :  { %v3511_v14 = vadd.f32 %v3510_v7, %v3481_v1 }
 0x618   :  { %4114 = vxpose.xlu1.b32.cont [15/16] (narrow) %v5283_v19, 8  ;;  %v4020_v19 = vpop.trf.xlu1 }
 0x619   :  { %4133 = vxpose.xlu0.b32.cont [2/16] (narrow) %v5285_v25, 8  ;;  %v4198_v25 = vperm.slane %v4020_v19, 0  ;;  %v3571_v63 = vpop.f32.mrf.mxu3 }
 0x61a   :  { %4165 = vxpose.xlu2.b32.cont [2/16] (narrow) %v5287_v13, 8  ;;  %v3542_v51 = vpop.f32.mrf.mxu2 }
 0x61b   :  { %v4212_v13 = vmul.f32 %v4198_v25, %v3511_v14  ;;  %v3484_v33 = vpop.f32.mrf.mxu0  ;;  %v3572_v32 = vadd.f32 %v3571_v63, %v3542_v51 }
 0x61c   :  { %v3514_v16 = vadd.f32 %v3513_v55, %v3484_v33 }
 0x61d   :  { %4244 = vst [vmem:[#allocation8 + $0x40] sm:$0xff] %v4212_v13 }
 0x61e   :  { %v4214_v56 = vmul.f32 %v4198_v25, %v3514_v16 }
 0x620   :  { %4115 = vxpose.xlu1.b32.end [16/16] (narrow) %v5289_v27, 8  ;;  %4246 = vst [vmem:[#allocation8 + $0x50] sm:$0xff] %v4214_v56 }
 0x621   :  { %4134 = vxpose.xlu0.b32.cont [3/16] (narrow) %v5291_v40, 8  ;;  %v5307_v40 = vpop.eup %5306  ;;  %v3574_v41 = vpop.f32.mrf.mxu3  ;;  %5338 = vrcp.f32 %v8573_v3 }
 0x622   :  { %4166 = vxpose.xlu2.b32.cont [3/16] (narrow) %v5293_v8, 8  ;;  %v5309_v8 = vpop.eup %5308  ;;  %v3545_v60 = vpop.f32.mrf.mxu2  ;;  %5340 = vrcp.f32 %v8616_v58 }
 0x623   :  { %v5311_v38 = vpop.eup %5310  ;;  %v3487_v59 = vpop.f32.mrf.mxu0  ;;  %v3575_v42 = vadd.f32 %v3574_v41, %v3545_v60  ;;  %5342 = vrcp.f32 %v8568_v57 }
 0x624   :  { %v5313_v31 = vpop.eup %5312  ;;  %5344 = vrcp.f32 %v8657_v35 }
 0x625   :  { %v5315_v9 = vpop.eup %5314 }
 0x626   :  { %v5317_v20 = vpop.eup %5316 }
 0x627   :  { %v5319_v12 = vpop.eup %5318 }
 0x628   :  { %v5321_v48 = vpop.eup %5320 }
 0x629   :  { %4135 = vxpose.xlu0.b32.cont [4/16] (narrow) %v5295_v46, 8  ;;  %v3516_v46 = vpop.f32.mrf.mxu1  ;;  %v5323_v17 = vpop.eup %5322 }
 0x62a   :  { %4167 = vxpose.xlu2.b32.cont [4/16] (narrow) %v5297_v18, 8  ;;  %v3517_v18 = vadd.f32 %v3516_v46, %v3487_v59  ;;  %v5325_v49 = vpop.eup %5324 }
 0x62b   :  { %v3490_v50 = vpop.f32.mrf.mxu0  ;;  %v4084_v53 = vpop.trf.xlu2 }
 0x62c   :  { %v4216_v54 = vmul.f32 %v4198_v25, %v3517_v18  ;;  %v4200_v22 = vperm.slane %v4084_v53, 0 }
 0x62e   :  { %4248 = vst [vmem:[#allocation8 + $0x60] sm:$0xff] %v4216_v54 }
 0x631   :  { %4136 = vxpose.xlu0.b32.cont [5/16] (narrow) %v5299_v28, 8  ;;  %v3519_v30 = vpop.f32.mrf.mxu1  ;;  %v3548_v28 = vpop.f32.mrf.mxu2 }
 0x632   :  { %4168 = vxpose.xlu2.b32.cont [5/16] (narrow) %v5301_v61, 8  ;;  %v3520_v36 = vadd.f32 %v3519_v30, %v3490_v50  ;;  %v3577_v61 = vpop.f32.mrf.mxu3 }
 0x633   :  { %v3578_v43 = vadd.f32 %v3577_v61, %v3548_v28  ;;  %v3597_v0 = vpop.f32.mrf.mxu0 }
 0x634   :  { %v4218_v47 = vmul.f32 %v4198_v25, %v3520_v36 }
 0x635   :  { %v4052_v6 = vpop.trf.xlu0 }
 0x636   :  { %v4199_v37 = vperm.slane %v4052_v6, 0  ;;  %4250 = vst [vmem:[#allocation8 + $0x70] sm:$0xff] %v4218_v47 }
 0x638   :  { %v4213_v27 = vmul.f32 %v4199_v37, %v3569_v15  ;;  %v4215_v34 = vmul.f32 %v4199_v37, %v3572_v32  ;;  %v4217_v10 = vmul.f32 %v4199_v37, %v3575_v42  ;;  %v4219_v4 = vmul.f32 %v4199_v37, %v3578_v43 }
 0x639   :  { %4137 = vxpose.xlu0.b32.cont [6/16] (narrow) %v5303_v24, 8  ;;  %v3626_v52 = vpop.f32.mrf.mxu1 }
 0x63a   :  { %4169 = vxpose.xlu2.b32.cont [6/16] (narrow) %v5305_v44, 8  ;;  %4245 = vst [vmem:[#allocation8 + $0x48] sm:$0xff] %v4213_v27  ;;  %v3627_v11 = vadd.f32 %v3626_v52, %v3597_v0  ;;  %v3655_v44 = vpop.f32.mrf.mxu2  ;;  %v3684_v1 = vpop.f32.mrf.mxu3 }
 0x63b   :  { %4247 = vst [vmem:[#allocation8 + $0x58] sm:$0xff] %v4215_v34  ;;  %v3685_v14 = vadd.f32 %v3684_v1, %v3655_v44  ;;  %v3600_v15 = vpop.f32.mrf.mxu0  ;;  %v5327_v27 = vpop.eup %5326 }
 0x63c   :  { %4249 = vst [vmem:[#allocation8 + $0x68] sm:$0xff] %v4217_v10  ;;  %v4220_v7 = vmul.f32 %v4200_v22, %v3627_v11 }
 0x63d   :  { %4251 = vst [vmem:[#allocation8 + $0x78] sm:$0xff] %v4219_v4 }
 0x63e   :  { %4252 = vst [vmem:[#allocation8 + $0x80] sm:$0xff] %v4220_v7 }
 0x641   :  { %4138 = vxpose.xlu0.b32.cont [7/16] (narrow) %v5307_v40, 8  ;;  %v3629_v39 = vpop.f32.mrf.mxu1  ;;  %v5329_v40 = vpop.eup %5328 }
 0x642   :  { %4170 = vxpose.xlu2.b32.cont [7/16] (narrow) %v5309_v8, 8  ;;  %v3630_v19 = vadd.f32 %v3629_v39, %v3600_v15  ;;  %v3658_v25 = vpop.f32.mrf.mxu2  ;;  %v3687_v37 = vpop.f32.mrf.mxu3 }
 0x643   :  { %v3688_v13 = vadd.f32 %v3687_v37, %v3658_v25  ;;  %v3603_v45 = vpop.f32.mrf.mxu0  ;;  %v5331_v63 = vpop.eup %5330 }
 0x644   :  { %v4222_v6 = vmul.f32 %v4200_v22, %v3630_v19  ;;  %v5333_v32 = vpop.eup %5332 }
 0x645   :  { %v5335_v54 = vpop.eup %5334 }
 0x646   :  { %4254 = vst [vmem:[#allocation8 + $0x90] sm:$0xff] %v4222_v6  ;;  %v5337_v60 = vpop.eup %5336 }
 0x647   :  { %v5339_v5 = vpop.eup %5338 }
 0x648   :  { %v5341_v42 = vpop.eup %5340 }
 0x649   :  { %4139 = vxpose.xlu0.b32.cont [8/16] (narrow) %v5311_v38, 8  ;;  %v3632_v33 = vpop.f32.mrf.mxu1  ;;  %v5343_v62 = vpop.eup %5342 }
 0x64a   :  { %4171 = vxpose.xlu2.b32.cont [8/16] (narrow) %v5313_v31, 8  ;;  %v3633_v21 = vadd.f32 %v3632_v33, %v3603_v45  ;;  %v3661_v16 = vpop.f32.mrf.mxu2  ;;  %v3690_v56 = vpop.f32.mrf.mxu3 }
 0x64b   :  { %v3691_v51 = vadd.f32 %v3690_v56, %v3661_v16  ;;  %v3606_v23 = vpop.f32.mrf.mxu0 }
 0x64c   :  { %v4116_v26 = vpop.trf.xlu1  ;;  %v4224_v55 = vmul.f32 %v4200_v22, %v3633_v21 }
 0x64d   :  { %v4201_v24 = vperm.slane %v4116_v26, 0 }
 0x64e   :  { %4256 = vst [vmem:[#allocation8 + $0xa0] sm:$0xff] %v4224_v55 }
 0x64f   :  { %v4221_v2 = vmul.f32 %v4201_v24, %v3685_v14  ;;  %v4223_v8 = vmul.f32 %v4201_v24, %v3688_v13  ;;  %v4225_v38 = vmul.f32 %v4201_v24, %v3691_v51 }
 0x651   :  { %4140 = vxpose.xlu0.b32.cont [9/16] (narrow) %v5315_v9, 8  ;;  %4253 = vst [vmem:[#allocation8 + $0x88] sm:$0xff] %v4221_v2  ;;  %v3635_v31 = vpop.f32.mrf.mxu1  ;;  %v5345_v9 = vpop.eup %5344 }
 0x652   :  { %4172 = vxpose.xlu2.b32.cont [9/16] (narrow) %v5317_v20, 8  ;;  %4255 = vst [vmem:[#allocation8 + $0x98] sm:$0xff] %v4223_v8  ;;  %v3636_v29 = vadd.f32 %v3635_v31, %v3606_v23  ;;  %v3664_v59 = vpop.f32.mrf.mxu2  ;;  %v3693_v46 = vpop.f32.mrf.mxu3 }
 0x653   :  { %4257 = vst [vmem:[#allocation8 + $0xa8] sm:$0xff] %v4225_v38  ;;  %v3694_v18 = vadd.f32 %v3693_v46, %v3664_v59  ;;  %v3713_v50 = vpop.f32.mrf.mxu0 }
 0x654   :  { %v4226_v34 = vmul.f32 %v4200_v22, %v3636_v29 }
 0x655   :  { %v4227_v41 = vmul.f32 %v4201_v24, %v3694_v18 }
 0x656   :  { %4258 = vst [vmem:[#allocation8 + $0xb0] sm:$0xff] %v4226_v34 }
 0x657   :  { %4259 = vst [vmem:[#allocation8 + $0xb8] sm:$0xff] %v4227_v41 }
 0x659   :  { %4141 = vxpose.xlu0.b32.cont [10/16] (narrow) %v5319_v12, 8  ;;  %v3742_v3 = vpop.f32.mrf.mxu1 }
 0x65a   :  { %4173 = vxpose.xlu2.b32.cont [10/16] (narrow) %v5321_v48, 8  ;;  %v3771_v20 = vpop.f32.mrf.mxu2  ;;  %v3800_v10 = vpop.f32.mrf.mxu3 }
 0x65b   :  { %v3801_v52 = vadd.f32 %v3800_v10, %v3771_v20 }
 0x660   :  { %v3716_v58 = vpop.f32.mrf.mxu0 }
 0x661   :  { %4142 = vxpose.xlu0.b32.cont [11/16] (narrow) %v5323_v17, 8  ;;  %v3745_v47 = vpop.f32.mrf.mxu1 }
 0x662   :  { %4174 = vxpose.xlu2.b32.cont [11/16] (narrow) %v5325_v49, 8  ;;  %v3803_v36 = vpop.f32.mrf.mxu3  ;;  %v3743_v49 = vadd.f32 %v3742_v3, %v3713_v50  ;;  %v3746_v2 = vadd.f32 %v3745_v47, %v3716_v58 }
 0x666   :  { %v3774_v30 = vpop.f32.mrf.mxu2 }
 0x667   :  { %v3804_v11 = vadd.f32 %v3803_v36, %v3774_v30 }
 0x668   :  { %v3719_v43 = vpop.f32.mrf.mxu0 }
 0x669   :  { %4143 = vxpose.xlu0.b32.cont [12/16] (narrow) %v5327_v27, 8  ;;  %v3748_v12 = vpop.f32.mrf.mxu1 }
 0x66a   :  { %4175 = vxpose.xlu2.b32.cont [12/16] (narrow) %v5329_v40, 8  ;;  %v3806_v61 = vpop.f32.mrf.mxu3  ;;  %v3749_v15 = vadd.f32 %v3748_v12, %v3719_v43 }
 0x66e   :  { %v3777_v28 = vpop.f32.mrf.mxu2 }
 0x66f   :  { %v3807_v4 = vadd.f32 %v3806_v61, %v3777_v28 }
 0x670   :  { %v3722_v1 = vpop.f32.mrf.mxu0 }
 0x671   :  { %4144 = vxpose.xlu0.b32.cont [13/16] (narrow) %v5331_v63, 8  ;;  %v3751_v7 = vpop.f32.mrf.mxu1 }
 0x672   :  { %4176 = vxpose.xlu2.b32.cont [13/16] (narrow) %v5333_v32, 8  ;;  %v3809_v48 = vpop.f32.mrf.mxu3  ;;  %v3752_v14 = vadd.f32 %v3751_v7, %v3722_v1 }
 0x676   :  { %v3780_v57 = vpop.f32.mrf.mxu2 }
 0x677   :  { %v3810_v0 = vadd.f32 %v3809_v48, %v3780_v57 }
 0x679   :  { %4145 = vxpose.xlu0.b32.cont [14/16] (narrow) %v5335_v54, 8 }
 0x67a   :  { %4177 = vxpose.xlu2.b32.cont [14/16] (narrow) %v5337_v60, 8 }
 0x681   :  { %4146 = vxpose.xlu0.b32.cont [15/16] (narrow) %v5339_v5, 8 }
 0x682   :  { %4178 = vxpose.xlu2.b32.cont [15/16] (narrow) %v5341_v42, 8 }
 0x689   :  { %4147 = vxpose.xlu0.b32.end [16/16] (narrow) %v5343_v62, 8 }
 0x68a   :  { %4179 = vxpose.xlu2.b32.end [16/16] (narrow) %v5345_v9, 8 }
 0x6ab   :  { %v4180_v35 = vpop.trf.xlu2 }
 0x6ac   :  { %v4203_v53 = vperm.slane %v4180_v35, 0 }
 0x6ae   :  { %v4229_v26 = vmul.f32 %v4203_v53, %v3801_v52  ;;  %v4231_v22 = vmul.f32 %v4203_v53, %v3804_v11  ;;  %v4233_v24 = vmul.f32 %v4203_v53, %v3807_v4  ;;  %v4235_v44 = vmul.f32 %v4203_v53, %v3810_v0 }
 0x6b0   :  { %4261 = vst [vmem:[#allocation8 + $0xc8] sm:$0xff] %v4229_v26 }
 0x6b1   :  { %4263 = vst [vmem:[#allocation8 + $0xd8] sm:$0xff] %v4231_v22 }
 0x6b2   :  { %4265 = vst [vmem:[#allocation8 + $0xe8] sm:$0xff] %v4233_v24 }
 0x6b3   :  { %4267 = vst [vmem:[#allocation8 + $0xf8] sm:$0xff] %v4235_v44 }
 0x6b5   :  { %v4148_v17 = vpop.trf.xlu0 }
 0x6b6   :  { %v4202_v39 = vperm.slane %v4148_v17, 0 }
 0x6b8   :  { %v4228_v19 = vmul.f32 %v4202_v39, %v3743_v49  ;;  %v4230_v6 = vmul.f32 %v4202_v39, %v3746_v2  ;;  %v4232_v25 = vmul.f32 %v4202_v39, %v3749_v15  ;;  %v4234_v37 = vmul.f32 %v4202_v39, %v3752_v14 }
 0x6ba   :  { %4260 = vst [vmem:[#allocation8 + $0xc0] sm:$0xff] %v4228_v19 }
 0x6bb   :  { %4262 = vst [vmem:[#allocation8 + $0xd0] sm:$0xff] %v4230_v6 }
 0x6bc   :  { %4264 = vst [vmem:[#allocation8 + $0xe0] sm:$0xff] %v4232_v25 }
 0x6bd   :  { %4266 = vst [vmem:[#allocation8 + $0xf0] sm:$0xff] %v4234_v37 }
 0x6be   :  { %4280 = dma.vmem_to_hbm [thread:$0]  %s4273_s29, 4096, %s4275_s5, [#allocation4], %s5401_s6, %s5401_s6, %s5402_s7  }
 0x6bf   :  { %5374 = dma.done.wait [#allocation4], 4096  }
 0x6c0   :  { %5375 = vsyncadd [#allocation4], 4294963200 }
 0x6c1   :  { %4285 = vsyncpa [#allocation3], 1 }
 0x6c2   :  { %4286 = vsyncpa [#allocation6], 1 }
 0x6c3   :  { %4287 = vsyncpa [#allocation4], 1 }

</bundles_post_ra>
